<compile_context>
chip_gen: v7x
topology: tpu7x:2x2x1
jax: 0.10.0
libtpu: 0.0.40
codegen_flags: <defaults>
</compile_context>

<pallas_src>
import jax
import jax.numpy as jnp
import numpy as np
from jax.experimental import pallas as pl
from jax.experimental.pallas import tpu as pltpu  # noqa: F401  (kept for TPU-specific tuning hooks)

# ---- model hyperparameters (small, consistent with the module) -------------
B = 2              # batch
N = 8              # sequence length (tokens)
DIM = 32           # model dim
DEPTH = 2          # number of transformer layers
HEADS = 4          # attention heads
DIM_HEAD = 16      # per-head dim
INNER = HEADS * DIM_HEAD          # 64
MULT = 4
FF_HID = DIM * MULT               # 128  (GEGLU hidden)
FF_PROJ = 2 * FF_HID              # 256  (first FF linear output)
SCALE = DIM_HEAD ** (-0.5)
EPS = 1e-5                        # nn.LayerNorm default

# ---- packed-parameter slab layout -------------------------------------------
# Vector slab: (DEPTH, 8, 256)
VEC_BFF1 = 0   # row 0, lanes 0:256  -> b_ff1
VEC_G1 = 1     # row 1, lanes 0:32   -> ln1 gamma
VEC_B1 = 2     # row 2, lanes 0:32   -> ln1 beta
VEC_G2 = 3     # row 3, lanes 0:32   -> ln2 gamma
VEC_B2 = 4     # row 4, lanes 0:32   -> ln2 beta
VEC_BFF2 = 5   # row 5, lanes 0:32   -> b_ff2
# Weight slab: (DEPTH, 256, 256), row ranges (all starting at lane 0):
W_QKV_R0 = 0                     # rows   0: 32, lanes 0:192  -> W_qkv^T (scale-folded)
W_OUT_R0 = W_QKV_R0 + DIM        # rows  32: 96, lanes 0:32   -> W_out^T
W_FF1_R0 = W_OUT_R0 + INNER      # rows  96:128, lanes 0:256  -> W_ff1^T
W_FF2_R0 = W_FF1_R0 + DIM        # rows 128:256, lanes 0:32   -> W_ff2^T
W_ROWS = W_FF2_R0 + FF_HID       # 256


# ---- small in-kernel helpers ------------------------------------------------
def _layernorm(x, gamma, beta):
    """PyTorch LayerNorm: biased variance, eps inside rsqrt."""
    mean = jnp.mean(x, axis=-1, keepdims=True)
    var = jnp.mean((x - mean) ** 2, axis=-1, keepdims=True)
    return (x - mean) * jax.lax.rsqrt(var + EPS) * gamma + beta


# Abramowitz & Stegun 7.1.26 erf approximation (max abs err ~1.5e-7) — matches
# torch's exact (non-tanh) F.gelu to ~1e-7 without relying on an erf primitive.
_ERF_P = 0.3275911
_ERF_A1 = 0.254829592
_ERF_A2 = -0.284496736
_ERF_A3 = 1.421413741
_ERF_A4 = -1.453152027
_ERF_A5 = 1.061405429


def _erf(x):
    ax = jnp.abs(x)
    t = 1.0 / (1.0 + _ERF_P * ax)
    poly = t * (_ERF_A1 + t * (_ERF_A2 + t * (_ERF_A3 + t * (_ERF_A4 + t * _ERF_A5))))
    y = 1.0 - poly * jnp.exp(-ax * ax)
    return jnp.where(x < 0, -y, y)


def _gelu_exact(x):
    return 0.5 * x * (1.0 + _erf(x * np.float32(2.0 ** -0.5)))


# ---- the fused transformer kernel -------------------------------------------
def _transformer_kernel(x_ref, vec_ref, w_ref, xo_ref, attn_ref):
    """Whole depth-DEPTH transformer on the full (B*N, DIM) token block."""
    x = x_ref[...]                                            # (B*N, DIM) f32
    attn_blocks = []                                          # (8, 32) per (l, b)

    for l in range(DEPTH):                                    # depth unrolled
        # -------- static slices from the packed parameter slabs --------
        g1 = vec_ref[l, VEC_G1:VEC_G1 + 1, 0:DIM]             # (1, 32)
        b1 = vec_ref[l, VEC_B1:VEC_B1 + 1, 0:DIM]
        g2 = vec_ref[l, VEC_G2:VEC_G2 + 1, 0:DIM]
        b2 = vec_ref[l, VEC_B2:VEC_B2 + 1, 0:DIM]
        bff1 = vec_ref[l, VEC_BFF1:VEC_BFF1 + 1, :]           # (1, 256)
        bff2 = vec_ref[l, VEC_BFF2:VEC_BFF2 + 1, 0:DIM]       # (1, 32)

        wqkv = w_ref[l, W_QKV_R0:W_QKV_R0 + DIM, 0:3 * INNER]     # (32, 192)
        wout = w_ref[l, W_OUT_R0:W_OUT_R0 + INNER, 0:DIM]         # (64, 32)
        wff1 = w_ref[l, W_FF1_R0:W_FF1_R0 + DIM, :]               # (32, 256)
        wff2 = w_ref[l, W_FF2_R0:W_FF2_R0 + FF_HID, 0:DIM]        # (128, 32)

        # ---------------- Attention block (pre-LN) ----------------
        xn = _layernorm(x, g1, b1)                            # (B*N, DIM)
        # Single big-M QKV projection; SCALE is pre-folded into the Q columns.
        qkv = jnp.dot(xn, wqkv, preferred_element_type=jnp.float32)  # (16, 192)

        av_batches = []
        for b in range(B):
            r0 = b * N
            heads = []
            av_heads = []
            for h in range(HEADS):
                c = h * DIM_HEAD
                q = qkv[r0:r0 + N, c:c + DIM_HEAD]                          # (N, DH)
                k = qkv[r0:r0 + N, INNER + c:INNER + c + DIM_HEAD]          # (N, DH)
                v = qkv[r0:r0 + N, 2 * INNER + c:2 * INNER + c + DIM_HEAD]  # (N, DH)

                # NT matmul: contract last dims directly (no explicit k.T).
                sim = jax.lax.dot_general(
                    q, k, (((1,), (1,)), ((), ())),
                    preferred_element_type=jnp.float32)                     # (N, N)
                m = jnp.max(sim, axis=-1, keepdims=True)
                p = jnp.exp(sim - m)
                s = jnp.sum(p, axis=-1, keepdims=True)
                inv = pl.reciprocal(s, approx=True)           # EUP slot
                inv = inv * (2.0 - s * inv)                   # one Newton step
                a = p * inv
                heads.append(a)
                av_heads.append(jnp.dot(a, v, preferred_element_type=jnp.float32))

            attn_blocks.append(jnp.concatenate(heads, axis=-1))    # (8, 32)
            av_batches.append(jnp.concatenate(av_heads, axis=-1))  # (8, 64)

        # register-level head/batch merge (no VMEM scratch round trip)
        av = jnp.concatenate(av_batches, axis=0)              # (16, 64)
        # big-M output projection + residual
        x = x + jnp.dot(av, wout, preferred_element_type=jnp.float32)

        # ---------------- FeedForward block (pre-LN, GEGLU) ----------------
        xn2 = _layernorm(x, g2, b2)
        h1 = jnp.dot(xn2, wff1, preferred_element_type=jnp.float32) + bff1  # (16, 256)
        u = h1[:, :FF_HID]                                    # (16, 128)
        g = h1[:, FF_HID:]                                    # (16, 128)
        ff = u * _gelu_exact(g)                               # GEGLU
        x = x + jnp.dot(ff, wff2, preferred_element_type=jnp.float32) + bff2

    xo_ref[...] = x                                           # (16, 32)
    # single lane-dense (8, 128) unmasked store for all attention maps
    attn_ref[...] = jnp.concatenate(attn_blocks, axis=-1)     # (8, 128)


# ---- parameter packing (one-time host/XLA prep, outside the kernel) ----------
def pack_params(params):
    """Pack PyTorch-layout per-layer weights into two dense f32 slabs."""
    scale_vec = jnp.concatenate(
        [jnp.full((INNER,), SCALE, jnp.float32),
         jnp.ones((2 * INNER,), jnp.float32)])
    wqkv_k = jnp.transpose(params['w_qkv'], (0, 2, 1)) * scale_vec[None, None, :]
    wout_k = jnp.transpose(params['w_out'], (0, 2, 1))        # (D, INNER, DIM)
    wff1_k = jnp.transpose(params['w_ff1'], (0, 2, 1))        # (D, DIM, 256)
    wff2_k = jnp.transpose(params['w_ff2'], (0, 2, 1))        # (D, 128, DIM)

    w_slab = jnp.zeros((DEPTH, W_ROWS, FF_PROJ), jnp.float32)
    w_slab = w_slab.at[:, W_QKV_R0:W_QKV_R0 + DIM, 0:3 * INNER].set(wqkv_k)
    w_slab = w_slab.at[:, W_OUT_R0:W_OUT_R0 + INNER, 0:DIM].set(wout_k)
    w_slab = w_slab.at[:, W_FF1_R0:W_FF1_R0 + DIM, :].set(wff1_k)
    w_slab = w_slab.at[:, W_FF2_R0:W_FF2_R0 + FF_HID, 0:DIM].set(wff2_k)

    vec_slab = jnp.zeros((DEPTH, 8, FF_PROJ), jnp.float32)
    vec_slab = vec_slab.at[:, VEC_BFF1, :].set(params['b_ff1'])
    vec_slab = vec_slab.at[:, VEC_G1, 0:DIM].set(params['ln1_g'])
    vec_slab = vec_slab.at[:, VEC_B1, 0:DIM].set(params['ln1_b'])
    vec_slab = vec_slab.at[:, VEC_G2, 0:DIM].set(params['ln2_g'])
    vec_slab = vec_slab.at[:, VEC_B2, 0:DIM].set(params['ln2_b'])
    vec_slab = vec_slab.at[:, VEC_BFF2, 0:DIM].set(params['b_ff2'])
    return vec_slab, w_slab


# ---- wrapper -----------------------------------------------------------------
@jax.jit
def transformer_forward(x, vec_slab, w_slab):
    """x: (B, N, DIM); slabs from pack_params.
    Returns (out (B,N,DIM), attn (DEPTH,B,HEADS,N,N))."""
    x2 = x.reshape(B * N, DIM)

    out2, attn_flat = pl.pallas_call(
        _transformer_kernel,
        out_shape=(
            jax.ShapeDtypeStruct((B * N, DIM), jnp.float32),
            jax.ShapeDtypeStruct((N, DEPTH * B * HEADS * N), jnp.float32),
        ),
    )(x2, vec_slab, w_slab)

    out = out2.reshape(B, N, DIM)
    # (N, DEPTH*B*HEADS*N)[i, ((l*B+b)*HEADS+h)*N + j] == attn[l,b,h,i,j];
    # reshape + transpose fix-up is a tiny one-time op outside the kernel.
    attn = attn_flat.reshape(N, DEPTH, B, HEADS, N).transpose(1, 2, 3, 0, 4)
    return out, attn


# ---- pure-JAX reference mirroring the PyTorch module ---------------------------
def _ln_ref(x, g, b):
    mean = jnp.mean(x, axis=-1, keepdims=True)
    var = jnp.mean((x - mean) ** 2, axis=-1, keepdims=True)
    return (x - mean) / jnp.sqrt(var + EPS) * g + b


def _reference(x, params):
    attns = []
    for l in range(DEPTH):
        # Attention
        xn = _ln_ref(x, params['ln1_g'][l], params['ln1_b'][l])
        qkv = xn @ params['w_qkv'][l].T
        q, k, v = jnp.split(qkv, 3, axis=-1)

        def to_heads(t):
            return t.reshape(B, N, HEADS, DIM_HEAD).transpose(0, 2, 1, 3)

        q, k, v = map(to_heads, (q, k, v))
        q = q * SCALE
        sim = jnp.einsum('bhid,bhjd->bhij', q, k)
        attn = jax.nn.softmax(sim, axis=-1)
        attns.append(attn)
        o = jnp.einsum('bhij,bhjd->bhid', attn, v)
        o = o.transpose(0, 2, 1, 3).reshape(B, N, INNER)
        x = x + o @ params['w_out'][l].T
        # FeedForward (GEGLU)
        xn2 = _ln_ref(x, params['ln2_g'][l], params['ln2_b'][l])
        h1 = xn2 @ params['w_ff1'][l].T + params['b_ff1'][l]
        u, g = jnp.split(h1, 2, axis=-1)
        ff = (u * jax.nn.gelu(g, approximate=False)) @ params['w_ff2'][l].T \
            + params['b_ff2'][l]
        x = x + ff
    return x, jnp.stack(attns)


if __name__ == "__main__":
    key = jax.random.PRNGKey(0)
    ks = jax.random.split(key, 11)

    x = jax.random.normal(ks[0], (B, N, DIM), dtype=jnp.float32)
    # Deterministic synthetic parameters (not loading a checkpoint).
    params = {
        'ln1_g': 1.0 + 0.01 * jax.random.normal(ks[1], (DEPTH, DIM), jnp.float32),
        'ln1_b': 0.01 * jax.random.normal(ks[2], (DEPTH, DIM), jnp.float32),
        'w_qkv': jax.random.normal(ks[3], (DEPTH, 3 * INNER, DIM), jnp.float32) / np.sqrt(DIM),
        'w_out': jax.random.normal(ks[4], (DEPTH, DIM, INNER), jnp.float32) / np.sqrt(INNER),
        'ln2_g': 1.0 + 0.01 * jax.random.normal(ks[5], (DEPTH, DIM), jnp.float32),
        'ln2_b': 0.01 * jax.random.normal(ks[6], (DEPTH, DIM), jnp.float32),
        'w_ff1': jax.random.normal(ks[7], (DEPTH, FF_PROJ, DIM), jnp.float32) / np.sqrt(DIM),
        'b_ff1': 0.01 * jax.random.normal(ks[8], (DEPTH, FF_PROJ), jnp.float32),
        'w_ff2': jax.random.normal(ks[9], (DEPTH, DIM, FF_HID), jnp.float32) / np.sqrt(FF_HID),
        'b_ff2': 0.01 * jax.random.normal(ks[10], (DEPTH, DIM), jnp.float32),
    }

    vec_slab, w_slab = pack_params(params)       # one-time packing, outside the kernel
    out, attn = transformer_forward(x, vec_slab, w_slab)
    out, attn = jax.block_until_ready((out, attn))

    out_ref, attn_ref = _reference(x, params)
    np.testing.assert_allclose(np.asarray(out), np.asarray(out_ref),
                               rtol=2e-4, atol=2e-4)
    np.testing.assert_allclose(np.asarray(attn), np.asarray(attn_ref),
                               rtol=2e-4, atol=2e-4)

    print("KERNEL_OK")
</pallas_src>

<mosaic_0001>
module attributes {stable_mosaic.version = 11 : i64} {
  func.func @_transformer_kernel(%arg0: memref<16x32xf32, #tpu.memory_space<vmem>>, %arg1: memref<2x8x256xf32, #tpu.memory_space<vmem>>, %arg2: memref<2x256x256xf32, #tpu.memory_space<vmem>>, %arg3: memref<16x32xf32, #tpu.memory_space<vmem>>, %arg4: memref<8x128xf32, #tpu.memory_space<vmem>>) attributes {dimension_semantics = [], scalar_prefetch = 0 : i64, scratch_operands = 0 : i64, tpu.core_type = #tpu.core_type<tc>} {
    %c0 = arith.constant 0 : index
    %c0_0 = arith.constant 0 : index
    %0 = vector.load %arg0[%c0, %c0_0] : memref<16x32xf32, #tpu.memory_space<vmem>>, vector<16x32xf32>
    %c0_1 = arith.constant 0 : index
    %c1 = arith.constant 1 : index
    %c0_2 = arith.constant 0 : index
    %1 = vector.load %arg1[%c0_1, %c1, %c0_2] : memref<2x8x256xf32, #tpu.memory_space<vmem>>, vector<1x1x32xf32>
    %2 = vector.shape_cast %1 : vector<1x1x32xf32> to vector<1x32xf32>
    %c0_3 = arith.constant 0 : index
    %c2 = arith.constant 2 : index
    %c0_4 = arith.constant 0 : index
    %3 = vector.load %arg1[%c0_3, %c2, %c0_4] : memref<2x8x256xf32, #tpu.memory_space<vmem>>, vector<1x1x32xf32>
    %4 = vector.shape_cast %3 : vector<1x1x32xf32> to vector<1x32xf32>
    %c0_5 = arith.constant 0 : index
    %c3 = arith.constant 3 : index
    %c0_6 = arith.constant 0 : index
    %5 = vector.load %arg1[%c0_5, %c3, %c0_6] : memref<2x8x256xf32, #tpu.memory_space<vmem>>, vector<1x1x32xf32>
    %6 = vector.shape_cast %5 : vector<1x1x32xf32> to vector<1x32xf32>
    %c0_7 = arith.constant 0 : index
    %c4 = arith.constant 4 : index
    %c0_8 = arith.constant 0 : index
    %7 = vector.load %arg1[%c0_7, %c4, %c0_8] : memref<2x8x256xf32, #tpu.memory_space<vmem>>, vector<1x1x32xf32>
    %8 = vector.shape_cast %7 : vector<1x1x32xf32> to vector<1x32xf32>
    %c0_9 = arith.constant 0 : index
    %c0_10 = arith.constant 0 : index
    %c0_11 = arith.constant 0 : index
    %9 = vector.load %arg1[%c0_9, %c0_10, %c0_11] : memref<2x8x256xf32, #tpu.memory_space<vmem>>, vector<1x1x256xf32>
    %10 = vector.shape_cast %9 : vector<1x1x256xf32> to vector<1x256xf32>
    %c0_12 = arith.constant 0 : index
    %c5 = arith.constant 5 : index
    %c0_13 = arith.constant 0 : index
    %11 = vector.load %arg1[%c0_12, %c5, %c0_13] : memref<2x8x256xf32, #tpu.memory_space<vmem>>, vector<1x1x32xf32>
    %12 = vector.shape_cast %11 : vector<1x1x32xf32> to vector<1x32xf32>
    %c0_14 = arith.constant 0 : index
    %c0_15 = arith.constant 0 : index
    %c0_16 = arith.constant 0 : index
    %13 = vector.load %arg2[%c0_14, %c0_15, %c0_16] : memref<2x256x256xf32, #tpu.memory_space<vmem>>, vector<1x32x192xf32>
    %14 = vector.shape_cast %13 : vector<1x32x192xf32> to vector<32x192xf32>
    %c0_17 = arith.constant 0 : index
    %c32 = arith.constant 32 : index
    %c0_18 = arith.constant 0 : index
    %15 = vector.load %arg2[%c0_17, %c32, %c0_18] : memref<2x256x256xf32, #tpu.memory_space<vmem>>, vector<1x64x32xf32>
    %16 = vector.shape_cast %15 : vector<1x64x32xf32> to vector<64x32xf32>
    %c0_19 = arith.constant 0 : index
    %c96 = arith.constant 96 : index
    %c0_20 = arith.constant 0 : index
    %17 = vector.load %arg2[%c0_19, %c96, %c0_20] : memref<2x256x256xf32, #tpu.memory_space<vmem>>, vector<1x32x256xf32>
    %18 = vector.shape_cast %17 : vector<1x32x256xf32> to vector<32x256xf32>
    %c0_21 = arith.constant 0 : index
    %c128 = arith.constant 128 : index
    %c0_22 = arith.constant 0 : index
    %19 = vector.load %arg2[%c0_21, %c128, %c0_22] : memref<2x256x256xf32, #tpu.memory_space<vmem>>, vector<1x128x32xf32>
    %20 = vector.shape_cast %19 : vector<1x128x32xf32> to vector<128x32xf32>
    %cst = arith.constant dense<0.000000e+00> : vector<16xf32>
    %21 = vector.multi_reduction <add>, %0, %cst [1] : vector<16x32xf32> to vector<16xf32>
    %22 = vector.shape_cast %21 : vector<16xf32> to vector<16x1xf32>
    %cst_23 = arith.constant 3.200000e+01 : f32
    %23 = vector.broadcast %cst_23 : f32 to vector<16x1xf32>
    %24 = arith.divf %22, %23 : vector<16x1xf32>
    %25 = vector.broadcast %24 : vector<16x1xf32> to vector<16x32xf32>
    %26 = arith.subf %0, %25 : vector<16x32xf32>
    %27 = arith.mulf %26, %26 : vector<16x32xf32>
    %cst_24 = arith.constant dense<0.000000e+00> : vector<16xf32>
    %28 = vector.multi_reduction <add>, %27, %cst_24 [1] : vector<16x32xf32> to vector<16xf32>
    %29 = vector.shape_cast %28 : vector<16xf32> to vector<16x1xf32>
    %cst_25 = arith.constant 3.200000e+01 : f32
    %30 = vector.broadcast %cst_25 : f32 to vector<16x1xf32>
    %31 = arith.divf %29, %30 : vector<16x1xf32>
    %32 = vector.broadcast %24 : vector<16x1xf32> to vector<16x32xf32>
    %33 = arith.subf %0, %32 : vector<16x32xf32>
    %cst_26 = arith.constant 9.99999974E-6 : f32
    %34 = vector.broadcast %cst_26 : f32 to vector<16x1xf32>
    %35 = arith.addf %31, %34 : vector<16x1xf32>
    %36 = math.rsqrt %35 : vector<16x1xf32>
    %37 = vector.broadcast %36 : vector<16x1xf32> to vector<16x32xf32>
    %38 = arith.mulf %33, %37 : vector<16x32xf32>
    %39 = vector.broadcast %2 : vector<1x32xf32> to vector<16x32xf32>
    %40 = arith.mulf %38, %39 : vector<16x32xf32>
    %41 = vector.broadcast %4 : vector<1x32xf32> to vector<16x32xf32>
    %42 = arith.addf %40, %41 : vector<16x32xf32>
    %cst_27 = arith.constant dense<0.000000e+00> : vector<16x192xf32>
    %43 = tpu.matmul %42, %14, %cst_27 {dimension_numbers = #tpu.dot_dimension_numbers<[1], [0], [0], [1], [0, 0, 1, 1], [], []>} : vector<16x32xf32>, vector<32x192xf32>, vector<16x192xf32> -> vector<16x192xf32>
    %44 = vector.extract_strided_slice %43 {offsets = [0, 0], sizes = [8, 16], strides = [1, 1]} : vector<16x192xf32> to vector<8x16xf32>
    %45 = vector.extract_strided_slice %43 {offsets = [0, 64], sizes = [8, 16], strides = [1, 1]} : vector<16x192xf32> to vector<8x16xf32>
    %46 = vector.extract_strided_slice %43 {offsets = [0, 128], sizes = [8, 16], strides = [1, 1]} : vector<16x192xf32> to vector<8x16xf32>
    %cst_28 = arith.constant dense<0.000000e+00> : vector<8x8xf32>
    %47 = tpu.matmul %44, %45, %cst_28 {dimension_numbers = #tpu.dot_dimension_numbers<[1], [1], [0], [0], [0, 0, 1, 0], [], []>} : vector<8x16xf32>, vector<8x16xf32>, vector<8x8xf32> -> vector<8x8xf32>
    %cst_29 = arith.constant dense<0xFF800000> : vector<8xf32>
    %48 = vector.multi_reduction <maximumf>, %47, %cst_29 [1] : vector<8x8xf32> to vector<8xf32>
    %49 = vector.shape_cast %48 : vector<8xf32> to vector<8x1xf32>
    %50 = vector.broadcast %49 : vector<8x1xf32> to vector<8x8xf32>
    %51 = arith.subf %47, %50 : vector<8x8xf32>
    %52 = math.exp %51 : vector<8x8xf32>
    %cst_30 = arith.constant dense<0.000000e+00> : vector<8xf32>
    %53 = vector.multi_reduction <add>, %52, %cst_30 [1] : vector<8x8xf32> to vector<8xf32>
    %54 = vector.shape_cast %53 : vector<8xf32> to vector<8x1xf32>
    %55 = tpu.reciprocal %54 {approx = true} : vector<8x1xf32> -> vector<8x1xf32>
    %56 = arith.mulf %54, %55 : vector<8x1xf32>
    %cst_31 = arith.constant 2.000000e+00 : f32
    %57 = vector.broadcast %cst_31 : f32 to vector<8x1xf32>
    %58 = arith.subf %57, %56 : vector<8x1xf32>
    %59 = arith.mulf %55, %58 : vector<8x1xf32>
    %60 = vector.broadcast %59 : vector<8x1xf32> to vector<8x8xf32>
    %61 = arith.mulf %52, %60 : vector<8x8xf32>
    %cst_32 = arith.constant dense<0.000000e+00> : vector<8x16xf32>
    %62 = tpu.matmul %61, %46, %cst_32 {dimension_numbers = #tpu.dot_dimension_numbers<[1], [0], [0], [1], [0, 0, 1, 1], [], []>} : vector<8x8xf32>, vector<8x16xf32>, vector<8x16xf32> -> vector<8x16xf32>
    %63 = vector.extract_strided_slice %43 {offsets = [0, 16], sizes = [8, 16], strides = [1, 1]} : vector<16x192xf32> to vector<8x16xf32>
    %64 = vector.extract_strided_slice %43 {offsets = [0, 80], sizes = [8, 16], strides = [1, 1]} : vector<16x192xf32> to vector<8x16xf32>
    %65 = vector.extract_strided_slice %43 {offsets = [0, 144], sizes = [8, 16], strides = [1, 1]} : vector<16x192xf32> to vector<8x16xf32>
    %cst_33 = arith.constant dense<0.000000e+00> : vector<8x8xf32>
    %66 = tpu.matmul %63, %64, %cst_33 {dimension_numbers = #tpu.dot_dimension_numbers<[1], [1], [0], [0], [0, 0, 1, 0], [], []>} : vector<8x16xf32>, vector<8x16xf32>, vector<8x8xf32> -> vector<8x8xf32>
    %cst_34 = arith.constant dense<0xFF800000> : vector<8xf32>
    %67 = vector.multi_reduction <maximumf>, %66, %cst_34 [1] : vector<8x8xf32> to vector<8xf32>
    %68 = vector.shape_cast %67 : vector<8xf32> to vector<8x1xf32>
    %69 = vector.broadcast %68 : vector<8x1xf32> to vector<8x8xf32>
    %70 = arith.subf %66, %69 : vector<8x8xf32>
    %71 = math.exp %70 : vector<8x8xf32>
    %cst_35 = arith.constant dense<0.000000e+00> : vector<8xf32>
    %72 = vector.multi_reduction <add>, %71, %cst_35 [1] : vector<8x8xf32> to vector<8xf32>
    %73 = vector.shape_cast %72 : vector<8xf32> to vector<8x1xf32>
    %74 = tpu.reciprocal %73 {approx = true} : vector<8x1xf32> -> vector<8x1xf32>
    %75 = arith.mulf %73, %74 : vector<8x1xf32>
    %cst_36 = arith.constant 2.000000e+00 : f32
    %76 = vector.broadcast %cst_36 : f32 to vector<8x1xf32>
    %77 = arith.subf %76, %75 : vector<8x1xf32>
    %78 = arith.mulf %74, %77 : vector<8x1xf32>
    %79 = vector.broadcast %78 : vector<8x1xf32> to vector<8x8xf32>
    %80 = arith.mulf %71, %79 : vector<8x8xf32>
    %cst_37 = arith.constant dense<0.000000e+00> : vector<8x16xf32>
    %81 = tpu.matmul %80, %65, %cst_37 {dimension_numbers = #tpu.dot_dimension_numbers<[1], [0], [0], [1], [0, 0, 1, 1], [], []>} : vector<8x8xf32>, vector<8x16xf32>, vector<8x16xf32> -> vector<8x16xf32>
    %82 = vector.extract_strided_slice %43 {offsets = [0, 32], sizes = [8, 16], strides = [1, 1]} : vector<16x192xf32> to vector<8x16xf32>
    %83 = vector.extract_strided_slice %43 {offsets = [0, 96], sizes = [8, 16], strides = [1, 1]} : vector<16x192xf32> to vector<8x16xf32>
    %84 = vector.extract_strided_slice %43 {offsets = [0, 160], sizes = [8, 16], strides = [1, 1]} : vector<16x192xf32> to vector<8x16xf32>
    %cst_38 = arith.constant dense<0.000000e+00> : vector<8x8xf32>
    %85 = tpu.matmul %82, %83, %cst_38 {dimension_numbers = #tpu.dot_dimension_numbers<[1], [1], [0], [0], [0, 0, 1, 0], [], []>} : vector<8x16xf32>, vector<8x16xf32>, vector<8x8xf32> -> vector<8x8xf32>
    %cst_39 = arith.constant dense<0xFF800000> : vector<8xf32>
    %86 = vector.multi_reduction <maximumf>, %85, %cst_39 [1] : vector<8x8xf32> to vector<8xf32>
    %87 = vector.shape_cast %86 : vector<8xf32> to vector<8x1xf32>
    %88 = vector.broadcast %87 : vector<8x1xf32> to vector<8x8xf32>
    %89 = arith.subf %85, %88 : vector<8x8xf32>
    %90 = math.exp %89 : vector<8x8xf32>
    %cst_40 = arith.constant dense<0.000000e+00> : vector<8xf32>
    %91 = vector.multi_reduction <add>, %90, %cst_40 [1] : vector<8x8xf32> to vector<8xf32>
    %92 = vector.shape_cast %91 : vector<8xf32> to vector<8x1xf32>
    %93 = tpu.reciprocal %92 {approx = true} : vector<8x1xf32> -> vector<8x1xf32>
    %94 = arith.mulf %92, %93 : vector<8x1xf32>
    %cst_41 = arith.constant 2.000000e+00 : f32
    %95 = vector.broadcast %cst_41 : f32 to vector<8x1xf32>
    %96 = arith.subf %95, %94 : vector<8x1xf32>
    %97 = arith.mulf %93, %96 : vector<8x1xf32>
    %98 = vector.broadcast %97 : vector<8x1xf32> to vector<8x8xf32>
    %99 = arith.mulf %90, %98 : vector<8x8xf32>
    %cst_42 = arith.constant dense<0.000000e+00> : vector<8x16xf32>
    %100 = tpu.matmul %99, %84, %cst_42 {dimension_numbers = #tpu.dot_dimension_numbers<[1], [0], [0], [1], [0, 0, 1, 1], [], []>} : vector<8x8xf32>, vector<8x16xf32>, vector<8x16xf32> -> vector<8x16xf32>
    %101 = vector.extract_strided_slice %43 {offsets = [0, 48], sizes = [8, 16], strides = [1, 1]} : vector<16x192xf32> to vector<8x16xf32>
    %102 = vector.extract_strided_slice %43 {offsets = [0, 112], sizes = [8, 16], strides = [1, 1]} : vector<16x192xf32> to vector<8x16xf32>
    %103 = vector.extract_strided_slice %43 {offsets = [0, 176], sizes = [8, 16], strides = [1, 1]} : vector<16x192xf32> to vector<8x16xf32>
    %cst_43 = arith.constant dense<0.000000e+00> : vector<8x8xf32>
    %104 = tpu.matmul %101, %102, %cst_43 {dimension_numbers = #tpu.dot_dimension_numbers<[1], [1], [0], [0], [0, 0, 1, 0], [], []>} : vector<8x16xf32>, vector<8x16xf32>, vector<8x8xf32> -> vector<8x8xf32>
    %cst_44 = arith.constant dense<0xFF800000> : vector<8xf32>
    %105 = vector.multi_reduction <maximumf>, %104, %cst_44 [1] : vector<8x8xf32> to vector<8xf32>
    %106 = vector.shape_cast %105 : vector<8xf32> to vector<8x1xf32>
    %107 = vector.broadcast %106 : vector<8x1xf32> to vector<8x8xf32>
    %108 = arith.subf %104, %107 : vector<8x8xf32>
    %109 = math.exp %108 : vector<8x8xf32>
    %cst_45 = arith.constant dense<0.000000e+00> : vector<8xf32>
    %110 = vector.multi_reduction <add>, %109, %cst_45 [1] : vector<8x8xf32> to vector<8xf32>
    %111 = vector.shape_cast %110 : vector<8xf32> to vector<8x1xf32>
    %112 = tpu.reciprocal %111 {approx = true} : vector<8x1xf32> -> vector<8x1xf32>
    %113 = arith.mulf %111, %112 : vector<8x1xf32>
    %cst_46 = arith.constant 2.000000e+00 : f32
    %114 = vector.broadcast %cst_46 : f32 to vector<8x1xf32>
    %115 = arith.subf %114, %113 : vector<8x1xf32>
    %116 = arith.mulf %112, %115 : vector<8x1xf32>
    %117 = vector.broadcast %116 : vector<8x1xf32> to vector<8x8xf32>
    %118 = arith.mulf %109, %117 : vector<8x8xf32>
    %cst_47 = arith.constant dense<0.000000e+00> : vector<8x16xf32>
    %119 = tpu.matmul %118, %103, %cst_47 {dimension_numbers = #tpu.dot_dimension_numbers<[1], [0], [0], [1], [0, 0, 1, 1], [], []>} : vector<8x8xf32>, vector<8x16xf32>, vector<8x16xf32> -> vector<8x16xf32>
    %120 = tpu.concatenate %61, %80, %99, %118 in 1 : vector<8x8xf32>, vector<8x8xf32>, vector<8x8xf32>, vector<8x8xf32> -> vector<8x32xf32>
    %121 = tpu.concatenate %62, %81, %100, %119 in 1 : vector<8x16xf32>, vector<8x16xf32>, vector<8x16xf32>, vector<8x16xf32> -> vector<8x64xf32>
    %122 = vector.extract_strided_slice %43 {offsets = [8, 0], sizes = [8, 16], strides = [1, 1]} : vector<16x192xf32> to vector<8x16xf32>
    %123 = vector.extract_strided_slice %43 {offsets = [8, 64], sizes = [8, 16], strides = [1, 1]} : vector<16x192xf32> to vector<8x16xf32>
    %124 = vector.extract_strided_slice %43 {offsets = [8, 128], sizes = [8, 16], strides = [1, 1]} : vector<16x192xf32> to vector<8x16xf32>
    %cst_48 = arith.constant dense<0.000000e+00> : vector<8x8xf32>
    %125 = tpu.matmul %122, %123, %cst_48 {dimension_numbers = #tpu.dot_dimension_numbers<[1], [1], [0], [0], [0, 0, 1, 0], [], []>} : vector<8x16xf32>, vector<8x16xf32>, vector<8x8xf32> -> vector<8x8xf32>
    %cst_49 = arith.constant dense<0xFF800000> : vector<8xf32>
    %126 = vector.multi_reduction <maximumf>, %125, %cst_49 [1] : vector<8x8xf32> to vector<8xf32>
    %127 = vector.shape_cast %126 : vector<8xf32> to vector<8x1xf32>
    %128 = vector.broadcast %127 : vector<8x1xf32> to vector<8x8xf32>
    %129 = arith.subf %125, %128 : vector<8x8xf32>
    %130 = math.exp %129 : vector<8x8xf32>
    %cst_50 = arith.constant dense<0.000000e+00> : vector<8xf32>
    %131 = vector.multi_reduction <add>, %130, %cst_50 [1] : vector<8x8xf32> to vector<8xf32>
    %132 = vector.shape_cast %131 : vector<8xf32> to vector<8x1xf32>
    %133 = tpu.reciprocal %132 {approx = true} : vector<8x1xf32> -> vector<8x1xf32>
    %134 = arith.mulf %132, %133 : vector<8x1xf32>
    %cst_51 = arith.constant 2.000000e+00 : f32
    %135 = vector.broadcast %cst_51 : f32 to vector<8x1xf32>
    %136 = arith.subf %135, %134 : vector<8x1xf32>
    %137 = arith.mulf %133, %136 : vector<8x1xf32>
    %138 = vector.broadcast %137 : vector<8x1xf32> to vector<8x8xf32>
    %139 = arith.mulf %130, %138 : vector<8x8xf32>
    %cst_52 = arith.constant dense<0.000000e+00> : vector<8x16xf32>
    %140 = tpu.matmul %139, %124, %cst_52 {dimension_numbers = #tpu.dot_dimension_numbers<[1], [0], [0], [1], [0, 0, 1, 1], [], []>} : vector<8x8xf32>, vector<8x16xf32>, vector<8x16xf32> -> vector<8x16xf32>
    %141 = vector.extract_strided_slice %43 {offsets = [8, 16], sizes = [8, 16], strides = [1, 1]} : vector<16x192xf32> to vector<8x16xf32>
    %142 = vector.extract_strided_slice %43 {offsets = [8, 80], sizes = [8, 16], strides = [1, 1]} : vector<16x192xf32> to vector<8x16xf32>
    %143 = vector.extract_strided_slice %43 {offsets = [8, 144], sizes = [8, 16], strides = [1, 1]} : vector<16x192xf32> to vector<8x16xf32>
    %cst_53 = arith.constant dense<0.000000e+00> : vector<8x8xf32>
    %144 = tpu.matmul %141, %142, %cst_53 {dimension_numbers = #tpu.dot_dimension_numbers<[1], [1], [0], [0], [0, 0, 1, 0], [], []>} : vector<8x16xf32>, vector<8x16xf32>, vector<8x8xf32> -> vector<8x8xf32>
    %cst_54 = arith.constant dense<0xFF800000> : vector<8xf32>
    %145 = vector.multi_reduction <maximumf>, %144, %cst_54 [1] : vector<8x8xf32> to vector<8xf32>
    %146 = vector.shape_cast %145 : vector<8xf32> to vector<8x1xf32>
    %147 = vector.broadcast %146 : vector<8x1xf32> to vector<8x8xf32>
    %148 = arith.subf %144, %147 : vector<8x8xf32>
    %149 = math.exp %148 : vector<8x8xf32>
    %cst_55 = arith.constant dense<0.000000e+00> : vector<8xf32>
    %150 = vector.multi_reduction <add>, %149, %cst_55 [1] : vector<8x8xf32> to vector<8xf32>
    %151 = vector.shape_cast %150 : vector<8xf32> to vector<8x1xf32>
    %152 = tpu.reciprocal %151 {approx = true} : vector<8x1xf32> -> vector<8x1xf32>
    %153 = arith.mulf %151, %152 : vector<8x1xf32>
    %cst_56 = arith.constant 2.000000e+00 : f32
    %154 = vector.broadcast %cst_56 : f32 to vector<8x1xf32>
    %155 = arith.subf %154, %153 : vector<8x1xf32>
    %156 = arith.mulf %152, %155 : vector<8x1xf32>
    %157 = vector.broadcast %156 : vector<8x1xf32> to vector<8x8xf32>
    %158 = arith.mulf %149, %157 : vector<8x8xf32>
    %cst_57 = arith.constant dense<0.000000e+00> : vector<8x16xf32>
    %159 = tpu.matmul %158, %143, %cst_57 {dimension_numbers = #tpu.dot_dimension_numbers<[1], [0], [0], [1], [0, 0, 1, 1], [], []>} : vector<8x8xf32>, vector<8x16xf32>, vector<8x16xf32> -> vector<8x16xf32>
    %160 = vector.extract_strided_slice %43 {offsets = [8, 32], sizes = [8, 16], strides = [1, 1]} : vector<16x192xf32> to vector<8x16xf32>
    %161 = vector.extract_strided_slice %43 {offsets = [8, 96], sizes = [8, 16], strides = [1, 1]} : vector<16x192xf32> to vector<8x16xf32>
    %162 = vector.extract_strided_slice %43 {offsets = [8, 160], sizes = [8, 16], strides = [1, 1]} : vector<16x192xf32> to vector<8x16xf32>
    %cst_58 = arith.constant dense<0.000000e+00> : vector<8x8xf32>
    %163 = tpu.matmul %160, %161, %cst_58 {dimension_numbers = #tpu.dot_dimension_numbers<[1], [1], [0], [0], [0, 0, 1, 0], [], []>} : vector<8x16xf32>, vector<8x16xf32>, vector<8x8xf32> -> vector<8x8xf32>
    %cst_59 = arith.constant dense<0xFF800000> : vector<8xf32>
    %164 = vector.multi_reduction <maximumf>, %163, %cst_59 [1] : vector<8x8xf32> to vector<8xf32>
    %165 = vector.shape_cast %164 : vector<8xf32> to vector<8x1xf32>
    %166 = vector.broadcast %165 : vector<8x1xf32> to vector<8x8xf32>
    %167 = arith.subf %163, %166 : vector<8x8xf32>
    %168 = math.exp %167 : vector<8x8xf32>
    %cst_60 = arith.constant dense<0.000000e+00> : vector<8xf32>
    %169 = vector.multi_reduction <add>, %168, %cst_60 [1] : vector<8x8xf32> to vector<8xf32>
    %170 = vector.shape_cast %169 : vector<8xf32> to vector<8x1xf32>
    %171 = tpu.reciprocal %170 {approx = true} : vector<8x1xf32> -> vector<8x1xf32>
    %172 = arith.mulf %170, %171 : vector<8x1xf32>
    %cst_61 = arith.constant 2.000000e+00 : f32
    %173 = vector.broadcast %cst_61 : f32 to vector<8x1xf32>
    %174 = arith.subf %173, %172 : vector<8x1xf32>
    %175 = arith.mulf %171, %174 : vector<8x1xf32>
    %176 = vector.broadcast %175 : vector<8x1xf32> to vector<8x8xf32>
    %177 = arith.mulf %168, %176 : vector<8x8xf32>
    %cst_62 = arith.constant dense<0.000000e+00> : vector<8x16xf32>
    %178 = tpu.matmul %177, %162, %cst_62 {dimension_numbers = #tpu.dot_dimension_numbers<[1], [0], [0], [1], [0, 0, 1, 1], [], []>} : vector<8x8xf32>, vector<8x16xf32>, vector<8x16xf32> -> vector<8x16xf32>
    %179 = vector.extract_strided_slice %43 {offsets = [8, 48], sizes = [8, 16], strides = [1, 1]} : vector<16x192xf32> to vector<8x16xf32>
    %180 = vector.extract_strided_slice %43 {offsets = [8, 112], sizes = [8, 16], strides = [1, 1]} : vector<16x192xf32> to vector<8x16xf32>
    %181 = vector.extract_strided_slice %43 {offsets = [8, 176], sizes = [8, 16], strides = [1, 1]} : vector<16x192xf32> to vector<8x16xf32>
    %cst_63 = arith.constant dense<0.000000e+00> : vector<8x8xf32>
    %182 = tpu.matmul %179, %180, %cst_63 {dimension_numbers = #tpu.dot_dimension_numbers<[1], [1], [0], [0], [0, 0, 1, 0], [], []>} : vector<8x16xf32>, vector<8x16xf32>, vector<8x8xf32> -> vector<8x8xf32>
    %cst_64 = arith.constant dense<0xFF800000> : vector<8xf32>
    %183 = vector.multi_reduction <maximumf>, %182, %cst_64 [1] : vector<8x8xf32> to vector<8xf32>
    %184 = vector.shape_cast %183 : vector<8xf32> to vector<8x1xf32>
    %185 = vector.broadcast %184 : vector<8x1xf32> to vector<8x8xf32>
    %186 = arith.subf %182, %185 : vector<8x8xf32>
    %187 = math.exp %186 : vector<8x8xf32>
    %cst_65 = arith.constant dense<0.000000e+00> : vector<8xf32>
    %188 = vector.multi_reduction <add>, %187, %cst_65 [1] : vector<8x8xf32> to vector<8xf32>
    %189 = vector.shape_cast %188 : vector<8xf32> to vector<8x1xf32>
    %190 = tpu.reciprocal %189 {approx = true} : vector<8x1xf32> -> vector<8x1xf32>
    %191 = arith.mulf %189, %190 : vector<8x1xf32>
    %cst_66 = arith.constant 2.000000e+00 : f32
    %192 = vector.broadcast %cst_66 : f32 to vector<8x1xf32>
    %193 = arith.subf %192, %191 : vector<8x1xf32>
    %194 = arith.mulf %190, %193 : vector<8x1xf32>
    %195 = vector.broadcast %194 : vector<8x1xf32> to vector<8x8xf32>
    %196 = arith.mulf %187, %195 : vector<8x8xf32>
    %cst_67 = arith.constant dense<0.000000e+00> : vector<8x16xf32>
    %197 = tpu.matmul %196, %181, %cst_67 {dimension_numbers = #tpu.dot_dimension_numbers<[1], [0], [0], [1], [0, 0, 1, 1], [], []>} : vector<8x8xf32>, vector<8x16xf32>, vector<8x16xf32> -> vector<8x16xf32>
    %198 = tpu.concatenate %139, %158, %177, %196 in 1 : vector<8x8xf32>, vector<8x8xf32>, vector<8x8xf32>, vector<8x8xf32> -> vector<8x32xf32>
    %199 = tpu.concatenate %140, %159, %178, %197 in 1 : vector<8x16xf32>, vector<8x16xf32>, vector<8x16xf32>, vector<8x16xf32> -> vector<8x64xf32>
    %200 = tpu.concatenate %121, %199 in 0 : vector<8x64xf32>, vector<8x64xf32> -> vector<16x64xf32>
    %cst_68 = arith.constant dense<0.000000e+00> : vector<16x32xf32>
    %201 = tpu.matmul %200, %16, %cst_68 {dimension_numbers = #tpu.dot_dimension_numbers<[1], [0], [0], [1], [0, 0, 1, 1], [], []>} : vector<16x64xf32>, vector<64x32xf32>, vector<16x32xf32> -> vector<16x32xf32>
    %202 = arith.addf %0, %201 : vector<16x32xf32>
    %cst_69 = arith.constant dense<0.000000e+00> : vector<16xf32>
    %203 = vector.multi_reduction <add>, %202, %cst_69 [1] : vector<16x32xf32> to vector<16xf32>
    %204 = vector.shape_cast %203 : vector<16xf32> to vector<16x1xf32>
    %cst_70 = arith.constant 3.200000e+01 : f32
    %205 = vector.broadcast %cst_70 : f32 to vector<16x1xf32>
    %206 = arith.divf %204, %205 : vector<16x1xf32>
    %207 = vector.broadcast %206 : vector<16x1xf32> to vector<16x32xf32>
    %208 = arith.subf %202, %207 : vector<16x32xf32>
    %209 = arith.mulf %208, %208 : vector<16x32xf32>
    %cst_71 = arith.constant dense<0.000000e+00> : vector<16xf32>
    %210 = vector.multi_reduction <add>, %209, %cst_71 [1] : vector<16x32xf32> to vector<16xf32>
    %211 = vector.shape_cast %210 : vector<16xf32> to vector<16x1xf32>
    %cst_72 = arith.constant 3.200000e+01 : f32
    %212 = vector.broadcast %cst_72 : f32 to vector<16x1xf32>
    %213 = arith.divf %211, %212 : vector<16x1xf32>
    %214 = vector.broadcast %206 : vector<16x1xf32> to vector<16x32xf32>
    %215 = arith.subf %202, %214 : vector<16x32xf32>
    %cst_73 = arith.constant 9.99999974E-6 : f32
    %216 = vector.broadcast %cst_73 : f32 to vector<16x1xf32>
    %217 = arith.addf %213, %216 : vector<16x1xf32>
    %218 = math.rsqrt %217 : vector<16x1xf32>
    %219 = vector.broadcast %218 : vector<16x1xf32> to vector<16x32xf32>
    %220 = arith.mulf %215, %219 : vector<16x32xf32>
    %221 = vector.broadcast %6 : vector<1x32xf32> to vector<16x32xf32>
    %222 = arith.mulf %220, %221 : vector<16x32xf32>
    %223 = vector.broadcast %8 : vector<1x32xf32> to vector<16x32xf32>
    %224 = arith.addf %222, %223 : vector<16x32xf32>
    %cst_74 = arith.constant dense<0.000000e+00> : vector<16x256xf32>
    %225 = tpu.matmul %224, %18, %cst_74 {dimension_numbers = #tpu.dot_dimension_numbers<[1], [0], [0], [1], [0, 0, 1, 1], [], []>} : vector<16x32xf32>, vector<32x256xf32>, vector<16x256xf32> -> vector<16x256xf32>
    %226 = vector.broadcast %10 : vector<1x256xf32> to vector<16x256xf32>
    %227 = arith.addf %225, %226 : vector<16x256xf32>
    %228 = vector.extract_strided_slice %227 {offsets = [0, 0], sizes = [16, 128], strides = [1, 1]} : vector<16x256xf32> to vector<16x128xf32>
    %229 = vector.extract_strided_slice %227 {offsets = [0, 128], sizes = [16, 128], strides = [1, 1]} : vector<16x256xf32> to vector<16x128xf32>
    %cst_75 = arith.constant 5.000000e-01 : f32
    %230 = vector.broadcast %cst_75 : f32 to vector<16x128xf32>
    %231 = arith.mulf %230, %229 : vector<16x128xf32>
    %cst_76 = arith.constant 0.707106769 : f32
    %232 = vector.broadcast %cst_76 : f32 to vector<16x128xf32>
    %233 = arith.mulf %229, %232 : vector<16x128xf32>
    %234 = math.absf %233 : vector<16x128xf32>
    %cst_77 = arith.constant 0.327591091 : f32
    %235 = vector.broadcast %cst_77 : f32 to vector<16x128xf32>
    %236 = arith.mulf %235, %234 : vector<16x128xf32>
    %cst_78 = arith.constant 1.000000e+00 : f32
    %237 = vector.broadcast %cst_78 : f32 to vector<16x128xf32>
    %238 = arith.addf %237, %236 : vector<16x128xf32>
    %cst_79 = arith.constant 1.000000e+00 : f32
    %239 = vector.broadcast %cst_79 : f32 to vector<16x128xf32>
    %240 = arith.divf %239, %238 : vector<16x128xf32>
    %cst_80 = arith.constant 1.06140542 : f32
    %241 = vector.broadcast %cst_80 : f32 to vector<16x128xf32>
    %242 = arith.mulf %240, %241 : vector<16x128xf32>
    %cst_81 = arith.constant -1.45315206 : f32
    %243 = vector.broadcast %cst_81 : f32 to vector<16x128xf32>
    %244 = arith.addf %243, %242 : vector<16x128xf32>
    %245 = arith.mulf %240, %244 : vector<16x128xf32>
    %cst_82 = arith.constant 1.42141378 : f32
    %246 = vector.broadcast %cst_82 : f32 to vector<16x128xf32>
    %247 = arith.addf %246, %245 : vector<16x128xf32>
    %248 = arith.mulf %240, %247 : vector<16x128xf32>
    %cst_83 = arith.constant -0.284496725 : f32
    %249 = vector.broadcast %cst_83 : f32 to vector<16x128xf32>
    %250 = arith.addf %249, %248 : vector<16x128xf32>
    %251 = arith.mulf %240, %250 : vector<16x128xf32>
    %cst_84 = arith.constant 0.254829586 : f32
    %252 = vector.broadcast %cst_84 : f32 to vector<16x128xf32>
    %253 = arith.addf %252, %251 : vector<16x128xf32>
    %254 = arith.mulf %240, %253 : vector<16x128xf32>
    %cst_85 = arith.constant 0.000000e+00 : f32
    %255 = vector.broadcast %cst_85 : f32 to vector<16x128xf32>
    %256 = arith.subf %255, %234 : vector<16x128xf32>
    %257 = arith.mulf %256, %234 : vector<16x128xf32>
    %258 = math.exp %257 : vector<16x128xf32>
    %259 = arith.mulf %254, %258 : vector<16x128xf32>
    %cst_86 = arith.constant 1.000000e+00 : f32
    %260 = vector.broadcast %cst_86 : f32 to vector<16x128xf32>
    %261 = arith.subf %260, %259 : vector<16x128xf32>
    %cst_87 = arith.constant 0.000000e+00 : f32
    %262 = vector.broadcast %cst_87 : f32 to vector<16x128xf32>
    %263 = arith.cmpf olt, %233, %262 : vector<16x128xf32>
    %cst_88 = arith.constant 0.000000e+00 : f32
    %264 = vector.broadcast %cst_88 : f32 to vector<16x128xf32>
    %265 = arith.subf %264, %261 : vector<16x128xf32>
    %266 = arith.select %263, %265, %261 : vector<16x128xi1>, vector<16x128xf32>
    %cst_89 = arith.constant 1.000000e+00 : f32
    %267 = vector.broadcast %cst_89 : f32 to vector<16x128xf32>
    %268 = arith.addf %267, %266 : vector<16x128xf32>
    %269 = arith.mulf %231, %268 : vector<16x128xf32>
    %270 = arith.mulf %228, %269 : vector<16x128xf32>
    %cst_90 = arith.constant dense<0.000000e+00> : vector<16x32xf32>
    %271 = tpu.matmul %270, %20, %cst_90 {dimension_numbers = #tpu.dot_dimension_numbers<[1], [0], [0], [1], [0, 0, 1, 1], [], []>} : vector<16x128xf32>, vector<128x32xf32>, vector<16x32xf32> -> vector<16x32xf32>
    %272 = arith.addf %202, %271 : vector<16x32xf32>
    %273 = vector.broadcast %12 : vector<1x32xf32> to vector<16x32xf32>
    %274 = arith.addf %272, %273 : vector<16x32xf32>
    %c1_91 = arith.constant 1 : index
    %c1_92 = arith.constant 1 : index
    %c0_93 = arith.constant 0 : index
    %275 = vector.load %arg1[%c1_91, %c1_92, %c0_93] : memref<2x8x256xf32, #tpu.memory_space<vmem>>, vector<1x1x32xf32>
    %276 = vector.shape_cast %275 : vector<1x1x32xf32> to vector<1x32xf32>
    %c1_94 = arith.constant 1 : index
    %c2_95 = arith.constant 2 : index
    %c0_96 = arith.constant 0 : index
    %277 = vector.load %arg1[%c1_94, %c2_95, %c0_96] : memref<2x8x256xf32, #tpu.memory_space<vmem>>, vector<1x1x32xf32>
    %278 = vector.shape_cast %277 : vector<1x1x32xf32> to vector<1x32xf32>
    %c1_97 = arith.constant 1 : index
    %c3_98 = arith.constant 3 : index
    %c0_99 = arith.constant 0 : index
    %279 = vector.load %arg1[%c1_97, %c3_98, %c0_99] : memref<2x8x256xf32, #tpu.memory_space<vmem>>, vector<1x1x32xf32>
    %280 = vector.shape_cast %279 : vector<1x1x32xf32> to vector<1x32xf32>
    %c1_100 = arith.constant 1 : index
    %c4_101 = arith.constant 4 : index
    %c0_102 = arith.constant 0 : index
    %281 = vector.load %arg1[%c1_100, %c4_101, %c0_102] : memref<2x8x256xf32, #tpu.memory_space<vmem>>, vector<1x1x32xf32>
    %282 = vector.shape_cast %281 : vector<1x1x32xf32> to vector<1x32xf32>
    %c1_103 = arith.constant 1 : index
    %c0_104 = arith.constant 0 : index
    %c0_105 = arith.constant 0 : index
    %283 = vector.load %arg1[%c1_103, %c0_104, %c0_105] : memref<2x8x256xf32, #tpu.memory_space<vmem>>, vector<1x1x256xf32>
    %284 = vector.shape_cast %283 : vector<1x1x256xf32> to vector<1x256xf32>
    %c1_106 = arith.constant 1 : index
    %c5_107 = arith.constant 5 : index
    %c0_108 = arith.constant 0 : index
    %285 = vector.load %arg1[%c1_106, %c5_107, %c0_108] : memref<2x8x256xf32, #tpu.memory_space<vmem>>, vector<1x1x32xf32>
    %286 = vector.shape_cast %285 : vector<1x1x32xf32> to vector<1x32xf32>
    %c1_109 = arith.constant 1 : index
    %c0_110 = arith.constant 0 : index
    %c0_111 = arith.constant 0 : index
    %287 = vector.load %arg2[%c1_109, %c0_110, %c0_111] : memref<2x256x256xf32, #tpu.memory_space<vmem>>, vector<1x32x192xf32>
    %288 = vector.shape_cast %287 : vector<1x32x192xf32> to vector<32x192xf32>
    %c1_112 = arith.constant 1 : index
    %c32_113 = arith.constant 32 : index
    %c0_114 = arith.constant 0 : index
    %289 = vector.load %arg2[%c1_112, %c32_113, %c0_114] : memref<2x256x256xf32, #tpu.memory_space<vmem>>, vector<1x64x32xf32>
    %290 = vector.shape_cast %289 : vector<1x64x32xf32> to vector<64x32xf32>
    %c1_115 = arith.constant 1 : index
    %c96_116 = arith.constant 96 : index
    %c0_117 = arith.constant 0 : index
    %291 = vector.load %arg2[%c1_115, %c96_116, %c0_117] : memref<2x256x256xf32, #tpu.memory_space<vmem>>, vector<1x32x256xf32>
    %292 = vector.shape_cast %291 : vector<1x32x256xf32> to vector<32x256xf32>
    %c1_118 = arith.constant 1 : index
    %c128_119 = arith.constant 128 : index
    %c0_120 = arith.constant 0 : index
    %293 = vector.load %arg2[%c1_118, %c128_119, %c0_120] : memref<2x256x256xf32, #tpu.memory_space<vmem>>, vector<1x128x32xf32>
    %294 = vector.shape_cast %293 : vector<1x128x32xf32> to vector<128x32xf32>
    %cst_121 = arith.constant dense<0.000000e+00> : vector<16xf32>
    %295 = vector.multi_reduction <add>, %274, %cst_121 [1] : vector<16x32xf32> to vector<16xf32>
    %296 = vector.shape_cast %295 : vector<16xf32> to vector<16x1xf32>
    %cst_122 = arith.constant 3.200000e+01 : f32
    %297 = vector.broadcast %cst_122 : f32 to vector<16x1xf32>
    %298 = arith.divf %296, %297 : vector<16x1xf32>
    %299 = vector.broadcast %298 : vector<16x1xf32> to vector<16x32xf32>
    %300 = arith.subf %274, %299 : vector<16x32xf32>
    %301 = arith.mulf %300, %300 : vector<16x32xf32>
    %cst_123 = arith.constant dense<0.000000e+00> : vector<16xf32>
    %302 = vector.multi_reduction <add>, %301, %cst_123 [1] : vector<16x32xf32> to vector<16xf32>
    %303 = vector.shape_cast %302 : vector<16xf32> to vector<16x1xf32>
    %cst_124 = arith.constant 3.200000e+01 : f32
    %304 = vector.broadcast %cst_124 : f32 to vector<16x1xf32>
    %305 = arith.divf %303, %304 : vector<16x1xf32>
    %306 = vector.broadcast %298 : vector<16x1xf32> to vector<16x32xf32>
    %307 = arith.subf %274, %306 : vector<16x32xf32>
    %cst_125 = arith.constant 9.99999974E-6 : f32
    %308 = vector.broadcast %cst_125 : f32 to vector<16x1xf32>
    %309 = arith.addf %305, %308 : vector<16x1xf32>
    %310 = math.rsqrt %309 : vector<16x1xf32>
    %311 = vector.broadcast %310 : vector<16x1xf32> to vector<16x32xf32>
    %312 = arith.mulf %307, %311 : vector<16x32xf32>
    %313 = vector.broadcast %276 : vector<1x32xf32> to vector<16x32xf32>
    %314 = arith.mulf %312, %313 : vector<16x32xf32>
    %315 = vector.broadcast %278 : vector<1x32xf32> to vector<16x32xf32>
    %316 = arith.addf %314, %315 : vector<16x32xf32>
    %cst_126 = arith.constant dense<0.000000e+00> : vector<16x192xf32>
    %317 = tpu.matmul %316, %288, %cst_126 {dimension_numbers = #tpu.dot_dimension_numbers<[1], [0], [0], [1], [0, 0, 1, 1], [], []>} : vector<16x32xf32>, vector<32x192xf32>, vector<16x192xf32> -> vector<16x192xf32>
    %318 = vector.extract_strided_slice %317 {offsets = [0, 0], sizes = [8, 16], strides = [1, 1]} : vector<16x192xf32> to vector<8x16xf32>
    %319 = vector.extract_strided_slice %317 {offsets = [0, 64], sizes = [8, 16], strides = [1, 1]} : vector<16x192xf32> to vector<8x16xf32>
    %320 = vector.extract_strided_slice %317 {offsets = [0, 128], sizes = [8, 16], strides = [1, 1]} : vector<16x192xf32> to vector<8x16xf32>
    %cst_127 = arith.constant dense<0.000000e+00> : vector<8x8xf32>
    %321 = tpu.matmul %318, %319, %cst_127 {dimension_numbers = #tpu.dot_dimension_numbers<[1], [1], [0], [0], [0, 0, 1, 0], [], []>} : vector<8x16xf32>, vector<8x16xf32>, vector<8x8xf32> -> vector<8x8xf32>
    %cst_128 = arith.constant dense<0xFF800000> : vector<8xf32>
    %322 = vector.multi_reduction <maximumf>, %321, %cst_128 [1] : vector<8x8xf32> to vector<8xf32>
    %323 = vector.shape_cast %322 : vector<8xf32> to vector<8x1xf32>
    %324 = vector.broadcast %323 : vector<8x1xf32> to vector<8x8xf32>
    %325 = arith.subf %321, %324 : vector<8x8xf32>
    %326 = math.exp %325 : vector<8x8xf32>
    %cst_129 = arith.constant dense<0.000000e+00> : vector<8xf32>
    %327 = vector.multi_reduction <add>, %326, %cst_129 [1] : vector<8x8xf32> to vector<8xf32>
    %328 = vector.shape_cast %327 : vector<8xf32> to vector<8x1xf32>
    %329 = tpu.reciprocal %328 {approx = true} : vector<8x1xf32> -> vector<8x1xf32>
    %330 = arith.mulf %328, %329 : vector<8x1xf32>
    %cst_130 = arith.constant 2.000000e+00 : f32
    %331 = vector.broadcast %cst_130 : f32 to vector<8x1xf32>
    %332 = arith.subf %331, %330 : vector<8x1xf32>
    %333 = arith.mulf %329, %332 : vector<8x1xf32>
    %334 = vector.broadcast %333 : vector<8x1xf32> to vector<8x8xf32>
    %335 = arith.mulf %326, %334 : vector<8x8xf32>
    %cst_131 = arith.constant dense<0.000000e+00> : vector<8x16xf32>
    %336 = tpu.matmul %335, %320, %cst_131 {dimension_numbers = #tpu.dot_dimension_numbers<[1], [0], [0], [1], [0, 0, 1, 1], [], []>} : vector<8x8xf32>, vector<8x16xf32>, vector<8x16xf32> -> vector<8x16xf32>
    %337 = vector.extract_strided_slice %317 {offsets = [0, 16], sizes = [8, 16], strides = [1, 1]} : vector<16x192xf32> to vector<8x16xf32>
    %338 = vector.extract_strided_slice %317 {offsets = [0, 80], sizes = [8, 16], strides = [1, 1]} : vector<16x192xf32> to vector<8x16xf32>
    %339 = vector.extract_strided_slice %317 {offsets = [0, 144], sizes = [8, 16], strides = [1, 1]} : vector<16x192xf32> to vector<8x16xf32>
    %cst_132 = arith.constant dense<0.000000e+00> : vector<8x8xf32>
    %340 = tpu.matmul %337, %338, %cst_132 {dimension_numbers = #tpu.dot_dimension_numbers<[1], [1], [0], [0], [0, 0, 1, 0], [], []>} : vector<8x16xf32>, vector<8x16xf32>, vector<8x8xf32> -> vector<8x8xf32>
    %cst_133 = arith.constant dense<0xFF800000> : vector<8xf32>
    %341 = vector.multi_reduction <maximumf>, %340, %cst_133 [1] : vector<8x8xf32> to vector<8xf32>
    %342 = vector.shape_cast %341 : vector<8xf32> to vector<8x1xf32>
    %343 = vector.broadcast %342 : vector<8x1xf32> to vector<8x8xf32>
    %344 = arith.subf %340, %343 : vector<8x8xf32>
    %345 = math.exp %344 : vector<8x8xf32>
    %cst_134 = arith.constant dense<0.000000e+00> : vector<8xf32>
    %346 = vector.multi_reduction <add>, %345, %cst_134 [1] : vector<8x8xf32> to vector<8xf32>
    %347 = vector.shape_cast %346 : vector<8xf32> to vector<8x1xf32>
    %348 = tpu.reciprocal %347 {approx = true} : vector<8x1xf32> -> vector<8x1xf32>
    %349 = arith.mulf %347, %348 : vector<8x1xf32>
    %cst_135 = arith.constant 2.000000e+00 : f32
    %350 = vector.broadcast %cst_135 : f32 to vector<8x1xf32>
    %351 = arith.subf %350, %349 : vector<8x1xf32>
    %352 = arith.mulf %348, %351 : vector<8x1xf32>
    %353 = vector.broadcast %352 : vector<8x1xf32> to vector<8x8xf32>
    %354 = arith.mulf %345, %353 : vector<8x8xf32>
    %cst_136 = arith.constant dense<0.000000e+00> : vector<8x16xf32>
    %355 = tpu.matmul %354, %339, %cst_136 {dimension_numbers = #tpu.dot_dimension_numbers<[1], [0], [0], [1], [0, 0, 1, 1], [], []>} : vector<8x8xf32>, vector<8x16xf32>, vector<8x16xf32> -> vector<8x16xf32>
    %356 = vector.extract_strided_slice %317 {offsets = [0, 32], sizes = [8, 16], strides = [1, 1]} : vector<16x192xf32> to vector<8x16xf32>
    %357 = vector.extract_strided_slice %317 {offsets = [0, 96], sizes = [8, 16], strides = [1, 1]} : vector<16x192xf32> to vector<8x16xf32>
    %358 = vector.extract_strided_slice %317 {offsets = [0, 160], sizes = [8, 16], strides = [1, 1]} : vector<16x192xf32> to vector<8x16xf32>
    %cst_137 = arith.constant dense<0.000000e+00> : vector<8x8xf32>
    %359 = tpu.matmul %356, %357, %cst_137 {dimension_numbers = #tpu.dot_dimension_numbers<[1], [1], [0], [0], [0, 0, 1, 0], [], []>} : vector<8x16xf32>, vector<8x16xf32>, vector<8x8xf32> -> vector<8x8xf32>
    %cst_138 = arith.constant dense<0xFF800000> : vector<8xf32>
    %360 = vector.multi_reduction <maximumf>, %359, %cst_138 [1] : vector<8x8xf32> to vector<8xf32>
    %361 = vector.shape_cast %360 : vector<8xf32> to vector<8x1xf32>
    %362 = vector.broadcast %361 : vector<8x1xf32> to vector<8x8xf32>
    %363 = arith.subf %359, %362 : vector<8x8xf32>
    %364 = math.exp %363 : vector<8x8xf32>
    %cst_139 = arith.constant dense<0.000000e+00> : vector<8xf32>
    %365 = vector.multi_reduction <add>, %364, %cst_139 [1] : vector<8x8xf32> to vector<8xf32>
    %366 = vector.shape_cast %365 : vector<8xf32> to vector<8x1xf32>
    %367 = tpu.reciprocal %366 {approx = true} : vector<8x1xf32> -> vector<8x1xf32>
    %368 = arith.mulf %366, %367 : vector<8x1xf32>
    %cst_140 = arith.constant 2.000000e+00 : f32
    %369 = vector.broadcast %cst_140 : f32 to vector<8x1xf32>
    %370 = arith.subf %369, %368 : vector<8x1xf32>
    %371 = arith.mulf %367, %370 : vector<8x1xf32>
    %372 = vector.broadcast %371 : vector<8x1xf32> to vector<8x8xf32>
    %373 = arith.mulf %364, %372 : vector<8x8xf32>
    %cst_141 = arith.constant dense<0.000000e+00> : vector<8x16xf32>
    %374 = tpu.matmul %373, %358, %cst_141 {dimension_numbers = #tpu.dot_dimension_numbers<[1], [0], [0], [1], [0, 0, 1, 1], [], []>} : vector<8x8xf32>, vector<8x16xf32>, vector<8x16xf32> -> vector<8x16xf32>
    %375 = vector.extract_strided_slice %317 {offsets = [0, 48], sizes = [8, 16], strides = [1, 1]} : vector<16x192xf32> to vector<8x16xf32>
    %376 = vector.extract_strided_slice %317 {offsets = [0, 112], sizes = [8, 16], strides = [1, 1]} : vector<16x192xf32> to vector<8x16xf32>
    %377 = vector.extract_strided_slice %317 {offsets = [0, 176], sizes = [8, 16], strides = [1, 1]} : vector<16x192xf32> to vector<8x16xf32>
    %cst_142 = arith.constant dense<0.000000e+00> : vector<8x8xf32>
    %378 = tpu.matmul %375, %376, %cst_142 {dimension_numbers = #tpu.dot_dimension_numbers<[1], [1], [0], [0], [0, 0, 1, 0], [], []>} : vector<8x16xf32>, vector<8x16xf32>, vector<8x8xf32> -> vector<8x8xf32>
    %cst_143 = arith.constant dense<0xFF800000> : vector<8xf32>
    %379 = vector.multi_reduction <maximumf>, %378, %cst_143 [1] : vector<8x8xf32> to vector<8xf32>
    %380 = vector.shape_cast %379 : vector<8xf32> to vector<8x1xf32>
    %381 = vector.broadcast %380 : vector<8x1xf32> to vector<8x8xf32>
    %382 = arith.subf %378, %381 : vector<8x8xf32>
    %383 = math.exp %382 : vector<8x8xf32>
    %cst_144 = arith.constant dense<0.000000e+00> : vector<8xf32>
    %384 = vector.multi_reduction <add>, %383, %cst_144 [1] : vector<8x8xf32> to vector<8xf32>
    %385 = vector.shape_cast %384 : vector<8xf32> to vector<8x1xf32>
    %386 = tpu.reciprocal %385 {approx = true} : vector<8x1xf32> -> vector<8x1xf32>
    %387 = arith.mulf %385, %386 : vector<8x1xf32>
    %cst_145 = arith.constant 2.000000e+00 : f32
    %388 = vector.broadcast %cst_145 : f32 to vector<8x1xf32>
    %389 = arith.subf %388, %387 : vector<8x1xf32>
    %390 = arith.mulf %386, %389 : vector<8x1xf32>
    %391 = vector.broadcast %390 : vector<8x1xf32> to vector<8x8xf32>
    %392 = arith.mulf %383, %391 : vector<8x8xf32>
    %cst_146 = arith.constant dense<0.000000e+00> : vector<8x16xf32>
    %393 = tpu.matmul %392, %377, %cst_146 {dimension_numbers = #tpu.dot_dimension_numbers<[1], [0], [0], [1], [0, 0, 1, 1], [], []>} : vector<8x8xf32>, vector<8x16xf32>, vector<8x16xf32> -> vector<8x16xf32>
    %394 = tpu.concatenate %335, %354, %373, %392 in 1 : vector<8x8xf32>, vector<8x8xf32>, vector<8x8xf32>, vector<8x8xf32> -> vector<8x32xf32>
    %395 = tpu.concatenate %336, %355, %374, %393 in 1 : vector<8x16xf32>, vector<8x16xf32>, vector<8x16xf32>, vector<8x16xf32> -> vector<8x64xf32>
    %396 = vector.extract_strided_slice %317 {offsets = [8, 0], sizes = [8, 16], strides = [1, 1]} : vector<16x192xf32> to vector<8x16xf32>
    %397 = vector.extract_strided_slice %317 {offsets = [8, 64], sizes = [8, 16], strides = [1, 1]} : vector<16x192xf32> to vector<8x16xf32>
    %398 = vector.extract_strided_slice %317 {offsets = [8, 128], sizes = [8, 16], strides = [1, 1]} : vector<16x192xf32> to vector<8x16xf32>
    %cst_147 = arith.constant dense<0.000000e+00> : vector<8x8xf32>
    %399 = tpu.matmul %396, %397, %cst_147 {dimension_numbers = #tpu.dot_dimension_numbers<[1], [1], [0], [0], [0, 0, 1, 0], [], []>} : vector<8x16xf32>, vector<8x16xf32>, vector<8x8xf32> -> vector<8x8xf32>
    %cst_148 = arith.constant dense<0xFF800000> : vector<8xf32>
    %400 = vector.multi_reduction <maximumf>, %399, %cst_148 [1] : vector<8x8xf32> to vector<8xf32>
    %401 = vector.shape_cast %400 : vector<8xf32> to vector<8x1xf32>
    %402 = vector.broadcast %401 : vector<8x1xf32> to vector<8x8xf32>
    %403 = arith.subf %399, %402 : vector<8x8xf32>
    %404 = math.exp %403 : vector<8x8xf32>
    %cst_149 = arith.constant dense<0.000000e+00> : vector<8xf32>
    %405 = vector.multi_reduction <add>, %404, %cst_149 [1] : vector<8x8xf32> to vector<8xf32>
    %406 = vector.shape_cast %405 : vector<8xf32> to vector<8x1xf32>
    %407 = tpu.reciprocal %406 {approx = true} : vector<8x1xf32> -> vector<8x1xf32>
    %408 = arith.mulf %406, %407 : vector<8x1xf32>
    %cst_150 = arith.constant 2.000000e+00 : f32
    %409 = vector.broadcast %cst_150 : f32 to vector<8x1xf32>
    %410 = arith.subf %409, %408 : vector<8x1xf32>
    %411 = arith.mulf %407, %410 : vector<8x1xf32>
    %412 = vector.broadcast %411 : vector<8x1xf32> to vector<8x8xf32>
    %413 = arith.mulf %404, %412 : vector<8x8xf32>
    %cst_151 = arith.constant dense<0.000000e+00> : vector<8x16xf32>
    %414 = tpu.matmul %413, %398, %cst_151 {dimension_numbers = #tpu.dot_dimension_numbers<[1], [0], [0], [1], [0, 0, 1, 1], [], []>} : vector<8x8xf32>, vector<8x16xf32>, vector<8x16xf32> -> vector<8x16xf32>
    %415 = vector.extract_strided_slice %317 {offsets = [8, 16], sizes = [8, 16], strides = [1, 1]} : vector<16x192xf32> to vector<8x16xf32>
    %416 = vector.extract_strided_slice %317 {offsets = [8, 80], sizes = [8, 16], strides = [1, 1]} : vector<16x192xf32> to vector<8x16xf32>
    %417 = vector.extract_strided_slice %317 {offsets = [8, 144], sizes = [8, 16], strides = [1, 1]} : vector<16x192xf32> to vector<8x16xf32>
    %cst_152 = arith.constant dense<0.000000e+00> : vector<8x8xf32>
    %418 = tpu.matmul %415, %416, %cst_152 {dimension_numbers = #tpu.dot_dimension_numbers<[1], [1], [0], [0], [0, 0, 1, 0], [], []>} : vector<8x16xf32>, vector<8x16xf32>, vector<8x8xf32> -> vector<8x8xf32>
    %cst_153 = arith.constant dense<0xFF800000> : vector<8xf32>
    %419 = vector.multi_reduction <maximumf>, %418, %cst_153 [1] : vector<8x8xf32> to vector<8xf32>
    %420 = vector.shape_cast %419 : vector<8xf32> to vector<8x1xf32>
    %421 = vector.broadcast %420 : vector<8x1xf32> to vector<8x8xf32>
    %422 = arith.subf %418, %421 : vector<8x8xf32>
    %423 = math.exp %422 : vector<8x8xf32>
    %cst_154 = arith.constant dense<0.000000e+00> : vector<8xf32>
    %424 = vector.multi_reduction <add>, %423, %cst_154 [1] : vector<8x8xf32> to vector<8xf32>
    %425 = vector.shape_cast %424 : vector<8xf32> to vector<8x1xf32>
    %426 = tpu.reciprocal %425 {approx = true} : vector<8x1xf32> -> vector<8x1xf32>
    %427 = arith.mulf %425, %426 : vector<8x1xf32>
    %cst_155 = arith.constant 2.000000e+00 : f32
    %428 = vector.broadcast %cst_155 : f32 to vector<8x1xf32>
    %429 = arith.subf %428, %427 : vector<8x1xf32>
    %430 = arith.mulf %426, %429 : vector<8x1xf32>
    %431 = vector.broadcast %430 : vector<8x1xf32> to vector<8x8xf32>
    %432 = arith.mulf %423, %431 : vector<8x8xf32>
    %cst_156 = arith.constant dense<0.000000e+00> : vector<8x16xf32>
    %433 = tpu.matmul %432, %417, %cst_156 {dimension_numbers = #tpu.dot_dimension_numbers<[1], [0], [0], [1], [0, 0, 1, 1], [], []>} : vector<8x8xf32>, vector<8x16xf32>, vector<8x16xf32> -> vector<8x16xf32>
    %434 = vector.extract_strided_slice %317 {offsets = [8, 32], sizes = [8, 16], strides = [1, 1]} : vector<16x192xf32> to vector<8x16xf32>
    %435 = vector.extract_strided_slice %317 {offsets = [8, 96], sizes = [8, 16], strides = [1, 1]} : vector<16x192xf32> to vector<8x16xf32>
    %436 = vector.extract_strided_slice %317 {offsets = [8, 160], sizes = [8, 16], strides = [1, 1]} : vector<16x192xf32> to vector<8x16xf32>
    %cst_157 = arith.constant dense<0.000000e+00> : vector<8x8xf32>
    %437 = tpu.matmul %434, %435, %cst_157 {dimension_numbers = #tpu.dot_dimension_numbers<[1], [1], [0], [0], [0, 0, 1, 0], [], []>} : vector<8x16xf32>, vector<8x16xf32>, vector<8x8xf32> -> vector<8x8xf32>
    %cst_158 = arith.constant dense<0xFF800000> : vector<8xf32>
    %438 = vector.multi_reduction <maximumf>, %437, %cst_158 [1] : vector<8x8xf32> to vector<8xf32>
    %439 = vector.shape_cast %438 : vector<8xf32> to vector<8x1xf32>
    %440 = vector.broadcast %439 : vector<8x1xf32> to vector<8x8xf32>
    %441 = arith.subf %437, %440 : vector<8x8xf32>
    %442 = math.exp %441 : vector<8x8xf32>
    %cst_159 = arith.constant dense<0.000000e+00> : vector<8xf32>
    %443 = vector.multi_reduction <add>, %442, %cst_159 [1] : vector<8x8xf32> to vector<8xf32>
    %444 = vector.shape_cast %443 : vector<8xf32> to vector<8x1xf32>
    %445 = tpu.reciprocal %444 {approx = true} : vector<8x1xf32> -> vector<8x1xf32>
    %446 = arith.mulf %444, %445 : vector<8x1xf32>
    %cst_160 = arith.constant 2.000000e+00 : f32
    %447 = vector.broadcast %cst_160 : f32 to vector<8x1xf32>
    %448 = arith.subf %447, %446 : vector<8x1xf32>
    %449 = arith.mulf %445, %448 : vector<8x1xf32>
    %450 = vector.broadcast %449 : vector<8x1xf32> to vector<8x8xf32>
    %451 = arith.mulf %442, %450 : vector<8x8xf32>
    %cst_161 = arith.constant dense<0.000000e+00> : vector<8x16xf32>
    %452 = tpu.matmul %451, %436, %cst_161 {dimension_numbers = #tpu.dot_dimension_numbers<[1], [0], [0], [1], [0, 0, 1, 1], [], []>} : vector<8x8xf32>, vector<8x16xf32>, vector<8x16xf32> -> vector<8x16xf32>
    %453 = vector.extract_strided_slice %317 {offsets = [8, 48], sizes = [8, 16], strides = [1, 1]} : vector<16x192xf32> to vector<8x16xf32>
    %454 = vector.extract_strided_slice %317 {offsets = [8, 112], sizes = [8, 16], strides = [1, 1]} : vector<16x192xf32> to vector<8x16xf32>
    %455 = vector.extract_strided_slice %317 {offsets = [8, 176], sizes = [8, 16], strides = [1, 1]} : vector<16x192xf32> to vector<8x16xf32>
    %cst_162 = arith.constant dense<0.000000e+00> : vector<8x8xf32>
    %456 = tpu.matmul %453, %454, %cst_162 {dimension_numbers = #tpu.dot_dimension_numbers<[1], [1], [0], [0], [0, 0, 1, 0], [], []>} : vector<8x16xf32>, vector<8x16xf32>, vector<8x8xf32> -> vector<8x8xf32>
    %cst_163 = arith.constant dense<0xFF800000> : vector<8xf32>
    %457 = vector.multi_reduction <maximumf>, %456, %cst_163 [1] : vector<8x8xf32> to vector<8xf32>
    %458 = vector.shape_cast %457 : vector<8xf32> to vector<8x1xf32>
    %459 = vector.broadcast %458 : vector<8x1xf32> to vector<8x8xf32>
    %460 = arith.subf %456, %459 : vector<8x8xf32>
    %461 = math.exp %460 : vector<8x8xf32>
    %cst_164 = arith.constant dense<0.000000e+00> : vector<8xf32>
    %462 = vector.multi_reduction <add>, %461, %cst_164 [1] : vector<8x8xf32> to vector<8xf32>
    %463 = vector.shape_cast %462 : vector<8xf32> to vector<8x1xf32>
    %464 = tpu.reciprocal %463 {approx = true} : vector<8x1xf32> -> vector<8x1xf32>
    %465 = arith.mulf %463, %464 : vector<8x1xf32>
    %cst_165 = arith.constant 2.000000e+00 : f32
    %466 = vector.broadcast %cst_165 : f32 to vector<8x1xf32>
    %467 = arith.subf %466, %465 : vector<8x1xf32>
    %468 = arith.mulf %464, %467 : vector<8x1xf32>
    %469 = vector.broadcast %468 : vector<8x1xf32> to vector<8x8xf32>
    %470 = arith.mulf %461, %469 : vector<8x8xf32>
    %cst_166 = arith.constant dense<0.000000e+00> : vector<8x16xf32>
    %471 = tpu.matmul %470, %455, %cst_166 {dimension_numbers = #tpu.dot_dimension_numbers<[1], [0], [0], [1], [0, 0, 1, 1], [], []>} : vector<8x8xf32>, vector<8x16xf32>, vector<8x16xf32> -> vector<8x16xf32>
    %472 = tpu.concatenate %413, %432, %451, %470 in 1 : vector<8x8xf32>, vector<8x8xf32>, vector<8x8xf32>, vector<8x8xf32> -> vector<8x32xf32>
    %473 = tpu.concatenate %414, %433, %452, %471 in 1 : vector<8x16xf32>, vector<8x16xf32>, vector<8x16xf32>, vector<8x16xf32> -> vector<8x64xf32>
    %474 = tpu.concatenate %395, %473 in 0 : vector<8x64xf32>, vector<8x64xf32> -> vector<16x64xf32>
    %cst_167 = arith.constant dense<0.000000e+00> : vector<16x32xf32>
    %475 = tpu.matmul %474, %290, %cst_167 {dimension_numbers = #tpu.dot_dimension_numbers<[1], [0], [0], [1], [0, 0, 1, 1], [], []>} : vector<16x64xf32>, vector<64x32xf32>, vector<16x32xf32> -> vector<16x32xf32>
    %476 = arith.addf %274, %475 : vector<16x32xf32>
    %cst_168 = arith.constant dense<0.000000e+00> : vector<16xf32>
    %477 = vector.multi_reduction <add>, %476, %cst_168 [1] : vector<16x32xf32> to vector<16xf32>
    %478 = vector.shape_cast %477 : vector<16xf32> to vector<16x1xf32>
    %cst_169 = arith.constant 3.200000e+01 : f32
    %479 = vector.broadcast %cst_169 : f32 to vector<16x1xf32>
    %480 = arith.divf %478, %479 : vector<16x1xf32>
    %481 = vector.broadcast %480 : vector<16x1xf32> to vector<16x32xf32>
    %482 = arith.subf %476, %481 : vector<16x32xf32>
    %483 = arith.mulf %482, %482 : vector<16x32xf32>
    %cst_170 = arith.constant dense<0.000000e+00> : vector<16xf32>
    %484 = vector.multi_reduction <add>, %483, %cst_170 [1] : vector<16x32xf32> to vector<16xf32>
    %485 = vector.shape_cast %484 : vector<16xf32> to vector<16x1xf32>
    %cst_171 = arith.constant 3.200000e+01 : f32
    %486 = vector.broadcast %cst_171 : f32 to vector<16x1xf32>
    %487 = arith.divf %485, %486 : vector<16x1xf32>
    %488 = vector.broadcast %480 : vector<16x1xf32> to vector<16x32xf32>
    %489 = arith.subf %476, %488 : vector<16x32xf32>
    %cst_172 = arith.constant 9.99999974E-6 : f32
    %490 = vector.broadcast %cst_172 : f32 to vector<16x1xf32>
    %491 = arith.addf %487, %490 : vector<16x1xf32>
    %492 = math.rsqrt %491 : vector<16x1xf32>
    %493 = vector.broadcast %492 : vector<16x1xf32> to vector<16x32xf32>
    %494 = arith.mulf %489, %493 : vector<16x32xf32>
    %495 = vector.broadcast %280 : vector<1x32xf32> to vector<16x32xf32>
    %496 = arith.mulf %494, %495 : vector<16x32xf32>
    %497 = vector.broadcast %282 : vector<1x32xf32> to vector<16x32xf32>
    %498 = arith.addf %496, %497 : vector<16x32xf32>
    %cst_173 = arith.constant dense<0.000000e+00> : vector<16x256xf32>
    %499 = tpu.matmul %498, %292, %cst_173 {dimension_numbers = #tpu.dot_dimension_numbers<[1], [0], [0], [1], [0, 0, 1, 1], [], []>} : vector<16x32xf32>, vector<32x256xf32>, vector<16x256xf32> -> vector<16x256xf32>
    %500 = vector.broadcast %284 : vector<1x256xf32> to vector<16x256xf32>
    %501 = arith.addf %499, %500 : vector<16x256xf32>
    %502 = vector.extract_strided_slice %501 {offsets = [0, 0], sizes = [16, 128], strides = [1, 1]} : vector<16x256xf32> to vector<16x128xf32>
    %503 = vector.extract_strided_slice %501 {offsets = [0, 128], sizes = [16, 128], strides = [1, 1]} : vector<16x256xf32> to vector<16x128xf32>
    %cst_174 = arith.constant 5.000000e-01 : f32
    %504 = vector.broadcast %cst_174 : f32 to vector<16x128xf32>
    %505 = arith.mulf %504, %503 : vector<16x128xf32>
    %cst_175 = arith.constant 0.707106769 : f32
    %506 = vector.broadcast %cst_175 : f32 to vector<16x128xf32>
    %507 = arith.mulf %503, %506 : vector<16x128xf32>
    %508 = math.absf %507 : vector<16x128xf32>
    %cst_176 = arith.constant 0.327591091 : f32
    %509 = vector.broadcast %cst_176 : f32 to vector<16x128xf32>
    %510 = arith.mulf %509, %508 : vector<16x128xf32>
    %cst_177 = arith.constant 1.000000e+00 : f32
    %511 = vector.broadcast %cst_177 : f32 to vector<16x128xf32>
    %512 = arith.addf %511, %510 : vector<16x128xf32>
    %cst_178 = arith.constant 1.000000e+00 : f32
    %513 = vector.broadcast %cst_178 : f32 to vector<16x128xf32>
    %514 = arith.divf %513, %512 : vector<16x128xf32>
    %cst_179 = arith.constant 1.06140542 : f32
    %515 = vector.broadcast %cst_179 : f32 to vector<16x128xf32>
    %516 = arith.mulf %514, %515 : vector<16x128xf32>
    %cst_180 = arith.constant -1.45315206 : f32
    %517 = vector.broadcast %cst_180 : f32 to vector<16x128xf32>
    %518 = arith.addf %517, %516 : vector<16x128xf32>
    %519 = arith.mulf %514, %518 : vector<16x128xf32>
    %cst_181 = arith.constant 1.42141378 : f32
    %520 = vector.broadcast %cst_181 : f32 to vector<16x128xf32>
    %521 = arith.addf %520, %519 : vector<16x128xf32>
    %522 = arith.mulf %514, %521 : vector<16x128xf32>
    %cst_182 = arith.constant -0.284496725 : f32
    %523 = vector.broadcast %cst_182 : f32 to vector<16x128xf32>
    %524 = arith.addf %523, %522 : vector<16x128xf32>
    %525 = arith.mulf %514, %524 : vector<16x128xf32>
    %cst_183 = arith.constant 0.254829586 : f32
    %526 = vector.broadcast %cst_183 : f32 to vector<16x128xf32>
    %527 = arith.addf %526, %525 : vector<16x128xf32>
    %528 = arith.mulf %514, %527 : vector<16x128xf32>
    %cst_184 = arith.constant 0.000000e+00 : f32
    %529 = vector.broadcast %cst_184 : f32 to vector<16x128xf32>
    %530 = arith.subf %529, %508 : vector<16x128xf32>
    %531 = arith.mulf %530, %508 : vector<16x128xf32>
    %532 = math.exp %531 : vector<16x128xf32>
    %533 = arith.mulf %528, %532 : vector<16x128xf32>
    %cst_185 = arith.constant 1.000000e+00 : f32
    %534 = vector.broadcast %cst_185 : f32 to vector<16x128xf32>
    %535 = arith.subf %534, %533 : vector<16x128xf32>
    %cst_186 = arith.constant 0.000000e+00 : f32
    %536 = vector.broadcast %cst_186 : f32 to vector<16x128xf32>
    %537 = arith.cmpf olt, %507, %536 : vector<16x128xf32>
    %cst_187 = arith.constant 0.000000e+00 : f32
    %538 = vector.broadcast %cst_187 : f32 to vector<16x128xf32>
    %539 = arith.subf %538, %535 : vector<16x128xf32>
    %540 = arith.select %537, %539, %535 : vector<16x128xi1>, vector<16x128xf32>
    %cst_188 = arith.constant 1.000000e+00 : f32
    %541 = vector.broadcast %cst_188 : f32 to vector<16x128xf32>
    %542 = arith.addf %541, %540 : vector<16x128xf32>
    %543 = arith.mulf %505, %542 : vector<16x128xf32>
    %544 = arith.mulf %502, %543 : vector<16x128xf32>
    %cst_189 = arith.constant dense<0.000000e+00> : vector<16x32xf32>
    %545 = tpu.matmul %544, %294, %cst_189 {dimension_numbers = #tpu.dot_dimension_numbers<[1], [0], [0], [1], [0, 0, 1, 1], [], []>} : vector<16x128xf32>, vector<128x32xf32>, vector<16x32xf32> -> vector<16x32xf32>
    %546 = arith.addf %476, %545 : vector<16x32xf32>
    %547 = vector.broadcast %286 : vector<1x32xf32> to vector<16x32xf32>
    %548 = arith.addf %546, %547 : vector<16x32xf32>
    %c0_190 = arith.constant 0 : index
    %c0_191 = arith.constant 0 : index
    %549 = vector.load %arg3[%c0_190, %c0_191] : memref<16x32xf32, #tpu.memory_space<vmem>>, vector<16x32xf32>
    tpu.vector_store %arg3[%c0_190, %c0_191], %548 {strides = array<i32>} : memref<16x32xf32, #tpu.memory_space<vmem>>, vector<16x32xf32>,
    %550 = tpu.concatenate %120, %198, %394, %472 in 1 : vector<8x32xf32>, vector<8x32xf32>, vector<8x32xf32>, vector<8x32xf32> -> vector<8x128xf32>
    %c0_192 = arith.constant 0 : index
    %c0_193 = arith.constant 0 : index
    %551 = vector.load %arg4[%c0_192, %c0_193] : memref<8x128xf32, #tpu.memory_space<vmem>>, vector<8x128xf32>
    tpu.vector_store %arg4[%c0_192, %c0_193], %550 {strides = array<i32>} : memref<8x128xf32, #tpu.memory_space<vmem>>, vector<8x128xf32>,
    return
  }
}

</mosaic_0001>

<bundles_post_ra>
// kernel: transformer_forward.1
= control target key start
LH: loop header
LB: loop body
LE: loop exit
PB: predicated region body
PF: predicated region fallthrough
CT: control target
= control target key end

     0   :  { %10 = vsyncpa [#allocation3], 0  ;;  %s5301_s0 = inlined_call_operand.hbm [shape: f32[16,32], index: 0, kind: input, shape index: {}]   ;;  %s5302_s1 = inlined_call_operand.hbm [shape: f32[2,8,256], index: 1, kind: input, shape index: {}]   ;;  %s5303_s2 = inlined_call_operand.hbm [shape: f32[2,256,256], index: 2, kind: input, shape index: {}]   ;;  %s5304_s3 = inlined_call_operand.hbm [shape: f32[16,32], index: 3, kind: output, shape index: {0}]   ;;  %s5305_s4 = inlined_call_operand.vmem [shape: f32[8,128], index: 4, kind: output, shape index: {1}]  }
   0x1   :  { %11 = vsyncpa [#allocation6], 0 }
   0x2   :  { %12 = vsyncpa [#allocation4], 0  ;;  %s4679_s15 = smov [#allocation5]   ;;  %s4585_s19 = scalar_lea.hbm %s5302_s1, 512 }
   0x3   :  { %s30_s16 = sshll.u32 %s4679_s15, 4  ;;  %p4586_p0 = scmp.ne.s32.totalorder %s5302_s1, %s4585_s19  ;;  %s31_s16 = int_to_ptr.vmem [resolvable:$true] %s30_s16 }
   0x4   :  { %p4589_p1 = scmp.lt.u32.totalorder %s4585_s19, %s5302_s1 }
   0x6   :  { %p4591_p2 = pnand %p4589_p1, %p4586_p0 }
   0x8   :  { %4594 = shalt.err (!%p4591_p2)
}
   0x9   :  { %s4595_s24 = scalar_lea.vmem %s31_s16, 512  ;;  %p4600_p4 = scmp.lt.s32.totalorder %s31_s16, %s31_s16 }
   0xa   :  { %p4596_p3 = scmp.ne.s32.totalorder %s31_s16, %s4595_s24  ;;  %p4601_p5 = scmp.lt.s32.totalorder %s4595_s24, %s4595_s24 }
   0xc   :  { %p4602_p6 = por %p4601_p5, %p4600_p4 }
   0xe   :  { %p4603_p7 = pnand %p4602_p6, %p4596_p3 }
  0x10   :  { %4606 = shalt.err (!%p4603_p7)
}
  0x11   :  { %s4680_s25 = smov 256   ;;  %s4681_s26 = smov 16  }
  0x12   :  { %36 = dma.hbm_to_vmem [thread:$0]  %s5302_s1, 512, %s31_s16, [#allocation6], %s4680_s25, %s4680_s25, %s4681_s26  }
  0x13   :  { %s4682_s29 = smov [#allocation2]   ;;  %s4607_s7 = scalar_lea.hbm %s5301_s0, 256 }
  0x14   :  { %s18_s30 = sshll.u32 %s4682_s29, 4  ;;  %p4608_p8 = scmp.ne.s32.totalorder %s5301_s0, %s4607_s7  ;;  %s19_s30 = int_to_ptr.vmem [resolvable:$true] %s18_s30 }
  0x15   :  { %p4611_p9 = scmp.lt.u32.totalorder %s4607_s7, %s5301_s0 }
  0x17   :  { %p4613_p10 = pnand %p4611_p9, %p4608_p8 }
  0x19   :  { %4616 = shalt.err (!%p4613_p10)
}
  0x1a   :  { %s4617_s12 = scalar_lea.vmem %s19_s30, 256  ;;  %p4622_p12 = scmp.lt.s32.totalorder %s19_s30, %s19_s30 }
  0x1b   :  { %p4618_p11 = scmp.ne.s32.totalorder %s19_s30, %s4617_s12  ;;  %p4623_p13 = scmp.lt.s32.totalorder %s4617_s12, %s4617_s12 }
  0x1d   :  { %p4624_p0 = por %p4623_p13, %p4622_p12 }
  0x1f   :  { %p4625_p1 = pnand %p4624_p0, %p4618_p11 }
  0x21   :  { %4628 = shalt.err (!%p4625_p1)
}
  0x22   :  { %s4683_s1 = smov 128   ;;  %s4684_s13 = smov 8  }
  0x23   :  { %24 = dma.hbm_to_vmem [thread:$0]  %s5301_s0, 256, %s19_s30, [#allocation3], %s4683_s1, %s4683_s1, %s4684_s13  }
  0x24   :  { %s4685_s16 = smov [#allocation7]   ;;  %s4629_s20 = scalar_lea.hbm %s5303_s2, 16384 }
  0x25   :  { %s42_s17 = sshll.u32 %s4685_s16, 4  ;;  %p4630_p2 = scmp.ne.s32.totalorder %s5303_s2, %s4629_s20  ;;  %s43_s17 = int_to_ptr.vmem [resolvable:$true] %s42_s17 }
  0x26   :  { %p4633_p3 = scmp.lt.u32.totalorder %s4629_s20, %s5303_s2 }
  0x28   :  { %p4635_p4 = pnand %p4633_p3, %p4630_p2 }
  0x2a   :  { %4638 = shalt.err (!%p4635_p4)
}
  0x2b   :  { %s4639_s27 = scalar_lea.vmem %s43_s17, 16384  ;;  %p4644_p6 = scmp.lt.s32.totalorder %s43_s17, %s43_s17 }
  0x2c   :  { %p4640_p5 = scmp.ne.s32.totalorder %s43_s17, %s4639_s27  ;;  %p4645_p7 = scmp.lt.s32.totalorder %s4639_s27, %s4639_s27 }
  0x2e   :  { %p4646_p8 = por %p4645_p7, %p4644_p6 }
  0x30   :  { %p4647_p9 = pnand %p4646_p8, %p4640_p5 }
  0x32   :  { %4650 = shalt.err (!%p4647_p9)
}
  0x33   :  { %48 = dma.hbm_to_vmem [thread:$0]  %s5303_s2, 16384, %s43_s17, [#allocation6], %s4680_s25, %s4680_s25, %s4681_s26  }
  0x34   :  { %4673 = dma.done.wait [#allocation3], 256  }
  0x35   :  { %4674 = vsyncadd [#allocation3], 4294967040 }
  0x36   :  { %4675 = dma.done.wait [#allocation6], 16896  }
  0x37   :  { %4676 = vsyncadd [#allocation6], 4294950400  ;;  %vm106_vm0 = vcmask 261120   ;;  %v4766_v0 = vld [vmem:[#allocation2] sm:$0xff]  ;;  %v67_v7 = vld [vmem:[#allocation7 + $0x8] sm:$0xff]  ;;  %v4686_v14 = vmov 0.0  }
  0x38   :  { %v107_v1 = vsel %vm106_vm0, %v4766_v0, 0.0  ;;  %v69_v8 = vld [vmem:[#allocation7 + $0x18] sm:$0xff]  ;;  %v66_v9 = vld [vmem:[#allocation7] sm:$0xff]  ;;  %v68_v11 = vld [vmem:[#allocation7 + $0x10] sm:$0xff]  ;;  %208 = vmatprep.mubr.f32.mxu0 %v4686_v14  ;;  %4076 = vmatprep.subr.mxu1 %v4686_v14  ;;  %vm4687_vm1 = vmmov 0   ;;  %s4688_s2 = smov 64  }
  0x39   :  { %108 = vadd.xlane.f32.xlu0 %v107_v1  ;;  %v4344_v10 = vpack.c.bf16 %v69_v8, %v67_v7  ;;  %v71_v12 = vld [vmem:[#allocation7 + $0x28] sm:$0xff]  ;;  %v73_v13 = vld [vmem:[#allocation7 + $0x38] sm:$0xff]  ;;  %v4346_v15 = vpack.c.bf16 %v68_v11, %v66_v9  ;;  %v70_v17 = vld [vmem:[#allocation7 + $0x20] sm:$0xff]  ;;  %4078 = vmatprep.mubr.msk.f32.mxu1 %vm4687_vm1, %v4686_v14  ;;  %s4689_s25 = smov 112   ;;  %vm224_vm2 = vcmask 130048   ;;  %vm299_vm3 = vcmask 64512  }
  0x3a   :  { %v4348_v16 = vpack.c.bf16 %v73_v13, %v71_v12  ;;  %v72_v18 = vld [vmem:[#allocation7 + $0x30] sm:$0xff]  ;;  %v60_v24 = vld [vmem:[#allocation5 + $0x1] ss:$0 sm:$0xff]  ;;  %v61_v26 = vld [vmem:[#allocation5 + $0x2] ss:$0 sm:$0xff]  ;;  %s4690_s29 = smov 48  }
  0x3b   :  { %4345 = vmatprep.subr.bf16.mxu0 %v4344_v10  ;;  %v4350_v19 = vpack.c.bf16 %v72_v18, %v70_v17  ;;  %v4782_v31 = vld [vmem:[#allocation2 + $0x8] sm:$0xff]  ;;  %s4691_s30 = smov 32   ;;  %s4692_s5 = smov 96   ;;  %vm919_vm4 = vcmask 392192   ;;  %vm1617_vm5 = vcmask 523264   ;;  %vm903_vm8 = vcmask 195584  }
  0x3c   :  { %4347 = vmatpush1.bf16.msra.mxu0 %v4346_v15  ;;  %v110_v32 = vsel %vm106_vm0, %v4782_v31, 0.0  ;;  %s4693_s6 = smov 80   ;;  %s4694_s7 = smov 24   ;;  %vm3871_vm9 = vcmask 785408  }
  0x3d   :  { %4349 = vmatprep.subr.bf16.mxu0 %v4348_v16 }
  0x40   :  { %4351 = vmatpush1.bf16.msra.mxu0 %v4350_v19 }
  0x41   :  { %4091 = vmatprep.subr.mxu0 %v4686_v14 }
  0xc6   :  { %v109_v2 = vpop.xlane.xlu0 %108 }
  0xc7   :  { %v114_v3 = vmul.f32 0.03125, %v109_v2 }
  0xc9   :  { %v116_v4 = vsub.f32 %v4766_v0, %v114_v3 }
  0xcb   :  { %v118_v5 = vmul.f32 %v116_v4, %v116_v4 }
  0xcd   :  { %v120_v6 = vsel %vm106_vm0, %v118_v5, 0.0 }
  0xce   :  { %121 = vadd.xlane.f32.xlu0 %v120_v6 }
 0x15b   :  { %v122_v20 = vpop.xlane.xlu0 %121 }
 0x15c   :  { %v126_v21 = vmul.f32 0.03125, %v122_v20 }
 0x15e   :  { %v128_v22 = vadd.f32 1e-05, %v126_v21 }
 0x160   :  { %4489 = vrsqrt.f32 %v128_v22 }
 0x16a   :  { %v4490_v23 = vpop.eup %4489 }
 0x16b   :  { %v132_v25 = vmul.f32 %v4490_v23, %v116_v4 }
 0x16d   :  { %v134_v27 = vmul.f32 %v132_v25, %v60_v24 }
 0x16f   :  { %v136_v28 = vadd.f32 %v134_v27, %v61_v26 }
 0x171   :  { %3896 = vmatmul.mubr.msk.f32.vlgmr.msra.gmra.mrb[0].mxu0 %vm106_vm0, %v136_v28 }
 0x172   :  { %214 = vmatprep.mubr.f32.mxu0 %v4686_v14 }
 0x244   :  { %v210_v29 = vpop.f32.mrb[0].mxu0 }
 0x245   :  { %222 = vrot.lane.b32.xlu1 %v210_v29, %s4688_s2  ;;  %v4780_v30 = vpop.f32.mrb[1].mxu0 }
 0x269   :  { %111 = vadd.xlane.f32.xlu1 %v110_v32 }
 0x27a   :  { %387 = vrot.lane.b32.xlu1 %v210_v29, %s4689_s25 }
 0x2b7   :  { %v223_v33 = vpop.permute.xlu1 %222 }
 0x2b8   :  { %4077 = vmatpush3.xpose.msk.msra.mxu1 %vm224_vm2, %v223_v33 }
 0x2b9   :  { %4081 = vmatprep.subr.mxu1 %v4686_v14 }
 0x2bb   :  { %4079 = vmatmul.mubr.msk.f32.vlgmr.msra.gmra.mrb[0].mxu1 %vm224_vm2, %v210_v29 }
 0x2bc   :  { %4082 = vmatpush3.msra.mxu1 %v4780_v30  ;;  %4083 = vmatprep.mubr.msk.f32.mxu1 %vm4687_vm1, %v4686_v14 }
 0x2bd   :  { %4086 = vmatprep.subr.mxu1 %v4686_v14 }
 0x2f6   :  { %v112_v34 = vpop.xlane.xlu1 %111 }
 0x2f7   :  { %v115_v35 = vmul.f32 0.03125, %v112_v34 }
 0x2f9   :  { %v117_v36 = vsub.f32 %v4782_v31, %v115_v35 }
 0x2fa   :  { %v388_v2 = vpop.permute.xlu1 %387 }
 0x2fb   :  { %v119_v37 = vmul.f32 %v117_v36, %v117_v36 }
 0x2fd   :  { %v123_v38 = vsel %vm106_vm0, %v119_v37, 0.0 }
 0x2fe   :  { %124 = vadd.xlane.f32.xlu0 %v123_v38 }
 0x38b   :  { %v125_v39 = vpop.xlane.xlu0 %124 }
 0x38c   :  { %v127_v40 = vmul.f32 0.03125, %v125_v39 }
 0x38e   :  { %v129_v41 = vadd.f32 1e-05, %v127_v40  ;;  %v295_v42 = vpop.f32.mrb[0].mxu1 }
 0x38f   :  { %v4080_v43 = vpop.f32.mrb[1].mxu1  ;;  %v300_v44 = vsel %vm299_vm3, %v295_v42, -inf }
 0x390   :  { %4491 = vrsqrt.f32 %v129_v41  ;;  %301 = vmax.xlane.f32.xlu0 %v300_v44 }
 0x39a   :  { %v4492_v45 = vpop.eup %4491 }
 0x39b   :  { %v133_v46 = vmul.f32 %v4492_v45, %v117_v36 }
 0x39d   :  { %v135_v47 = vmul.f32 %v133_v46, %v60_v24 }
 0x39f   :  { %v137_v48 = vadd.f32 %v135_v47, %v61_v26 }
 0x3a1   :  { %3897 = vmatmul.mubr.msk.f32.gmra.mrb[2].mxu0 %vm106_vm0, %v137_v48 }
 0x3a2   :  { %4093 = vmatprep.mubr.msk.f32.mxu0 %vm4687_vm1, %v4686_v14 }
 0x41d   :  { %v302_v49 = vpop.xlane.xlu0 %301 }
 0x41e   :  { %v303_v50 = vsub.f32 %v295_v42, %v302_v49 }
 0x420   :  { %v304_v51 = vmul.f32 1.442695, %v303_v50 }
 0x422   :  { %4493 = vpow2.f32 %v304_v51 }
 0x42c   :  { %v4494_v52 = vpop.eup %4493 }
 0x42d   :  { %v306_v53 = vsel %vm299_vm3, %v4494_v52, 0.0 }
 0x42e   :  { %307 = vadd.xlane.f32.xlu0 %v306_v53 }
 0x444   :  { %389 = vrot.lane.b32.xlu0 %v210_v29, %s4690_s29 }
 0x448   :  { %558 = vrot.lane.b32.xlu0 %v210_v29, %s4691_s30 }
 0x44c   :  { %556 = vrot.lane.b32.xlu0 %v210_v29, %s4692_s5 }
 0x450   :  { %726 = vrot.lane.b32.xlu0 %v210_v29, %s4681_s26 }
 0x454   :  { %724 = vrot.lane.b32.xlu0 %v210_v29, %s4693_s6 }
 0x474   :  { %v216_v54 = vpop.f32.mrb[2].mxu0 }
 0x475   :  { %1087 = vrot.lane.b32.xlu0 %v216_v54, %s4690_s29  ;;  %922 = vrot.lane.b32.xlu1 %v216_v54, %s4688_s2  ;;  %v4808_v55 = vpop.f32.mrb[3].mxu0 }
 0x479   :  { %1256 = vrot.lane.b32.xlu0 %v216_v54, %s4691_s30  ;;  %1085 = vrot.lane.b32.xlu1 %v216_v54, %s4689_s25 }
 0x47d   :  { %1424 = vrot.lane.b32.xlu0 %v216_v54, %s4681_s26  ;;  %1254 = vrot.lane.b32.xlu1 %v216_v54, %s4692_s5 }
 0x481   :  { %1422 = vrot.lane.b32.xlu1 %v216_v54, %s4693_s6 }
 0x4bb   :  { %v308_v56 = vpop.xlane.xlu0 %307 }
 0x4bc   :  { %4495 = vrcp.f32 %v308_v56 }
 0x4bf   :  { %v390_v57 = vpop.permute.xlu0 %389 }
 0x4c3   :  { %v559_v60 = vpop.permute.xlu0 %558 }
 0x4c6   :  { %v4496_v58 = vpop.eup %4495 }
 0x4c7   :  { %v310_v59 = vmul.f32 %v4496_v58, %v308_v56  ;;  %v557_v1 = vpop.permute.xlu0 %556 }
 0x4c9   :  { %v311_v61 = vsub.f32 2.0, %v310_v59 }
 0x4cb   :  { %v312_v62 = vmul.f32 %v4496_v58, %v311_v61  ;;  %v727_v3 = vpop.permute.xlu0 %726 }
 0x4cd   :  { %v4815_v63 = vmul.f32 %v4494_v52, %v312_v62 }
 0x4cf   :  { %4084 = vmatmul.mubr.msk.f32.vlgmr.msra.gmra.mrb[2].mxu1 %vm299_vm3, %v4815_v63  ;;  %v725_v4 = vpop.permute.xlu0 %724 }
 0x4d0   :  { %4087 = vmatpush3.xpose.msk.msra.mxu1 %vm224_vm2, %v390_v57  ;;  %4088 = vmatprep.mubr.msk.f32.mxu1 %vm4687_vm1, %v4686_v14 }
 0x4d1   :  { %4096 = vmatprep.subr.mxu1 %v4686_v14 }
 0x4d3   :  { %4089 = vmatmul.mubr.msk.f32.vlgmr.msra.gmra.mrb[4].mxu1 %vm224_vm2, %v388_v2 }
 0x4d4   :  { %4097 = vmatpush3.xpose.msk.msra.mxu1 %vm224_vm2, %v559_v60  ;;  %4098 = vmatprep.mubr.msk.f32.mxu1 %vm4687_vm1, %v4686_v14 }
 0x4d5   :  { %4106 = vmatprep.subr.mxu1 %v4686_v14 }
 0x4d7   :  { %4099 = vmatmul.mubr.msk.f32.vlgmr.msra.gmra.mrb[6].mxu1 %vm224_vm2, %v557_v1 }
 0x4d8   :  { %4107 = vmatpush3.xpose.msk.msra.mxu1 %vm224_vm2, %v727_v3  ;;  %4108 = vmatprep.mubr.msk.f32.mxu1 %vm4687_vm1, %v4686_v14 }
 0x4d9   :  { %4116 = vmatprep.subr.mxu1 %v4686_v14 }
 0x4db   :  { %4109 = vmatmul.mubr.msk.f32.vlgmr.msra.gmra.mrb[8].mxu1 %vm224_vm2, %v725_v4 }
 0x4dc   :  { %4118 = vmatprep.mubr.msk.f32.mxu1 %vm4687_vm1, %v4686_v14 }
 0x4e7   :  { %v1088_v5 = vpop.permute.xlu0 %1087  ;;  %v923_v6 = vpop.permute.xlu1 %922 }
 0x4e8   :  { %4117 = vmatpush3.xpose.msk.msra.mxu1 %vm224_vm2, %v923_v6 }
 0x4e9   :  { %4126 = vmatprep.subr.mxu1 %v4686_v14 }
 0x4eb   :  { %4119 = vmatmul.mubr.msk.f32.vlgmr.msra.gmra.mrb[10].mxu1 %vm224_vm2, %v216_v54  ;;  %v1086_v7 = vpop.permute.xlu1 %1085  ;;  %v1257_v8 = vpop.permute.xlu0 %1256 }
 0x4ec   :  { %4127 = vmatpush3.xpose.msk.msra.mxu1 %vm224_vm2, %v1088_v5  ;;  %4128 = vmatprep.mubr.msk.f32.mxu1 %vm4687_vm1, %v4686_v14 }
 0x4ed   :  { %4136 = vmatprep.subr.mxu1 %v4686_v14 }
 0x4ef   :  { %4129 = vmatmul.mubr.msk.f32.vlgmr.msra.gmra.mrb[12].mxu1 %vm224_vm2, %v1086_v7  ;;  %v1255_v9 = vpop.permute.xlu1 %1254  ;;  %v1425_v10 = vpop.permute.xlu0 %1424 }
 0x4f0   :  { %4137 = vmatpush3.xpose.msk.msra.mxu1 %vm224_vm2, %v1257_v8  ;;  %4138 = vmatprep.mubr.msk.f32.mxu1 %vm4687_vm1, %v4686_v14 }
 0x4f1   :  { %4146 = vmatprep.subr.mxu1 %v4686_v14 }
 0x4f3   :  { %4139 = vmatmul.mubr.msk.f32.vlgmr.msra.gmra.mrb[14].mxu1 %vm224_vm2, %v1255_v9  ;;  %v1423_v11 = vpop.permute.xlu1 %1422 }
 0x4f4   :  { %4147 = vmatpush3.xpose.msk.msra.mxu1 %vm224_vm2, %v1425_v10  ;;  %4148 = vmatprep.mubr.msk.f32.mxu1 %vm4687_vm1, %v4686_v14 }
 0x4f7   :  { %4149 = vmatmul.mubr.msk.f32.vlgmr.msra.gmra.mrb[16].mxu1 %vm224_vm2, %v1423_v11 }
 0x5a2   :  { %v4853_v12 = vpop.f32.mrb[2].mxu1 }
 0x5a3   :  { %v4085_v13 = vpop.f32.mrb[3].mxu1 }
 0x5a6   :  { %v461_v15 = vpop.f32.mrb[4].mxu1 }
 0x5a7   :  { %v4090_v16 = vpop.f32.mrb[5].mxu1  ;;  %v465_v17 = vsel %vm299_vm3, %v461_v15, -inf }
 0x5a8   :  { %466 = vmax.xlane.f32.xlu0 %v465_v17 }
 0x5aa   :  { %v630_v18 = vpop.f32.mrb[6].mxu1 }
 0x5ab   :  { %v4100_v19 = vpop.f32.mrb[7].mxu1  ;;  %v634_v20 = vsel %vm299_vm3, %v630_v18, -inf }
 0x5ac   :  { %635 = vmax.xlane.f32.xlu1 %v634_v20 }
 0x5ae   :  { %v798_v21 = vpop.f32.mrb[8].mxu1 }
 0x5af   :  { %v4110_v22 = vpop.f32.mrb[9].mxu1  ;;  %v802_v23 = vsel %vm299_vm3, %v798_v21, -inf }
 0x5b0   :  { %803 = vmax.xlane.f32.xlu0 %v802_v23 }
 0x5be   :  { %v994_v24 = vpop.f32.mrb[10].mxu1 }
 0x5bf   :  { %v4120_v25 = vpop.f32.mrb[11].mxu1  ;;  %v998_v26 = vsel %vm299_vm3, %v994_v24, -inf }
 0x5c0   :  { %999 = vmax.xlane.f32.xlu0 %v998_v26 }
 0x5c2   :  { %v1159_v27 = vpop.f32.mrb[12].mxu1 }
 0x5c3   :  { %v4130_v28 = vpop.f32.mrb[13].mxu1  ;;  %v1163_v29 = vsel %vm299_vm3, %v1159_v27, -inf }
 0x5c4   :  { %1164 = vmax.xlane.f32.xlu0 %v1163_v29 }
 0x5c6   :  { %v1328_v32 = vpop.f32.mrb[14].mxu1 }
 0x5c7   :  { %v4140_v33 = vpop.f32.mrb[15].mxu1  ;;  %v1332_v34 = vsel %vm299_vm3, %v1328_v32, -inf }
 0x5c8   :  { %1333 = vmax.xlane.f32.xlu1 %v1332_v34 }
 0x5ca   :  { %v1496_v35 = vpop.f32.mrb[16].mxu1 }
 0x5cb   :  { %v4150_v36 = vpop.f32.mrb[17].mxu1  ;;  %v1500_v37 = vsel %vm299_vm3, %v1496_v35, -inf }
 0x5cc   :  { %1501 = vmax.xlane.f32.xlu0 %v1500_v37 }
 0x635   :  { %v467_v38 = vpop.xlane.xlu0 %466 }
 0x636   :  { %v468_v39 = vsub.f32 %v461_v15, %v467_v38 }
 0x638   :  { %v469_v40 = vmul.f32 1.442695, %v468_v39 }
 0x639   :  { %v636_v41 = vpop.xlane.xlu1 %635 }
 0x63a   :  { %4497 = vpow2.f32 %v469_v40  ;;  %v637_v42 = vsub.f32 %v630_v18, %v636_v41 }
 0x63c   :  { %v638_v43 = vmul.f32 1.442695, %v637_v42 }
 0x63d   :  { %v804_v44 = vpop.xlane.xlu0 %803 }
 0x63e   :  { %4499 = vpow2.f32 %v638_v43  ;;  %v805_v45 = vsub.f32 %v798_v21, %v804_v44 }
 0x640   :  { %v806_v46 = vmul.f32 1.442695, %v805_v45 }
 0x642   :  { %4501 = vpow2.f32 %v806_v46 }
 0x644   :  { %v4862_v47 = vpop.eup %4497 }
 0x645   :  { %v471_v48 = vsel %vm299_vm3, %v4862_v47, 0.0 }
 0x646   :  { %472 = vadd.xlane.f32.xlu1 %v471_v48 }
 0x648   :  { %v4866_v49 = vpop.eup %4499 }
 0x649   :  { %v640_v50 = vsel %vm299_vm3, %v4866_v49, 0.0 }
 0x64a   :  { %641 = vadd.xlane.f32.xlu0 %v640_v50 }
 0x64c   :  { %v4870_v51 = vpop.eup %4501 }
 0x64d   :  { %v1000_v52 = vpop.xlane.xlu0 %999  ;;  %v808_v53 = vsel %vm299_vm3, %v4870_v51, 0.0 }
 0x64e   :  { %v1001_v54 = vsub.f32 %v994_v24, %v1000_v52  ;;  %809 = vadd.xlane.f32.xlu1 %v808_v53 }
 0x650   :  { %v1002_v56 = vmul.f32 1.442695, %v1001_v54 }
 0x651   :  { %v1165_v57 = vpop.xlane.xlu0 %1164 }
 0x652   :  { %4503 = vpow2.f32 %v1002_v56  ;;  %v1166_v58 = vsub.f32 %v1159_v27, %v1165_v57 }
 0x654   :  { %v1167_v59 = vmul.f32 1.442695, %v1166_v58 }
 0x655   :  { %v1334_v60 = vpop.xlane.xlu1 %1333 }
 0x656   :  { %4505 = vpow2.f32 %v1167_v59  ;;  %v1335_v61 = vsub.f32 %v1328_v32, %v1334_v60 }
 0x658   :  { %v1336_v62 = vmul.f32 1.442695, %v1335_v61 }
 0x659   :  { %v1502_v7 = vpop.xlane.xlu0 %1501 }
 0x65a   :  { %4507 = vpow2.f32 %v1336_v62  ;;  %v1503_v8 = vsub.f32 %v1496_v35, %v1502_v7  ;;  %v75_v7 = vld [vmem:[#allocation7 + $0x50] sm:$0xff] }
 0x65c   :  { %v4874_v1 = vpop.eup %4503  ;;  %v1504_v9 = vmul.f32 1.442695, %v1503_v8  ;;  %v76_v8 = vld [vmem:[#allocation7 + $0x60] sm:$0xff] }
 0x65d   :  { %v1004_v2 = vsel %vm299_vm3, %v4874_v1, 0.0 }
 0x65e   :  { %1005 = vadd.xlane.f32.xlu0 %v1004_v2  ;;  %4509 = vpow2.f32 %v1504_v9 }
 0x660   :  { %v4878_v3 = vpop.eup %4505 }
 0x661   :  { %v1169_v4 = vsel %vm299_vm3, %v4878_v3, 0.0 }
 0x662   :  { %1170 = vadd.xlane.f32.xlu1 %v1169_v4 }
 0x664   :  { %v4882_v5 = vpop.eup %4507 }
 0x665   :  { %v1338_v6 = vsel %vm299_vm3, %v4882_v5, 0.0 }
 0x666   :  { %1339 = vadd.xlane.f32.xlu0 %v1338_v6  ;;  %v74_v6 = vld [vmem:[#allocation7 + $0x40] sm:$0xff] }
 0x668   :  { %v4896_v10 = vpop.eup %4509 }
 0x669   :  { %v1506_v11 = vsel %vm299_vm3, %v4896_v10, 0.0 }
 0x673   :  { %648 = vrot.lane.b32.xlu1 %v4780_v30, %s4692_s5 }
 0x677   :  { %816 = vrot.lane.b32.xlu1 %v4780_v30, %s4693_s6 }
 0x67b   :  { %1178 = vrot.lane.b32.xlu1 %v4808_v55, %s4689_s25 }
 0x67c   :  { %480 = vrot.lane.b32.xlu0 %v4780_v30, %s4689_s25 }
 0x680   :  { %1346 = vrot.lane.b32.xlu0 %v4808_v55, %s4692_s5 }
 0x69f   :  { %1507 = vadd.xlane.f32.xlu1 %v1506_v11  ;;  %v77_v11 = vld [vmem:[#allocation7 + $0x70] sm:$0xff] }
 0x6b0   :  { %1514 = vrot.lane.b32.xlu1 %v4808_v55, %s4693_s6 }
 0x6d3   :  { %v473_v13 = vpop.xlane.xlu1 %472 }
 0x6d4   :  { %4511 = vrcp.f32 %v473_v13 }
 0x6d7   :  { %v642_v15 = vpop.xlane.xlu0 %641 }
 0x6d8   :  { %4513 = vrcp.f32 %v642_v15 }
 0x6db   :  { %v810_v30 = vpop.xlane.xlu1 %809 }
 0x6dc   :  { %4515 = vrcp.f32 %v810_v30 }
 0x6de   :  { %v4512_v16 = vpop.eup %4511 }
 0x6df   :  { %v475_v17 = vmul.f32 %v4512_v16, %v473_v13  ;;  %v4356_v13 = vpack.c.bf16 %v77_v11, %v76_v8  ;;  %v86_v8 = vld [vmem:[#allocation7 + $0xe0] sm:$0xff] }
 0x6e1   :  { %v476_v20 = vsub.f32 2.0, %v475_v17 }
 0x6e2   :  { %v4514_v19 = vpop.eup %4513 }
 0x6e3   :  { %v644_v21 = vmul.f32 %v4514_v19, %v642_v15  ;;  %v477_v24 = vmul.f32 %v4512_v16, %v476_v20  ;;  %v78_v15 = vld [vmem:[#allocation7 + $0x80] sm:$0xff]  ;;  %v81_v20 = vld [vmem:[#allocation7 + $0xb0] sm:$0xff] }
 0x6e5   :  { %v645_v25 = vsub.f32 2.0, %v644_v21  ;;  %v4903_v29 = vmul.f32 %v4862_v47, %v477_v24 }
 0x6e6   :  { %v4516_v23 = vpop.eup %4515 }
 0x6e7   :  { %v812_v26 = vmul.f32 %v4516_v23, %v810_v30  ;;  %v646_v32 = vmul.f32 %v4514_v19, %v645_v25  ;;  %v79_v30 = vld [vmem:[#allocation7 + $0x90] sm:$0xff]  ;;  %v80_v19 = vld [vmem:[#allocation7 + $0xa0] sm:$0xff] }
 0x6e9   :  { %v813_v33 = vsub.f32 2.0, %v812_v26  ;;  %v4911_v38 = vmul.f32 %v4866_v49, %v646_v32 }
 0x6eb   :  { %v1006_v18 = vpop.xlane.xlu0 %1005  ;;  %v814_v39 = vmul.f32 %v4516_v23, %v813_v33  ;;  %v4364_v23 = vpack.c.bf16 %v81_v20, %v80_v19  ;;  %v62_v20 = vld [vmem:[#allocation5 + $0x3] ss:$0 sm:$0xff] }
 0x6ec   :  { %4517 = vrcp.f32 %v1006_v18 }
 0x6ed   :  { %v4919_v44 = vmul.f32 %v4870_v51, %v814_v39 }
 0x6ef   :  { %v1171_v22 = vpop.xlane.xlu1 %1170 }
 0x6f0   :  { %4519 = vrcp.f32 %v1171_v22 }
 0x6f3   :  { %v1340_v27 = vpop.xlane.xlu0 %1339  ;;  %v649_v35 = vpop.permute.xlu1 %648 }
 0x6f4   :  { %4521 = vrcp.f32 %v1340_v27 }
 0x6f6   :  { %v4518_v28 = vpop.eup %4517 }
 0x6f7   :  { %v1008_v34 = vmul.f32 %v4518_v28, %v1006_v18  ;;  %v481_v36 = vpop.permute.xlu0 %480  ;;  %v817_v42 = vpop.permute.xlu1 %816  ;;  %v4360_v18 = vpack.c.bf16 %v79_v30, %v78_v15 }
 0x6f8   :  { %4092 = vmatpush3.msra.mxu0 %v481_v36 }
 0x6f9   :  { %4094 = vmatmul.mubr.msk.f32.vlgmr.msra.gmra.mrb[4].mxu0 %vm299_vm3, %v4903_v29  ;;  %4101 = vmatprep.subr.mxu0 %v4686_v14  ;;  %v1009_v40 = vsub.f32 2.0, %v1008_v34 }
 0x6fa   :  { %v4520_v37 = vpop.eup %4519  ;;  %4102 = vmatpush3.msra.mxu0 %v649_v35  ;;  %4103 = vmatprep.mubr.msk.f32.mxu0 %vm4687_vm1, %v4686_v14 }
 0x6fb   :  { %v1173_v41 = vmul.f32 %v4520_v37, %v1171_v22  ;;  %4111 = vmatprep.subr.mxu0 %v4686_v14  ;;  %v1010_v45 = vmul.f32 %v4518_v28, %v1009_v40  ;;  %v1179_v51 = vpop.permute.xlu1 %1178  ;;  %v1347_v53 = vpop.permute.xlu0 %1346 }
 0x6fd   :  { %4104 = vmatmul.mubr.msk.f32.vlgmr.msra.gmra.mrb[6].mxu0 %vm299_vm3, %v4911_v38  ;;  %v1174_v46 = vsub.f32 2.0, %v1173_v41  ;;  %v4928_v48 = vmul.f32 %v4874_v1, %v1010_v45 }
 0x6fe   :  { %v4522_v43 = vpop.eup %4521  ;;  %4112 = vmatpush3.msra.mxu0 %v817_v42  ;;  %4113 = vmatprep.mubr.msk.f32.mxu0 %vm4687_vm1, %v4686_v14 }
 0x6ff   :  { %v1342_v47 = vmul.f32 %v4522_v43, %v1340_v27  ;;  %4121 = vmatprep.subr.mxu0 %v4686_v14  ;;  %v1175_v49 = vmul.f32 %v4520_v37, %v1174_v46 }
 0x701   :  { %4114 = vmatmul.mubr.msk.f32.vlgmr.msra.gmra.mrb[8].mxu0 %vm299_vm3, %v4919_v44  ;;  %v1343_v50 = vsub.f32 2.0, %v1342_v47 }
 0x702   :  { %4122 = vmatpush3.msra.mxu0 %v4808_v55  ;;  %4123 = vmatprep.mubr.msk.f32.mxu0 %vm4687_vm1, %v4686_v14  ;;  %v4936_v55 = vmul.f32 %v4878_v3, %v1175_v49 }
 0x703   :  { %4131 = vmatprep.subr.mxu0 %v4686_v14  ;;  %v1344_v52 = vmul.f32 %v4522_v43, %v1343_v50 }
 0x705   :  { %4124 = vmatmul.mubr.msk.f32.vlgmr.msra.gmra.mrb[10].mxu0 %vm299_vm3, %v4928_v48  ;;  %v4944_v54 = vmul.f32 %v4882_v5, %v1344_v52 }
 0x706   :  { %4132 = vmatpush3.msra.mxu0 %v1179_v51  ;;  %4133 = vmatprep.mubr.msk.f32.mxu0 %vm4687_vm1, %v4686_v14 }
 0x707   :  { %4141 = vmatprep.subr.mxu0 %v4686_v14 }
 0x709   :  { %4134 = vmatmul.mubr.msk.f32.vlgmr.msra.gmra.mrb[12].mxu0 %vm299_vm3, %v4936_v55 }
 0x70a   :  { %4142 = vmatpush3.msra.mxu0 %v1347_v53  ;;  %4143 = vmatprep.mubr.msk.f32.mxu0 %vm4687_vm1, %v4686_v14 }
 0x70b   :  { %4151 = vmatprep.subr.mxu0 %v4686_v14 }
 0x70d   :  { %4144 = vmatmul.mubr.msk.f32.vlgmr.msra.gmra.mrb[14].mxu0 %vm299_vm3, %v4944_v54 }
 0x70e   :  { %4153 = vmatprep.mubr.msk.f32.mxu0 %vm4687_vm1, %v4686_v14 }
 0x72c   :  { %v1508_v56 = vpop.xlane.xlu1 %1507 }
 0x72d   :  { %4523 = vrcp.f32 %v1508_v56 }
 0x730   :  { %v1515_v57 = vpop.permute.xlu1 %1514 }
 0x731   :  { %4152 = vmatpush3.msra.mxu0 %v1515_v57 }
 0x737   :  { %v4524_v58 = vpop.eup %4523 }
 0x738   :  { %v1510_v59 = vmul.f32 %v4524_v58, %v1508_v56 }
 0x73a   :  { %v1511_v60 = vsub.f32 2.0, %v1510_v59 }
 0x73c   :  { %v1512_v61 = vmul.f32 %v4524_v58, %v1511_v60 }
 0x73e   :  { %v4952_v62 = vmul.f32 %v4896_v10, %v1512_v61  ;;  %v4352_v10 = vpack.c.bf16 %v75_v7, %v74_v6  ;;  %v83_v61 = vld [vmem:[#allocation7 + $0xc8] sm:$0xff]  ;;  %v89_v7 = vld [vmem:[#allocation7 + $0xf8] sm:$0xff] }
 0x73f   :  { %v87_v6 = vld [vmem:[#allocation7 + $0xe8] sm:$0xff] }
 0x740   :  { %4154 = vmatmul.mubr.msk.f32.vlgmr.msra.gmra.mrb[16].mxu0 %vm299_vm3, %v4952_v62  ;;  %4353 = vmatprep.subr.bf16.mxu1 %v4352_v10 }
 0x741   :  { %1812 = vmatprep.mubr.f32.mxu0 %v4686_v14  ;;  %4355 = vmatpush3.bf16.msra.mxu1 %v4352_v10  ;;  %v88_v10 = vld [vmem:[#allocation7 + $0xf0] sm:$0xff] }
 0x742   :  { %4357 = vmatprep.subr.bf16.mxu1 %v4356_v13  ;;  %v4374_v11 = vpack.c.bf16 %v88_v10, %v86_v8 }
 0x745   :  { %4359 = vmatpush3.bf16.msra.mxu1 %v4356_v13 }
 0x746   :  { %4361 = vmatprep.subr.bf16.mxu1 %v4360_v18 }
 0x749   :  { %4363 = vmatpush3.bf16.msra.mxu1 %v4360_v18 }
 0x74a   :  { %4365 = vmatprep.subr.bf16.mxu1 %v4364_v23 }
 0x74d   :  { %4367 = vmatpush3.bf16.msra.mxu1 %v4364_v23 }
 0x74e   :  { %4210 = vmatprep.subr.mxu1 %v4686_v14 }
 0x7cc   :  { %v552_v1 = vpop.f32.mrb[4].mxu0 }
 0x7cd   :  { %906 = vrot.lane.b32.xlu0 %v552_v1, %s4681_s26  ;;  %v4095_v2 = vpop.f32.mrb[5].mxu0  ;;  %v85_v1 = vld [vmem:[#allocation7 + $0xd8] sm:$0xff] }
 0x7ce   :  { %v4368_v2 = vpack.c.bf16 %v85_v1, %v83_v61 }
 0x7d0   :  { %v720_v3 = vpop.f32.mrb[6].mxu0  ;;  %4369 = vmatprep.subr.bf16.mxu0 %v4368_v2  ;;  %v64_v2 = vld [vmem:[#allocation5] ss:$8 sm:$0x3] }
 0x7d1   :  { %910 = vrot.lane.b32.xlu1 %v720_v3, %s4691_s30  ;;  %v4105_v4 = vpop.f32.mrb[7].mxu0  ;;  %v82_v3 = vld [vmem:[#allocation7 + $0xc0] sm:$0xff] }
 0x7d2   :  { %v84_v4 = vld [vmem:[#allocation7 + $0xd0] sm:$0xff] }
 0x7d4   :  { %v888_v5 = vpop.f32.mrb[8].mxu0 }
 0x7d5   :  { %914 = vrot.lane.b32.xlu1 %v888_v5, %s4690_s29  ;;  %v4115_v9 = vpop.f32.mrb[9].mxu0  ;;  %v4370_v5 = vpack.c.bf16 %v84_v4, %v82_v3 }
 0x7d6   :  { %v4372_v9 = vpack.c.bf16 %v89_v7, %v87_v6 }
 0x7d7   :  { %4371 = vmatpush1.bf16.msra.mxu0 %v4370_v5 }
 0x7d8   :  { %v1081_v16 = vpop.f32.mrb[10].mxu0  ;;  %4373 = vmatprep.subr.bf16.mxu0 %v4372_v9 }
 0x7d9   :  { %v4125_v17 = vpop.f32.mrb[11].mxu0 }
 0x7db   :  { %4375 = vmatpush1.bf16.msra.mxu0 %v4374_v11 }
 0x7dc   :  { %v1250_v21 = vpop.f32.mrb[12].mxu0 }
 0x7dd   :  { %1603 = vrot.lane.b32.xlu0 %v1250_v21, %s4681_s26  ;;  %v4135_v22 = vpop.f32.mrb[13].mxu0 }
 0x7de   :  { %v63_v22 = vld [vmem:[#allocation5 + $0x4] ss:$0 sm:$0xff] }
 0x7e0   :  { %v1418_v24 = vpop.f32.mrb[14].mxu0 }
 0x7e1   :  { %1607 = vrot.lane.b32.xlu0 %v1418_v24, %s4691_s30  ;;  %v4145_v25 = vpop.f32.mrb[15].mxu0 }
 0x813   :  { %v1586_v26 = vpop.f32.mrb[16].mxu0 }
 0x814   :  { %1611 = vrot.lane.b32.xlu1 %v1586_v26, %s4690_s29  ;;  %v4155_v27 = vpop.f32.mrb[17].mxu0 }
 0x83f   :  { %v907_v28 = vpop.permute.xlu0 %906 }
 0x840   :  { %v917_v33 = vsel %vm224_vm2, %v4853_v12, %v907_v28 }
 0x843   :  { %v911_v32 = vpop.permute.xlu1 %910 }
 0x844   :  { %v918_v34 = vsel %vm106_vm0, %v917_v33, %v911_v32  ;;  %v90_v32 = vld [vmem:[#allocation7 + $0x100] sm:$0xff]  ;;  %v91_v33 = vld [vmem:[#allocation7 + $0x110] sm:$0xff] }
 0x847   :  { %v915_v35 = vpop.permute.xlu1 %914 }
 0x848   :  { %v920_v36 = vsel %vm919_vm4, %v918_v34, %v915_v35  ;;  %v4376_v34 = vpack.c.bf16 %v91_v33, %v90_v32  ;;  %v92_v35 = vld [vmem:[#allocation7 + $0x120] sm:$0xff] }
 0x849   :  { %4172 = vmatprep.mubr.msk.f32.mxu1 %vm1617_vm5, %v920_v36  ;;  %v93_v36 = vld [vmem:[#allocation7 + $0x130] sm:$0xff] }
 0x84a   :  { %4377 = vmatprep.subr.bf16.mxu0 %v4376_v34 }
 0x84f   :  { %v1604_v37 = vpop.permute.xlu0 %1603 }
 0x850   :  { %v1614_v40 = vsel %vm224_vm2, %v1081_v16, %v1604_v37  ;;  %v4380_v37 = vpack.c.bf16 %v93_v36, %v92_v35 }
 0x853   :  { %v1608_v39 = vpop.permute.xlu0 %1607 }
 0x854   :  { %v1615_v41 = vsel %vm106_vm0, %v1614_v40, %v1608_v39  ;;  %v94_v39 = vld [vmem:[#allocation7 + $0x140] sm:$0xff]  ;;  %v95_v40 = vld [vmem:[#allocation7 + $0x150] sm:$0xff] }
 0x886   :  { %v1612_v42 = vpop.permute.xlu1 %1611 }
 0x887   :  { %v1616_v43 = vsel %vm919_vm4, %v1615_v41, %v1612_v42  ;;  %v4384_v41 = vpack.c.bf16 %v95_v40, %v94_v39  ;;  %v96_v42 = vld [vmem:[#allocation7 + $0x160] sm:$0xff] }
 0x888   :  { %4173 = vmatmul.mubr.msk.f32.vlgmr.msra.gmra.mrb[18].mxu1 %vm1617_vm5, %v1616_v43  ;;  %v97_v43 = vld [vmem:[#allocation7 + $0x170] sm:$0xff] }
 0x889   :  { %4212 = vmatprep.mubr.msk.f32.mxu1 %vm4687_vm1, %v4686_v14 }
 0x95b   :  { %v4174_v12 = vpop.f32.mrb[18].mxu1 }
 0x95c   :  { %v4976_v45 = vadd.f32 %v4174_v12, %v4782_v31  ;;  %v1690_v46 = vpop.f32.mrb[19].mxu1  ;;  %v4388_v12 = vpack.c.bf16 %v97_v43, %v96_v42 }
 0x95d   :  { %v4979_v47 = vadd.f32 %v1690_v46, %v4766_v0  ;;  %v98_v46 = vld [vmem:[#allocation7 + $0x180] sm:$0xff] }
 0x95e   :  { %v1704_v49 = vsel %vm106_vm0, %v4976_v45, 0.0 }
 0x95f   :  { %1705 = vadd.xlane.f32.xlu1 %v1704_v49  ;;  %v1701_v50 = vsel %vm106_vm0, %v4979_v47, 0.0  ;;  %v99_v49 = vld [vmem:[#allocation7 + $0x190] sm:$0xff] }
 0x960   :  { %1702 = vadd.xlane.f32.xlu0 %v1701_v50  ;;  %v4392_v50 = vpack.c.bf16 %v99_v49, %v98_v46 }
 0x9ec   :  { %v1706_v51 = vpop.xlane.xlu1 %1705 }
 0x9ed   :  { %v1708_v52 = vmul.f32 0.03125, %v1706_v51  ;;  %v1703_v53 = vpop.xlane.xlu0 %1702  ;;  %v100_v51 = vld [vmem:[#allocation7 + $0x1a0] sm:$0xff] }
 0x9ee   :  { %v1707_v56 = vmul.f32 0.03125, %v1703_v53 }
 0x9ef   :  { %v1710_v57 = vsub.f32 %v4976_v45, %v1708_v52  ;;  %v101_v52 = vld [vmem:[#allocation7 + $0x1b0] sm:$0xff] }
 0x9f0   :  { %v1709_v31 = vsub.f32 %v4979_v47, %v1707_v56  ;;  %v4396_v53 = vpack.c.bf16 %v101_v52, %v100_v51  ;;  %v102_v56 = vld [vmem:[#allocation7 + $0x1c0] sm:$0xff] }
 0x9f1   :  { %v1712_v59 = vmul.f32 %v1710_v57, %v1710_v57 }
 0x9f2   :  { %v1711_v58 = vmul.f32 %v1709_v31, %v1709_v31 }
 0x9f3   :  { %v1716_v60 = vsel %vm106_vm0, %v1712_v59, 0.0 }
 0x9f4   :  { %v1713_v0 = vsel %vm106_vm0, %v1711_v58, 0.0  ;;  %v104_v58 = vld [vmem:[#allocation7 + $0x1e0] sm:$0xff] }
 0x9f5   :  { %1714 = vadd.xlane.f32.xlu0 %v1713_v0  ;;  %v105_v0 = vld [vmem:[#allocation7 + $0x1f0] sm:$0xff] }
 0x9f6   :  { %v4404_v59 = vpack.c.bf16 %v105_v0, %v104_v58 }
 0x9f9   :  { %1717 = vadd.xlane.f32.xlu0 %v1716_v60  ;;  %v1732_v60 = vlaneseq }
 0x9fb   :  { %v4992_v61 = vshrl.u32 %v1732_v60, 7 }
 0x9fd   :  { %v1738_v1 = vsub.s32 1, %v4992_v61 }
 0x9ff   :  { %v1739_v3 = vrot.slane %v64_v2, %v1738_v1 }
 0xa82   :  { %v1715_v13 = vpop.xlane.xlu0 %1714 }
 0xa83   :  { %v1719_v15 = vmul.f32 0.03125, %v1715_v13 }
 0xa85   :  { %v1721_v30 = vadd.f32 1e-05, %v1719_v15 }
 0xa86   :  { %v1718_v16 = vpop.xlane.xlu0 %1717 }
 0xa87   :  { %4525 = vrsqrt.f32 %v1721_v30  ;;  %v1720_v17 = vmul.f32 0.03125, %v1718_v16 }
 0xa89   :  { %v1722_v18 = vadd.f32 1e-05, %v1720_v17 }
 0xa8b   :  { %4527 = vrsqrt.f32 %v1722_v18 }
 0xa91   :  { %v4526_v19 = vpop.eup %4525 }
 0xa92   :  { %v1725_v21 = vmul.f32 %v4526_v19, %v1709_v31 }
 0xa94   :  { %v1727_v23 = vmul.f32 %v1725_v21, %v62_v20 }
 0xa95   :  { %v4528_v24 = vpop.eup %4527 }
 0xa96   :  { %v1729_v25 = vadd.f32 %v1727_v23, %v63_v22  ;;  %v1726_v26 = vmul.f32 %v4528_v24, %v1710_v57  ;;  %v103_v57 = vld [vmem:[#allocation7 + $0x1d0] sm:$0xff] }
 0xa97   :  { %v4400_v31 = vpack.c.bf16 %v103_v57, %v102_v56 }
 0xa98   :  { %3924 = vmatmul.mubr.msk.f32.vlgmr.msra.gmra.mrb[18].mxu0 %vm106_vm0, %v1729_v25  ;;  %v1728_v27 = vmul.f32 %v1726_v26, %v62_v20 }
 0xa99   :  { %1818 = vmatprep.mubr.f32.mxu0 %v4686_v14  ;;  %4379 = vmatpush3.bf16.msra.mxu0 %v4376_v34 }
 0xa9a   :  { %v1730_v28 = vadd.f32 %v1728_v27, %v63_v22  ;;  %4381 = vmatprep.subr.bf16.mxu0 %v4380_v37 }
 0xa9c   :  { %3925 = vmatmul.mubr.msk.f32.gmra.mrb[20].mxu0 %vm106_vm0, %v1730_v28 }
 0xa9d   :  { %4383 = vmatpush3.bf16.msra.mxu0 %v4380_v37 }
 0xa9e   :  { %4385 = vmatprep.subr.bf16.mxu0 %v4384_v41 }
 0xaa1   :  { %4387 = vmatpush3.bf16.msra.mxu0 %v4384_v41 }
 0xaa2   :  { %4389 = vmatprep.subr.bf16.mxu0 %v4388_v12 }
 0xaa5   :  { %4391 = vmatpush3.bf16.msra.mxu0 %v4388_v12 }
 0xaa6   :  { %4393 = vmatprep.subr.bf16.mxu0 %v4392_v50 }
 0xaa9   :  { %4395 = vmatpush3.bf16.msra.mxu0 %v4392_v50 }
 0xaaa   :  { %4397 = vmatprep.subr.bf16.mxu0 %v4396_v53 }
 0xaad   :  { %4399 = vmatpush3.bf16.msra.mxu0 %v4396_v53  ;;  %v1734_v53 = vsub.s32 0, %v4992_v61  ;;  %v1966_v61 = vld [vmem:[#allocation5 + $0x15] ss:$0 sm:$0xff] }
 0xaae   :  { %4401 = vmatprep.subr.bf16.mxu0 %v4400_v31 }
 0xab1   :  { %4403 = vmatpush3.bf16.msra.mxu0 %v4400_v31 }
 0xab2   :  { %4405 = vmatprep.subr.bf16.mxu0 %v4404_v59 }
 0xab5   :  { %4407 = vmatpush3.bf16.msra.mxu0 %v4404_v59  ;;  %v1735_v59 = vrot.slane %v64_v2, %v1734_v53  ;;  %v65_v2 = vld [vmem:[#allocation5 + $0x5] ss:$0 sm:$0xff] }
 0xb6b   :  { %v1814_v4 = vpop.f32.mrb[18].mxu0 }
 0xb6c   :  { %v1816_v5 = vpop.f32.mrb[19].mxu0 }
 0xb6d   :  { %v1817_v6 = vadd.f32 %v1816_v5, %v1739_v3 }
 0xb6f   :  { %v1827_v7 = vmul.f32 0.70710677, %v1817_v6  ;;  %v1820_v8 = vpop.f32.mrb[20].mxu0  ;;  %v1825_v5 = vmul.f32 0.5, %v1817_v6 }
 0xb70   :  { %v1822_v9 = vpop.f32.mrb[21].mxu0 }
 0xb71   :  { %v1829_v10 = vand.u32 2147483647, %v1827_v7  ;;  %v1823_v11 = vadd.f32 %v1822_v9, %v1739_v3  ;;  %vm1869_vm6 = vcmp.lt.f32.partialorder %v1827_v7, 0.0 }
 0xb73   :  { %v1831_v13 = vmul.f32 0.3275911, %v1829_v10  ;;  %v1828_v15 = vmul.f32 0.70710677, %v1823_v11  ;;  %v1857_v19 = vsub.f32 0.0, %v1829_v10 }
 0xb75   :  { %v1833_v30 = vadd.f32 1.0, %v1831_v13  ;;  %v1830_v16 = vand.u32 2147483647, %v1828_v15  ;;  %v1859_v21 = vmul.f32 %v1857_v19, %v1829_v10  ;;  %v1815_v13 = vadd.f32 %v1814_v4, %v1735_v59 }
 0xb76   :  { %vm1870_vm7 = vcmp.lt.f32.partialorder %v1828_v15, 0.0 }
 0xb77   :  { %4529 = vrcp.f32 %v1833_v30  ;;  %v1832_v17 = vmul.f32 0.3275911, %v1830_v16  ;;  %v1858_v22 = vsub.f32 0.0, %v1830_v16  ;;  %v1861_v26 = vmul.f32 1.442695, %v1859_v21 }
 0xb79   :  { %v1834_v18 = vadd.f32 1.0, %v1832_v17  ;;  %v1860_v27 = vmul.f32 %v1858_v22, %v1830_v16  ;;  %v1826_v17 = vmul.f32 0.5, %v1823_v11 }
 0xb7b   :  { %4531 = vrcp.f32 %v1834_v18  ;;  %v1863_v35 = vmul.f32 1.442695, %v1860_v27 }
 0xb7c   :  { %4533 = vpow2.f32 %v1861_v26 }
 0xb7d   :  { %4535 = vpow2.f32 %v1863_v35  ;;  %v1970_v35 = vld [vmem:[#allocation7 + $0x210] sm:$0xff] }
 0xb81   :  { %v4530_v20 = vpop.eup %4529 }
 0xb82   :  { %v1839_v23 = vmul.f32 1.0614054, %v4530_v20 }
 0xb84   :  { %v1841_v24 = vadd.f32 -1.4531521, %v1839_v23 }
 0xb85   :  { %v4532_v25 = vpop.eup %4531 }
 0xb86   :  { %v1843_v28 = vmul.f32 %v4530_v20, %v1841_v24  ;;  %v1840_v32 = vmul.f32 1.0614054, %v4532_v25  ;;  %v4534_v50 = vpop.eup %4533 }
 0xb87   :  { %v4536_v31 = vpop.eup %4535 }
 0xb88   :  { %v1845_v33 = vadd.f32 1.4214138, %v1843_v28  ;;  %v1842_v34 = vadd.f32 -1.4531521, %v1840_v32  ;;  %v1971_v32 = vld [vmem:[#allocation7 + $0x218] sm:$0xff] }
 0xb8a   :  { %v1847_v36 = vmul.f32 %v4530_v20, %v1845_v33  ;;  %v1844_v37 = vmul.f32 %v4532_v25, %v1842_v34  ;;  %v1968_v34 = vld [vmem:[#allocation7 + $0x200] sm:$0xff] }
 0xb8c   :  { %v1849_v39 = vadd.f32 -0.28449672, %v1847_v36  ;;  %v1846_v40 = vadd.f32 1.4214138, %v1844_v37  ;;  %v4410_v36 = vpack.c.bf16 %v1970_v35, %v1968_v34  ;;  %v1973_v37 = vld [vmem:[#allocation7 + $0x228] sm:$0xff] }
 0xb8e   :  { %v1851_v41 = vmul.f32 %v4530_v20, %v1849_v39  ;;  %v1848_v42 = vmul.f32 %v4532_v25, %v1846_v40  ;;  %v1975_v39 = vld [vmem:[#allocation7 + $0x238] sm:$0xff]  ;;  %v1972_v40 = vld [vmem:[#allocation7 + $0x220] sm:$0xff] }
 0xb90   :  { %v1853_v43 = vadd.f32 0.2548296, %v1851_v41  ;;  %v1850_v12 = vadd.f32 -0.28449672, %v1848_v42  ;;  %v4412_v41 = vpack.c.bf16 %v1975_v39, %v1973_v37  ;;  %v1974_v42 = vld [vmem:[#allocation7 + $0x230] sm:$0xff] }
 0xb92   :  { %v1855_v46 = vmul.f32 %v4530_v20, %v1853_v43  ;;  %v1852_v49 = vmul.f32 %v4532_v25, %v1850_v12  ;;  %v1821_v20 = vadd.f32 %v1820_v8, %v1735_v59  ;;  %v4414_v43 = vpack.c.bf16 %v1974_v42, %v1972_v40  ;;  %v1962_v59 = vld [vmem:[#allocation5 + $0x12] ss:$0 sm:$0xff] }
 0xb94   :  { %v1865_v51 = vmul.f32 %v4534_v50, %v1855_v46  ;;  %v1854_v52 = vadd.f32 0.2548296, %v1852_v49 }
 0xb96   :  { %v1867_v56 = vsub.f32 1.0, %v1865_v51  ;;  %v1856_v57 = vmul.f32 %v4532_v25, %v1854_v52 }
 0xb98   :  { %v1871_v58 = vsub.f32 0.0, %v1867_v56  ;;  %v1866_v0 = vmul.f32 %v4536_v31, %v1856_v57 }
 0xb9a   :  { %v1873_v60 = vsel %vm1869_vm6, %v1871_v58, %v1867_v56  ;;  %v1868_v3 = vsub.f32 1.0, %v1866_v0  ;;  %v1961_v58 = vld [vmem:[#allocation5 + $0x11] ss:$0 sm:$0xff] }
 0xb9b   :  { %v1875_v9 = vadd.f32 1.0, %v1873_v60 }
 0xb9c   :  { %v1872_v10 = vsub.f32 0.0, %v1868_v3 }
 0xb9d   :  { %v1877_v30 = vmul.f32 %v1875_v9, %v1825_v5 }
 0xb9e   :  { %v1874_v16 = vsel %vm1870_vm7, %v1872_v10, %v1868_v3 }
 0xb9f   :  { %v1876_v18 = vadd.f32 1.0, %v1874_v16  ;;  %v1879_v19 = vmul.f32 %v1877_v30, %v1815_v13 }
 0xba1   :  { %v1878_v21 = vmul.f32 %v1876_v18, %v1826_v17  ;;  %4207 = vmatprep.mubr.f32.mxu0 %v1879_v19 }
 0xba3   :  { %v1880_v22 = vmul.f32 %v1878_v21, %v1821_v20 }
 0xba5   :  { %4208 = vmatmul.mubr.f32.vlgmr.msra.gmra.mrb[22].mxu0 %v1880_v22 }
 0xba6   :  { %2108 = vmatprep.mubr.f32.mxu0 %v4686_v14 }
 0xc78   :  { %v4209_v7 = vpop.f32.mrb[22].mxu0 }
 0xc79   :  { %v1957_v6 = vadd.f32 %v4209_v7, %v4976_v45  ;;  %v1947_v23 = vpop.f32.mrb[23].mxu0 }
 0xc7a   :  { %v1956_v4 = vadd.f32 %v1947_v23, %v4979_v47  ;;  %v1969_v47 = vld [vmem:[#allocation7 + $0x208] sm:$0xff] }
 0xc7b   :  { %v5003_v24 = vadd.f32 %v1957_v6, %v65_v2  ;;  %v4408_v33 = vpack.c.bf16 %v1971_v32, %v1969_v47 }
 0xc7c   :  { %v5005_v15 = vadd.f32 %v1956_v4, %v65_v2 }
 0xc7d   :  { %v2011_v45 = vsel %vm106_vm0, %v5003_v24, 0.0  ;;  %4409 = vmatprep.subr.bf16.mxu0 %v4408_v33 }
 0xc7e   :  { %v2008_v8 = vsel %vm106_vm0, %v5005_v15, 0.0  ;;  %4411 = vmatpush1.bf16.msra.mxu0 %v4410_v36 }
 0xc7f   :  { %2009 = vadd.xlane.f32.xlu0 %v2008_v8  ;;  %4413 = vmatprep.subr.bf16.mxu0 %v4412_v41 }
 0xc82   :  { %4415 = vmatpush1.bf16.msra.mxu0 %v4414_v43 }
 0xc83   :  { %4230 = vmatprep.subr.mxu0 %v4686_v14 }
 0xd0c   :  { %v2010_v11 = vpop.xlane.xlu0 %2009 }
 0xd0d   :  { %v2014_v25 = vmul.f32 0.03125, %v2010_v11 }
 0xd0f   :  { %v2016_v26 = vsub.f32 %v5005_v15, %v2014_v25 }
 0xd11   :  { %v2018_v27 = vmul.f32 %v2016_v26, %v2016_v26 }
 0xd13   :  { %v2020_v28 = vsel %vm106_vm0, %v2018_v27, 0.0 }
 0xd14   :  { %2021 = vadd.xlane.f32.xlu1 %v2020_v28 }
 0xd18   :  { %2012 = vadd.xlane.f32.xlu1 %v2011_v45 }
 0xda1   :  { %v2022_v12 = vpop.xlane.xlu1 %2021 }
 0xda2   :  { %v2026_v46 = vmul.f32 0.03125, %v2022_v12 }
 0xda4   :  { %v2028_v49 = vadd.f32 1e-05, %v2026_v46 }
 0xda5   :  { %v2013_v50 = vpop.xlane.xlu1 %2012 }
 0xda6   :  { %4537 = vrsqrt.f32 %v2028_v49  ;;  %v2015_v51 = vmul.f32 0.03125, %v2013_v50 }
 0xda8   :  { %v2017_v52 = vsub.f32 %v5003_v24, %v2015_v51 }
 0xdaa   :  { %v2019_v56 = vmul.f32 %v2017_v52, %v2017_v52 }
 0xdac   :  { %v2023_v57 = vsel %vm106_vm0, %v2019_v56, 0.0 }
 0xdad   :  { %2024 = vadd.xlane.f32.xlu1 %v2023_v57 }
 0xdb0   :  { %v4538_v31 = vpop.eup %4537 }
 0xdb1   :  { %v2032_v0 = vmul.f32 %v4538_v31, %v2016_v26 }
 0xdb3   :  { %v2034_v60 = vmul.f32 %v2032_v0, %v1961_v58 }
 0xdb5   :  { %v2036_v3 = vadd.f32 %v2034_v60, %v1962_v59 }
 0xdb7   :  { %3926 = vmatmul.mubr.msk.f32.vlgmr.msra.gmra.mrb[24].mxu0 %vm106_vm0, %v2036_v3 }
 0xdb8   :  { %2114 = vmatprep.mubr.f32.mxu0 %v4686_v14 }
 0xe3a   :  { %v2025_v5 = vpop.xlane.xlu1 %2024 }
 0xe3b   :  { %v2027_v9 = vmul.f32 0.03125, %v2025_v5 }
 0xe3d   :  { %v2029_v10 = vadd.f32 1e-05, %v2027_v9 }
 0xe3f   :  { %4539 = vrsqrt.f32 %v2029_v10 }
 0xe49   :  { %v4540_v13 = vpop.eup %4539 }
 0xe4a   :  { %v2033_v30 = vmul.f32 %v4540_v13, %v2017_v52 }
 0xe4c   :  { %v2035_v16 = vmul.f32 %v2033_v30, %v1961_v58 }
 0xe4e   :  { %v2037_v17 = vadd.f32 %v2035_v16, %v1962_v59 }
 0xe50   :  { %3927 = vmatmul.mubr.msk.f32.gmra.mrb[26].mxu0 %vm106_vm0, %v2037_v17 }
 0xe51   :  { %4232 = vmatprep.mubr.msk.f32.mxu0 %vm4687_vm1, %v4686_v14 }
 0xe8a   :  { %v2110_v18 = vpop.f32.mrb[24].mxu0 }
 0xe8b   :  { %2122 = vrot.lane.b32.xlu0 %v2110_v18, %s4688_s2  ;;  %v5022_v19 = vpop.f32.mrb[25].mxu0 }
 0xe8f   :  { %2285 = vrot.lane.b32.xlu0 %v2110_v18, %s4689_s25 }
 0xe93   :  { %2456 = vrot.lane.b32.xlu0 %v2110_v18, %s4691_s30 }
 0xe97   :  { %2454 = vrot.lane.b32.xlu0 %v2110_v18, %s4692_s5 }
 0xe9b   :  { %2622 = vrot.lane.b32.xlu0 %v2110_v18, %s4693_s6 }
 0xefd   :  { %v2123_v20 = vpop.permute.xlu0 %2122 }
 0xefe   :  { %4211 = vmatpush3.xpose.msk.msra.mxu1 %vm224_vm2, %v2123_v20 }
 0xeff   :  { %4215 = vmatprep.subr.mxu1 %v4686_v14 }
 0xf01   :  { %4213 = vmatmul.mubr.msk.f32.vlgmr.msra.gmra.mrb[20].mxu1 %vm224_vm2, %v2110_v18  ;;  %v5031_v21 = vpop.permute.xlu0 %2285 }
 0xf02   :  { %4216 = vmatpush3.msra.mxu1 %v5022_v19  ;;  %4217 = vmatprep.mubr.msk.f32.mxu1 %vm4687_vm1, %v4686_v14 }
 0xf03   :  { %4220 = vmatprep.subr.mxu1 %v4686_v14 }
 0xf05   :  { %v2457_v22 = vpop.permute.xlu0 %2456 }
 0xf06   :  { %4231 = vmatpush3.xpose.msk.msra.mxu0 %vm224_vm2, %v2457_v22 }
 0xf07   :  { %4240 = vmatprep.subr.mxu0 %v4686_v14 }
 0xf09   :  { %v2455_v2 = vpop.permute.xlu0 %2454 }
 0xf0a   :  { %4233 = vmatmul.mubr.msk.f32.vlgmr.msra.gmra.mrb[28].mxu0 %vm224_vm2, %v2455_v2 }
 0xf0b   :  { %4242 = vmatprep.mubr.msk.f32.mxu0 %vm4687_vm1, %v4686_v14 }
 0xf0d   :  { %v2623_v35 = vpop.permute.xlu0 %2622 }
 0xf23   :  { %v2116_v7 = vpop.f32.mrb[26].mxu0 }
 0xf24   :  { %2983 = vrot.lane.b32.xlu0 %v2116_v7, %s4690_s29  ;;  %v5043_v6 = vpop.f32.mrb[27].mxu0 }
 0xf28   :  { %3152 = vrot.lane.b32.xlu0 %v2116_v7, %s4691_s30 }
 0xf2c   :  { %3320 = vrot.lane.b32.xlu0 %v2116_v7, %s4681_s26 }
 0xf96   :  { %v2984_v39 = vpop.permute.xlu0 %2983 }
 0xf9a   :  { %v3153_v46 = vpop.permute.xlu0 %3152 }
 0xf9e   :  { %v3321_v51 = vpop.permute.xlu0 %3320 }
 0xfd4   :  { %v2194_v23 = vpop.f32.mrb[20].mxu1 }
 0xfd5   :  { %v4214_v4 = vpop.f32.mrb[21].mxu1  ;;  %v2198_v8 = vsel %vm299_vm3, %v2194_v23, -inf }
 0xfd6   :  { %2199 = vmax.xlane.f32.xlu1 %v2198_v8 }
 0xfdd   :  { %v5048_v11 = vpop.f32.mrb[28].mxu0 }
 0xfde   :  { %v4234_v25 = vpop.f32.mrb[29].mxu0  ;;  %v2532_v32 = vsel %vm299_vm3, %v5048_v11, -inf }
0x1063   :  { %v2200_v26 = vpop.xlane.xlu1 %2199 }
0x1064   :  { %v2201_v27 = vsub.f32 %v2194_v23, %v2200_v26 }
0x1066   :  { %v2202_v28 = vmul.f32 1.442695, %v2201_v27 }
0x1068   :  { %4541 = vpow2.f32 %v2202_v28 }
0x1072   :  { %v4542_v45 = vpop.eup %4541 }
0x1073   :  { %v2204_v47 = vsel %vm299_vm3, %v4542_v45, 0.0 }
0x1074   :  { %2205 = vadd.xlane.f32.xlu1 %v2204_v47 }
0x1085   :  { %2287 = vrot.lane.b32.xlu1 %v2110_v18, %s4690_s29 }
0x1089   :  { %2624 = vrot.lane.b32.xlu1 %v2110_v18, %s4681_s26 }
0x108d   :  { %2818 = vrot.lane.b32.xlu1 %v2116_v7, %s4688_s2 }
0x1091   :  { %2981 = vrot.lane.b32.xlu1 %v2116_v7, %s4689_s25 }
0x1095   :  { %3150 = vrot.lane.b32.xlu1 %v2116_v7, %s4692_s5 }
0x1099   :  { %3318 = vrot.lane.b32.xlu1 %v2116_v7, %s4693_s6 }
0x10bd   :  { %2533 = vmax.xlane.f32.xlu1 %v2532_v32 }
0x1101   :  { %v2206_v33 = vpop.xlane.xlu1 %2205 }
0x1102   :  { %4543 = vrcp.f32 %v2206_v33 }
0x1105   :  { %v2288_v34 = vpop.permute.xlu1 %2287 }
0x1109   :  { %v2625_v36 = vpop.permute.xlu1 %2624 }
0x110a   :  { %4241 = vmatpush3.xpose.msk.msra.mxu0 %vm224_vm2, %v2625_v36 }
0x110b   :  { %4250 = vmatprep.subr.mxu0 %v4686_v14 }
0x110c   :  { %v4544_v37 = vpop.eup %4543 }
0x110d   :  { %v2208_v40 = vmul.f32 %v4544_v37, %v2206_v33  ;;  %4243 = vmatmul.mubr.msk.f32.vlgmr.msra.gmra.mrb[30].mxu0 %vm224_vm2, %v2623_v35  ;;  %v2819_v41 = vpop.permute.xlu1 %2818 }
0x110e   :  { %4251 = vmatpush3.xpose.msk.msra.mxu0 %vm224_vm2, %v2819_v41  ;;  %4252 = vmatprep.mubr.msk.f32.mxu0 %vm4687_vm1, %v4686_v14 }
0x110f   :  { %v2209_v42 = vsub.f32 2.0, %v2208_v40  ;;  %4260 = vmatprep.subr.mxu0 %v4686_v14 }
0x1111   :  { %v2210_v43 = vmul.f32 %v4544_v37, %v2209_v42  ;;  %4253 = vmatmul.mubr.msk.f32.vlgmr.msra.gmra.mrb[32].mxu0 %vm224_vm2, %v2116_v7  ;;  %v2982_v12 = vpop.permute.xlu1 %2981 }
0x1112   :  { %4261 = vmatpush3.xpose.msk.msra.mxu0 %vm224_vm2, %v2984_v39  ;;  %4262 = vmatprep.mubr.msk.f32.mxu0 %vm4687_vm1, %v4686_v14 }
0x1113   :  { %v5070_v49 = vmul.f32 %v4542_v45, %v2210_v43  ;;  %4270 = vmatprep.subr.mxu0 %v4686_v14 }
0x1115   :  { %4218 = vmatmul.mubr.msk.f32.vlgmr.msra.gmra.mrb[22].mxu1 %vm299_vm3, %v5070_v49  ;;  %4263 = vmatmul.mubr.msk.f32.vlgmr.msra.gmra.mrb[34].mxu0 %vm224_vm2, %v2982_v12  ;;  %v3151_v50 = vpop.permute.xlu1 %3150 }
0x1116   :  { %4221 = vmatpush3.xpose.msk.msra.mxu1 %vm224_vm2, %v2288_v34  ;;  %4271 = vmatpush3.xpose.msk.msra.mxu0 %vm224_vm2, %v3153_v46 }
0x1117   :  { %4222 = vmatprep.mubr.msk.f32.mxu1 %vm4687_vm1, %v4686_v14  ;;  %4272 = vmatprep.mubr.msk.f32.mxu0 %vm4687_vm1, %v4686_v14 }
0x1118   :  { %4280 = vmatprep.subr.mxu0 %v4686_v14  ;;  %4225 = vmatprep.subr.mxu1 %v4686_v14 }
0x1119   :  { %4223 = vmatmul.mubr.msk.f32.vlgmr.msra.gmra.mrb[24].mxu1 %vm224_vm2, %v5031_v21  ;;  %4273 = vmatmul.mubr.msk.f32.vlgmr.msra.gmra.mrb[36].mxu0 %vm224_vm2, %v3151_v50  ;;  %v3319_v52 = vpop.permute.xlu1 %3318 }
0x111a   :  { %4281 = vmatpush3.xpose.msk.msra.mxu0 %vm224_vm2, %v3321_v51  ;;  %4282 = vmatprep.mubr.msk.f32.mxu0 %vm4687_vm1, %v4686_v14 }
0x111b   :  { %4227 = vmatprep.mubr.msk.f32.mxu1 %vm4687_vm1, %v4686_v14 }
0x111d   :  { %4283 = vmatmul.mubr.msk.f32.vlgmr.msra.gmra.mrb[38].mxu0 %vm224_vm2, %v3319_v52 }
0x114a   :  { %v2534_v0 = vpop.xlane.xlu1 %2533 }
0x114b   :  { %v2535_v9 = vsub.f32 %v5048_v11, %v2534_v0 }
0x114d   :  { %v2536_v20 = vmul.f32 1.442695, %v2535_v9 }
0x114f   :  { %4545 = vpow2.f32 %v2536_v20 }
0x1159   :  { %v5102_v8 = vpop.eup %4545 }
0x115a   :  { %v2538_v11 = vsel %vm299_vm3, %v5102_v8, 0.0 }
0x11e0   :  { %v2696_v56 = vpop.f32.mrb[30].mxu0 }
0x11e1   :  { %v4244_v57 = vpop.f32.mrb[31].mxu0  ;;  %v2700_v2 = vsel %vm299_vm3, %v2696_v56, -inf }
0x11e4   :  { %v2890_v31 = vpop.f32.mrb[32].mxu0 }
0x11e5   :  { %v4254_v58 = vpop.f32.mrb[33].mxu0  ;;  %v2894_v7 = vsel %vm299_vm3, %v2890_v31, -inf }
0x11e8   :  { %v5093_v59 = vpop.f32.mrb[22].mxu1  ;;  %v3055_v60 = vpop.f32.mrb[34].mxu0 }
0x11e9   :  { %v4219_v3 = vpop.f32.mrb[23].mxu1  ;;  %v4264_v5 = vpop.f32.mrb[35].mxu0  ;;  %v3059_v23 = vsel %vm299_vm3, %v3055_v60, -inf }
0x11ec   :  { %v2359_v10 = vpop.f32.mrb[24].mxu1  ;;  %v3224_v13 = vpop.f32.mrb[36].mxu0 }
0x11ed   :  { %v4224_v30 = vpop.f32.mrb[25].mxu1  ;;  %v4274_v16 = vpop.f32.mrb[37].mxu0  ;;  %v2363_v17 = vsel %vm299_vm3, %v2359_v10, -inf  ;;  %v3228_v18 = vsel %vm299_vm3, %v3224_v13, -inf }
0x11ee   :  { %2364 = vmax.xlane.f32.xlu0 %v2363_v17  ;;  %3229 = vmax.xlane.f32.xlu1 %v3228_v18 }
0x11f0   :  { %v3392_v21 = vpop.f32.mrb[38].mxu0 }
0x11f1   :  { %v4284_v22 = vpop.f32.mrb[39].mxu0  ;;  %v3396_v4 = vsel %vm299_vm3, %v3392_v21, -inf }
0x11f2   :  { %2701 = vmax.xlane.f32.xlu0 %v2700_v2 }
0x11f6   :  { %2895 = vmax.xlane.f32.xlu0 %v2894_v7 }
0x11fa   :  { %3060 = vmax.xlane.f32.xlu0 %v3059_v23 }
0x11fe   :  { %3397 = vmax.xlane.f32.xlu0 %v3396_v4 }
0x1202   :  { %2539 = vadd.xlane.f32.xlu0 %v2538_v11 }
0x127b   :  { %v2365_v25 = vpop.xlane.xlu0 %2364  ;;  %v3230_v26 = vpop.xlane.xlu1 %3229 }
0x127c   :  { %v3231_v45 = vsub.f32 %v3224_v13, %v3230_v26  ;;  %v2366_v39 = vsub.f32 %v2359_v10, %v2365_v25 }
0x127e   :  { %v3232_v34 = vmul.f32 1.442695, %v3231_v45  ;;  %v2367_v12 = vmul.f32 1.442695, %v2366_v39 }
0x127f   :  { %v2702_v27 = vpop.xlane.xlu0 %2701 }
0x1280   :  { %v2703_v28 = vsub.f32 %v2696_v56, %v2702_v27 }
0x1282   :  { %v2704_v47 = vmul.f32 1.442695, %v2703_v28 }
0x1283   :  { %v2896_v32 = vpop.xlane.xlu0 %2895 }
0x1284   :  { %4547 = vpow2.f32 %v2704_v47  ;;  %v2897_v33 = vsub.f32 %v2890_v31, %v2896_v32 }
0x1286   :  { %v2898_v35 = vmul.f32 1.442695, %v2897_v33 }
0x1287   :  { %v3061_v36 = vpop.xlane.xlu0 %3060 }
0x1288   :  { %4549 = vpow2.f32 %v2898_v35  ;;  %v3062_v37 = vsub.f32 %v3055_v60, %v3061_v36 }
0x1289   :  { %4551 = vpow2.f32 %v3232_v34 }
0x128a   :  { %v3063_v40 = vmul.f32 1.442695, %v3062_v37 }
0x128b   :  { %v3398_v41 = vpop.xlane.xlu0 %3397 }
0x128c   :  { %4553 = vpow2.f32 %v3063_v40  ;;  %v3399_v42 = vsub.f32 %v3392_v21, %v3398_v41 }
0x128e   :  { %v5106_v43 = vpop.eup %4547  ;;  %v3400_v46 = vmul.f32 1.442695, %v3399_v42 }
0x128f   :  { %v2706_v50 = vsel %vm299_vm3, %v5106_v43, 0.0  ;;  %v2540_v9 = vpop.xlane.xlu0 %2539 }
0x1290   :  { %4555 = vpow2.f32 %v3400_v46  ;;  %2707 = vadd.xlane.f32.xlu1 %v2706_v50 }
0x1291   :  { %4557 = vpow2.f32 %v2367_v12 }
0x1292   :  { %v5110_v51 = vpop.eup %4549  ;;  %4559 = vrcp.f32 %v2540_v9 }
0x1293   :  { %v2900_v52 = vsel %vm299_vm3, %v5110_v51, 0.0  ;;  %v5114_v56 = vpop.eup %4551 }
0x1294   :  { %2901 = vadd.xlane.f32.xlu0 %v2900_v52  ;;  %v3234_v58 = vsel %vm299_vm3, %v5114_v56, 0.0 }
0x1296   :  { %v5116_v57 = vpop.eup %4553 }
0x1297   :  { %v3065_v31 = vsel %vm299_vm3, %v5116_v57, 0.0 }
0x1298   :  { %3066 = vadd.xlane.f32.xlu1 %v3065_v31  ;;  %3235 = vadd.xlane.f32.xlu0 %v3234_v58 }
0x129a   :  { %v5122_v0 = vpop.eup %4555 }
0x129b   :  { %v3402_v60 = vsel %vm299_vm3, %v5122_v0, 0.0  ;;  %v4558_v3 = vpop.eup %4557 }
0x129c   :  { %3403 = vadd.xlane.f32.xlu1 %v3402_v60  ;;  %v2369_v5 = vsel %vm299_vm3, %v4558_v3, 0.0 }
0x12a0   :  { %2370 = vadd.xlane.f32.xlu1 %v2369_v5 }
0x12ae   :  { %2378 = vrot.lane.b32.xlu0 %v5022_v19, %s4689_s25 }
0x12b1   :  { %2546 = vrot.lane.b32.xlu1 %v5022_v19, %s4692_s5 }
0x12b2   :  { %3242 = vrot.lane.b32.xlu0 %v5043_v6, %s4692_s5 }
0x12b5   :  { %2714 = vrot.lane.b32.xlu1 %v5022_v19, %s4693_s6  ;;  %v4560_v19 = vpop.eup %4559 }
0x12b6   :  { %v2542_v22 = vmul.f32 %v4560_v19, %v2540_v9 }
0x12b8   :  { %v2543_v23 = vsub.f32 2.0, %v2542_v22 }
0x12b9   :  { %3074 = vrot.lane.b32.xlu1 %v5043_v6, %s4689_s25 }
0x12ba   :  { %v2544_v27 = vmul.f32 %v4560_v19, %v2543_v23  ;;  %v1982_v23 = vld [vmem:[#allocation7 + $0x2a0] sm:$0xff] }
0x12bc   :  { %v5147_v34 = vmul.f32 %v5102_v8, %v2544_v27 }
0x12bd   :  { %3410 = vrot.lane.b32.xlu1 %v5043_v6, %s4693_s6 }
0x131d   :  { %v2708_v10 = vpop.xlane.xlu1 %2707 }
0x131e   :  { %4561 = vrcp.f32 %v2708_v10 }
0x1321   :  { %v2902_v13 = vpop.xlane.xlu0 %2901 }
0x1325   :  { %v3236_v30 = vpop.xlane.xlu0 %3235  ;;  %v3067_v16 = vpop.xlane.xlu1 %3066 }
0x1328   :  { %v4562_v21 = vpop.eup %4561 }
0x1329   :  { %v2379_v17 = vpop.permute.xlu0 %2378  ;;  %v3404_v18 = vpop.xlane.xlu1 %3403  ;;  %v2710_v4 = vmul.f32 %v4562_v21, %v2708_v10 }
0x132a   :  { %4226 = vmatpush3.msra.mxu1 %v2379_v17  ;;  %v1979_v17 = vld [vmem:[#allocation7 + $0x270] sm:$0xff] }
0x132b   :  { %4235 = vmatprep.subr.mxu1 %v4686_v14  ;;  %v2711_v28 = vsub.f32 2.0, %v2710_v4  ;;  %v1983_v4 = vld [vmem:[#allocation7 + $0x2b0] sm:$0xff] }
0x132d   :  { %v2371_v20 = vpop.xlane.xlu1 %2370  ;;  %v2712_v35 = vmul.f32 %v4562_v21, %v2711_v28  ;;  %v1981_v21 = vld [vmem:[#allocation7 + $0x290] sm:$0xff] }
0x132e   :  { %4563 = vrcp.f32 %v2371_v20 }
0x132f   :  { %4565 = vrcp.f32 %v2902_v13  ;;  %v5155_v41 = vmul.f32 %v5106_v43, %v2712_v35 }
0x1330   :  { %4567 = vrcp.f32 %v3067_v16 }
0x1331   :  { %4569 = vrcp.f32 %v3236_v30  ;;  %v2547_v32 = vpop.permute.xlu1 %2546 }
0x1332   :  { %4571 = vrcp.f32 %v3404_v18 }
0x1335   :  { %v2715_v40 = vpop.permute.xlu1 %2714 }
0x1338   :  { %v4564_v2 = vpop.eup %4563 }
0x1339   :  { %v2373_v7 = vmul.f32 %v4564_v2, %v2371_v20  ;;  %v4566_v25 = vpop.eup %4565  ;;  %v3075_v58 = vpop.permute.xlu1 %3074 }
0x133a   :  { %v2904_v45 = vmul.f32 %v4566_v25, %v2902_v13  ;;  %v4568_v33 = vpop.eup %4567  ;;  %v1977_v13 = vld [vmem:[#allocation7 + $0x250] sm:$0xff] }
0x133b   :  { %v2374_v11 = vsub.f32 2.0, %v2373_v7  ;;  %v3069_v37 = vmul.f32 %v4568_v33, %v3067_v16  ;;  %v4570_v39 = vpop.eup %4569  ;;  %v1978_v16 = vld [vmem:[#allocation7 + $0x260] sm:$0xff] }
0x133c   :  { %v2905_v36 = vsub.f32 2.0, %v2904_v45  ;;  %v3238_v8 = vmul.f32 %v4570_v39, %v3236_v30  ;;  %v4572_v46 = vpop.eup %4571 }
0x133d   :  { %v2375_v26 = vmul.f32 %v4564_v2, %v2374_v11  ;;  %v3070_v12 = vsub.f32 2.0, %v3069_v37  ;;  %v3406_v31 = vmul.f32 %v4572_v46, %v3404_v18  ;;  %v3411_v10 = vpop.permute.xlu1 %3410  ;;  %v4420_v18 = vpack.c.bf16 %v1979_v17, %v1978_v16  ;;  %v1987_v17 = vld [vmem:[#allocation7 + $0x2d8] sm:$0xff] }
0x133e   :  { %v2906_v42 = vmul.f32 %v4566_v25, %v2905_v36  ;;  %v3239_v52 = vsub.f32 2.0, %v3238_v8  ;;  %v4428_v25 = vpack.c.bf16 %v1983_v4, %v1982_v23  ;;  %v1990_v23 = vld [vmem:[#allocation7 + $0x2f0] sm:$0xff] }
0x133f   :  { %v5140_v47 = vmul.f32 %v4558_v3, %v2375_v26  ;;  %v3071_v43 = vmul.f32 %v4568_v33, %v3070_v12  ;;  %v3407_v3 = vsub.f32 2.0, %v3406_v31 }
0x1340   :  { %v5164_v50 = vmul.f32 %v5110_v51, %v2906_v42  ;;  %v3243_v51 = vpop.permute.xlu0 %3242 }
0x1341   :  { %4228 = vmatmul.mubr.msk.f32.vlgmr.msra.gmra.mrb[26].mxu1 %vm299_vm3, %v5140_v47  ;;  %v5172_v60 = vmul.f32 %v5116_v57, %v3071_v43  ;;  %v3408_v9 = vmul.f32 %v4572_v46, %v3407_v3 }
0x1342   :  { %4236 = vmatpush3.msra.mxu1 %v2547_v32  ;;  %4237 = vmatprep.mubr.msk.f32.mxu1 %vm4687_vm1, %v4686_v14 }
0x1343   :  { %4245 = vmatprep.subr.mxu1 %v4686_v14  ;;  %v5188_v57 = vmul.f32 %v5122_v0, %v3408_v9  ;;  %v1980_v0 = vld [vmem:[#allocation7 + $0x280] sm:$0xff] }
0x1344   :  { %v4424_v2 = vpack.c.bf16 %v1981_v21, %v1980_v0  ;;  %v1989_v21 = vld [vmem:[#allocation7 + $0x2e8] sm:$0xff] }
0x1345   :  { %4238 = vmatmul.mubr.msk.f32.vlgmr.msra.gmra.mrb[28].mxu1 %vm299_vm3, %v5147_v34 }
0x1346   :  { %4246 = vmatpush3.msra.mxu1 %v2715_v40  ;;  %4247 = vmatprep.mubr.msk.f32.mxu1 %vm4687_vm1, %v4686_v14 }
0x1347   :  { %4255 = vmatprep.subr.mxu1 %v4686_v14 }
0x1349   :  { %4248 = vmatmul.mubr.msk.f32.vlgmr.msra.gmra.mrb[30].mxu1 %vm299_vm3, %v5155_v41 }
0x134a   :  { %4256 = vmatpush3.msra.mxu1 %v5043_v6  ;;  %4257 = vmatprep.mubr.msk.f32.mxu1 %vm4687_vm1, %v4686_v14  ;;  %v3240_v6 = vmul.f32 %v4570_v39, %v3239_v52 }
0x134b   :  { %4265 = vmatprep.subr.mxu1 %v4686_v14 }
0x134c   :  { %v5180_v5 = vmul.f32 %v5114_v56, %v3240_v6  ;;  %v1976_v56 = vld [vmem:[#allocation7 + $0x240] sm:$0xff] }
0x134d   :  { %4258 = vmatmul.mubr.msk.f32.vlgmr.msra.gmra.mrb[32].mxu1 %vm299_vm3, %v5164_v50  ;;  %v4416_v30 = vpack.c.bf16 %v1977_v13, %v1976_v56 }
0x134e   :  { %4266 = vmatpush3.msra.mxu1 %v3075_v58  ;;  %4267 = vmatprep.mubr.msk.f32.mxu1 %vm4687_vm1, %v4686_v14 }
0x134f   :  { %4275 = vmatprep.subr.mxu1 %v4686_v14  ;;  %4417 = vmatprep.subr.bf16.mxu0 %v4416_v30 }
0x1350   :  { %4419 = vmatpush3.bf16.msra.mxu0 %v4416_v30 }
0x1351   :  { %4268 = vmatmul.mubr.msk.f32.vlgmr.msra.gmra.mrb[34].mxu1 %vm299_vm3, %v5172_v60  ;;  %4421 = vmatprep.subr.bf16.mxu0 %v4420_v18 }
0x1352   :  { %4276 = vmatpush3.msra.mxu1 %v3243_v51  ;;  %4277 = vmatprep.mubr.msk.f32.mxu1 %vm4687_vm1, %v4686_v14 }
0x1353   :  { %4285 = vmatprep.subr.mxu1 %v4686_v14 }
0x1354   :  { %4423 = vmatpush3.bf16.msra.mxu0 %v4420_v18 }
0x1355   :  { %4278 = vmatmul.mubr.msk.f32.vlgmr.msra.gmra.mrb[36].mxu1 %vm299_vm3, %v5180_v5  ;;  %4425 = vmatprep.subr.bf16.mxu0 %v4424_v2 }
0x1356   :  { %4286 = vmatpush3.msra.mxu1 %v3411_v10  ;;  %4287 = vmatprep.mubr.msk.f32.mxu1 %vm4687_vm1, %v4686_v14 }
0x1358   :  { %4427 = vmatpush3.bf16.msra.mxu0 %v4424_v2 }
0x1359   :  { %4288 = vmatmul.mubr.msk.f32.vlgmr.msra.gmra.mrb[38].mxu1 %vm299_vm3, %v5188_v57  ;;  %4429 = vmatprep.subr.bf16.mxu0 %v4428_v25 }
0x135a   :  { %3707 = vmatprep.mubr.f32.mxu1 %v4686_v14 }
0x135c   :  { %4431 = vmatpush3.bf16.msra.mxu0 %v4428_v25 }
0x1414   :  { %v2450_v20 = vpop.f32.mrb[26].mxu1 }
0x1415   :  { %2803 = vrot.lane.b32.xlu0 %v2450_v20, %s4681_s26  ;;  %v4229_v19 = vpop.f32.mrb[27].mxu1  ;;  %v1984_v20 = vld [vmem:[#allocation7 + $0x2c0] sm:$0xff] }
0x1416   :  { %v1986_v19 = vld [vmem:[#allocation7 + $0x2d0] sm:$0xff] }
0x1417   :  { %v4434_v0 = vpack.c.bf16 %v1986_v19, %v1984_v20 }
0x1418   :  { %v2618_v22 = vpop.f32.mrb[28].mxu1 }
0x1419   :  { %2807 = vrot.lane.b32.xlu1 %v2618_v22, %s4691_s30  ;;  %v4239_v7 = vpop.f32.mrb[29].mxu1  ;;  %v1991_v22 = vld [vmem:[#allocation7 + $0x2f8] sm:$0xff] }
0x141a   :  { %v4436_v2 = vpack.c.bf16 %v1991_v22, %v1989_v21  ;;  %v1988_v7 = vld [vmem:[#allocation7 + $0x2e0] sm:$0xff] }
0x141b   :  { %v4438_v4 = vpack.c.bf16 %v1990_v23, %v1988_v7  ;;  %v1998_v22 = vld [vmem:[#allocation7 + $0x360] sm:$0xff] }
0x141c   :  { %v2786_v11 = vpop.f32.mrb[30].mxu1 }
0x141d   :  { %2811 = vrot.lane.b32.xlu1 %v2786_v11, %s4690_s29  ;;  %v4249_v26 = vpop.f32.mrb[31].mxu1 }
0x1420   :  { %v2977_v27 = vpop.f32.mrb[32].mxu1 }
0x1421   :  { %v4259_v28 = vpop.f32.mrb[33].mxu1 }
0x1424   :  { %v3146_v45 = vpop.f32.mrb[34].mxu1 }
0x1425   :  { %3499 = vrot.lane.b32.xlu0 %v3146_v45, %s4681_s26  ;;  %v4269_v32 = vpop.f32.mrb[35].mxu1 }
0x1428   :  { %v3314_v33 = vpop.f32.mrb[36].mxu1 }
0x1429   :  { %3503 = vrot.lane.b32.xlu0 %v3314_v33, %s4691_s30  ;;  %v4279_v35 = vpop.f32.mrb[37].mxu1 }
0x142c   :  { %v3482_v36 = vpop.f32.mrb[38].mxu1 }
0x142d   :  { %3507 = vrot.lane.b32.xlu1 %v3482_v36, %s4690_s29  ;;  %v4289_v37 = vpop.f32.mrb[39].mxu1 }
0x1487   :  { %v2804_v39 = vpop.permute.xlu0 %2803 }
0x1488   :  { %v2814_v42 = vsel %vm224_vm2, %v5093_v59, %v2804_v39 }
0x148b   :  { %v2808_v40 = vpop.permute.xlu1 %2807 }
0x148c   :  { %v2815_v8 = vsel %vm106_vm0, %v2814_v42, %v2808_v40 }
0x148f   :  { %v2812_v12 = vpop.permute.xlu1 %2811 }
0x1490   :  { %v2816_v46 = vsel %vm919_vm4, %v2815_v8, %v2812_v12  ;;  %v1963_v12 = vld [vmem:[#allocation5 + $0x13] ss:$0 sm:$0xff] }
0x1491   :  { %4306 = vmatprep.mubr.msk.f32.mxu0 %vm1617_vm5, %v2816_v46 }
0x1497   :  { %v3500_v52 = vpop.permute.xlu0 %3499 }
0x1498   :  { %v3510_v31 = vsel %vm224_vm2, %v2977_v27, %v3500_v52 }
0x149b   :  { %v3504_v43 = vpop.permute.xlu0 %3503 }
0x149c   :  { %v3511_v58 = vsel %vm106_vm0, %v3510_v31, %v3504_v43  ;;  %v1964_v43 = vld [vmem:[#allocation5 + $0x14] ss:$0 sm:$0xff] }
0x149f   :  { %v3508_v6 = vpop.permute.xlu1 %3507 }
0x14a0   :  { %v3512_v3 = vsel %vm919_vm4, %v3511_v58, %v3508_v6 }
0x14a1   :  { %4307 = vmatmul.mubr.msk.f32.vlgmr.msra.gmra.mrb[40].mxu0 %vm1617_vm5, %v3512_v3 }
0x1574   :  { %v4308_v51 = vpop.f32.mrb[40].mxu0 }
0x1575   :  { %v5209_v59 = vadd.f32 %v4308_v51, %v5003_v24  ;;  %v3585_v9 = vpop.f32.mrb[41].mxu0 }
0x1576   :  { %v5212_v10 = vadd.f32 %v3585_v9, %v5005_v15 }
0x1577   :  { %v3599_v56 = vsel %vm106_vm0, %v5209_v59, 0.0 }
0x1578   :  { %3600 = vadd.xlane.f32.xlu1 %v3599_v56  ;;  %v3596_v13 = vsel %vm106_vm0, %v5212_v10, 0.0 }
0x1579   :  { %3597 = vadd.xlane.f32.xlu0 %v3596_v13 }
0x1589   :  { %895 = vrot.lane.b32.xlu1 %v4911_v38, %s4681_s26 }
0x158d   :  { %898 = vrot.lane.b32.xlu1 %v4919_v44, %s4694_s7 }
0x1591   :  { %1590 = vrot.lane.b32.xlu1 %v4936_v55, %s4684_s13 }
0x1595   :  { %1596 = vrot.lane.b32.xlu1 %v4952_v62, %s4694_s7 }
0x1599   :  { %2793 = vrot.lane.b32.xlu1 %v5147_v34, %s4681_s26 }
0x159d   :  { %3486 = vrot.lane.b32.xlu1 %v5172_v60, %s4684_s13 }
0x15a1   :  { %3492 = vrot.lane.b32.xlu1 %v5188_v57, %s4694_s7  ;;  %v1985_v57 = vld [vmem:[#allocation7 + $0x2c8] sm:$0xff] }
0x15a2   :  { %v4432_v18 = vpack.c.bf16 %v1987_v17, %v1985_v57  ;;  %v1996_v57 = vld [vmem:[#allocation7 + $0x340] sm:$0xff]  ;;  %v1997_v17 = vld [vmem:[#allocation7 + $0x350] sm:$0xff] }
0x15a3   :  { %v4448_v20 = vpack.c.bf16 %v1997_v17, %v1996_v57 }
0x15a4   :  { %4433 = vmatprep.subr.bf16.mxu1 %v4432_v18 }
0x15a5   :  { %4435 = vmatpush1.bf16.msra.mxu1 %v4434_v0 }
0x15a6   :  { %4437 = vmatprep.subr.bf16.mxu1 %v4436_v2  ;;  %v1999_v2 = vld [vmem:[#allocation7 + $0x370] sm:$0xff] }
0x15a7   :  { %v4452_v23 = vpack.c.bf16 %v1999_v2, %v1998_v22 }
0x15a9   :  { %4439 = vmatpush1.bf16.msra.mxu1 %v4438_v4  ;;  %v2000_v4 = vld [vmem:[#allocation7 + $0x380] sm:$0xff] }
0x1605   :  { %v3601_v38 = vpop.xlane.xlu1 %3600 }
0x1606   :  { %v3603_v24 = vmul.f32 0.03125, %v3601_v38  ;;  %v3598_v15 = vpop.xlane.xlu0 %3597 }
0x1607   :  { %v3602_v30 = vmul.f32 0.03125, %v3598_v15 }
0x1608   :  { %v5233_v44 = vsub.f32 %v5209_v59, %v3603_v24 }
0x1609   :  { %v3604_v55 = vsub.f32 %v5212_v10, %v3602_v30 }
0x160a   :  { %v3607_v34 = vmul.f32 %v5233_v44, %v5233_v44 }
0x160b   :  { %v3606_v16 = vmul.f32 %v3604_v55, %v3604_v55 }
0x160c   :  { %v3611_v60 = vsel %vm106_vm0, %v3607_v34, 0.0  ;;  %v1995_v34 = vld [vmem:[#allocation7 + $0x330] sm:$0xff] }
0x160d   :  { %v3608_v62 = vsel %vm106_vm0, %v3606_v16, 0.0  ;;  %v1993_v16 = vld [vmem:[#allocation7 + $0x310] sm:$0xff] }
0x160e   :  { %3609 = vadd.xlane.f32.xlu0 %v3608_v62 }
0x1612   :  { %3612 = vadd.xlane.f32.xlu0 %v3611_v60 }
0x1628   :  { %892 = vrot.lane.b32.xlu0 %v4903_v29, %s4684_s13  ;;  %v896_v29 = vpop.permute.xlu1 %895 }
0x162c   :  { %1593 = vrot.lane.b32.xlu0 %v4944_v54, %s4681_s26  ;;  %v899_v11 = vpop.permute.xlu1 %898 }
0x1630   :  { %2790 = vrot.lane.b32.xlu0 %v5140_v47, %s4684_s13  ;;  %v1591_v26 = vpop.permute.xlu1 %1590 }
0x1631   :  { %v1599_v36 = vsel %vm299_vm3, %v4928_v48, %v1591_v26  ;;  %v2003_v26 = vld [vmem:[#allocation7 + $0x3b0] sm:$0xff] }
0x1634   :  { %2796 = vrot.lane.b32.xlu0 %v5155_v41, %s4694_s7  ;;  %v1597_v32 = vpop.permute.xlu1 %1596 }
0x1638   :  { %3489 = vrot.lane.b32.xlu0 %v5180_v5, %s4681_s26  ;;  %v2794_v39 = vpop.permute.xlu1 %2793 }
0x163c   :  { %v3487_v6 = vpop.permute.xlu1 %3486 }
0x1640   :  { %v3493_v15 = vpop.permute.xlu1 %3492 }
0x169b   :  { %v3610_v25 = vpop.xlane.xlu0 %3609 }
0x169c   :  { %v3614_v54 = vmul.f32 0.03125, %v3610_v25  ;;  %v2002_v25 = vld [vmem:[#allocation7 + $0x3a0] sm:$0xff] }
0x169e   :  { %v3616_v27 = vadd.f32 1e-05, %v3614_v54  ;;  %v4460_v54 = vpack.c.bf16 %v2003_v26, %v2002_v25 }
0x169f   :  { %v3613_v28 = vpop.xlane.xlu0 %3612 }
0x16a0   :  { %4573 = vrsqrt.f32 %v3616_v27  ;;  %v3615_v45 = vmul.f32 0.03125, %v3613_v28  ;;  %v2004_v27 = vld [vmem:[#allocation7 + $0x3c0] sm:$0xff]  ;;  %v2005_v28 = vld [vmem:[#allocation7 + $0x3d0] sm:$0xff] }
0x16a2   :  { %v3617_v33 = vadd.f32 1e-05, %v3615_v45  ;;  %v4464_v45 = vpack.c.bf16 %v2005_v28, %v2004_v27 }
0x16a3   :  { %v893_v35 = vpop.permute.xlu0 %892 }
0x16a4   :  { %4575 = vrsqrt.f32 %v3617_v33  ;;  %v901_v47 = vsel %vm299_vm3, %v4815_v63, %v893_v35  ;;  %v2007_v33 = vld [vmem:[#allocation7 + $0x3f0] sm:$0xff] }
0x16a5   :  { %v902_v41 = vsel %vm224_vm2, %v901_v47, %v896_v29  ;;  %v2001_v29 = vld [vmem:[#allocation7 + $0x390] sm:$0xff] }
0x16a6   :  { %v904_v5 = vsel %vm903_vm8, %v902_v41, %v899_v11  ;;  %v4456_v11 = vpack.c.bf16 %v2001_v29, %v2000_v4  ;;  %v1965_v47 = vld [vmem:[#allocation5 + $0x10] ss:$8 sm:$0x3] }
0x16a7   :  { %v1594_v37 = vpop.permute.xlu0 %1593  ;;  %v3634_v41 = vrot.slane %v1965_v47, %v1738_v1  ;;  %v3630_v4 = vrot.slane %v1965_v47, %v1734_v53 }
0x16a8   :  { %v1600_v40 = vsel %vm224_vm2, %v1599_v36, %v1594_v37 }
0x16a9   :  { %v1601_v42 = vsel %vm903_vm8, %v1600_v40, %v1597_v32  ;;  %v2006_v32 = vld [vmem:[#allocation7 + $0x3e0] sm:$0xff] }
0x16aa   :  { %v4574_v8 = vpop.eup %4573  ;;  %3858 = vrot.lane.b32.xlu0 %v1601_v42, %s4691_s30  ;;  %v4468_v35 = vpack.c.bf16 %v2007_v33, %v2006_v32 }
0x16ab   :  { %v3620_v46 = vmul.f32 %v4574_v8, %v3604_v55  ;;  %v2791_v52 = vpop.permute.xlu0 %2790  ;;  %v1992_v55 = vld [vmem:[#allocation7 + $0x300] sm:$0xff] }
0x16ac   :  { %v2799_v63 = vsel %vm299_vm3, %v5070_v49, %v2791_v52  ;;  %v3495_v49 = vsel %vm299_vm3, %v5164_v50, %v3487_v6  ;;  %v4440_v62 = vpack.c.bf16 %v1993_v16, %v1992_v55 }
0x16ad   :  { %v3622_v31 = vmul.f32 %v3620_v46, %v1963_v12  ;;  %v2800_v48 = vsel %vm224_vm2, %v2799_v63, %v2794_v39 }
0x16ae   :  { %v4576_v58 = vpop.eup %4575  ;;  %4441 = vmatprep.subr.bf16.mxu1 %v4440_v62 }
0x16af   :  { %v2797_v3 = vpop.permute.xlu0 %2796  ;;  %v3624_v51 = vadd.f32 %v3622_v31, %v1964_v43  ;;  %v3621_v9 = vmul.f32 %v4576_v58, %v5233_v44 }
0x16b0   :  { %v2801_v56 = vsel %vm903_vm8, %v2800_v48, %v2797_v3 }
0x16b1   :  { %3954 = vmatmul.mubr.msk.f32.vlgmr.msra.gmra.mrb[40].mxu1 %vm106_vm0, %v3624_v51  ;;  %3862 = vrot.lane.b32.xlu1 %v2801_v56, %s4688_s2  ;;  %v3623_v13 = vmul.f32 %v3621_v9, %v1963_v12 }
0x16b2   :  { %3713 = vmatprep.mubr.f32.mxu1 %v4686_v14  ;;  %4443 = vmatpush3.bf16.msra.mxu1 %v4440_v62  ;;  %v1994_v14 = vld [vmem:[#allocation7 + $0x320] sm:$0xff] }
0x16b3   :  { %v3490_v38 = vpop.permute.xlu0 %3489  ;;  %v3625_v24 = vadd.f32 %v3623_v13, %v1964_v43  ;;  %v4444_v60 = vpack.c.bf16 %v1995_v34, %v1994_v14 }
0x16b4   :  { %v3496_v30 = vsel %vm224_vm2, %v3495_v49, %v3490_v38 }
0x16b5   :  { %3955 = vmatmul.mubr.msk.f32.gmra.mrb[42].mxu1 %vm106_vm0, %v3625_v24  ;;  %v3497_v44 = vsel %vm903_vm8, %v3496_v30, %v3493_v15  ;;  %4445 = vmatprep.subr.bf16.mxu1 %v4444_v60 }
0x16b6   :  { %3866 = vrot.lane.b32.xlu0 %v3497_v44, %s4692_s5  ;;  %4447 = vmatpush3.bf16.msra.mxu1 %v4444_v60 }
0x16b7   :  { %4449 = vmatprep.subr.bf16.mxu1 %v4448_v20 }
0x16ba   :  { %4451 = vmatpush3.bf16.msra.mxu1 %v4448_v20 }
0x16bb   :  { %4453 = vmatprep.subr.bf16.mxu1 %v4452_v23 }
0x16be   :  { %4455 = vmatpush3.bf16.msra.mxu1 %v4452_v23 }
0x16bf   :  { %4457 = vmatprep.subr.bf16.mxu1 %v4456_v11 }
0x16c2   :  { %4459 = vmatpush3.bf16.msra.mxu1 %v4456_v11 }
0x16c3   :  { %4461 = vmatprep.subr.bf16.mxu1 %v4460_v54 }
0x16c6   :  { %4463 = vmatpush3.bf16.msra.mxu1 %v4460_v54 }
0x16c7   :  { %4465 = vmatprep.subr.bf16.mxu1 %v4464_v45 }
0x16ca   :  { %4467 = vmatpush3.bf16.msra.mxu1 %v4464_v45 }
0x16cb   :  { %4469 = vmatprep.subr.bf16.mxu1 %v4468_v35 }
0x16ce   :  { %4471 = vmatpush3.bf16.msra.mxu1 %v4468_v35 }
0x171c   :  { %v3859_v50 = vpop.permute.xlu0 %3858 }
0x171d   :  { %v3869_v19 = vsel %vm106_vm0, %v904_v5, %v3859_v50 }
0x1723   :  { %v3863_v18 = vpop.permute.xlu1 %3862 }
0x1724   :  { %v3870_v0 = vsel %vm1617_vm5, %v3869_v19, %v3863_v18 }
0x1728   :  { %v3867_v21 = vpop.permute.xlu0 %3866 }
0x1729   :  { %v3872_v7 = vsel %vm3871_vm9, %v3870_v0, %v3867_v21 }
0x172a   :  { %3873 = vst [vmem:[%s5305_s4] sm:$0xff] %v3872_v7  ;;  %s4695_s4 = smov [#allocation8]  }
0x172b   :  { %s3879_s9 = sshll.u32 %s4695_s4, 4  ;;  %s3880_s9 = int_to_ptr.vmem [resolvable:$true] %s3879_s9 }
0x172c   :  { %s4651_s10 = scalar_lea.vmem %s3880_s9, 256  ;;  %p4656_p11 = scmp.lt.s32.totalorder %s3880_s9, %s3880_s9 }
0x172d   :  { %p4652_p10 = scmp.ne.s32.totalorder %s3880_s9, %s4651_s10  ;;  %p4657_p12 = scmp.lt.s32.totalorder %s4651_s10, %s4651_s10 }
0x172f   :  { %p4658_p13 = por %p4657_p12, %p4656_p11 }
0x1731   :  { %p4659_p0 = pnand %p4658_p13, %p4652_p10 }
0x1784   :  { %v3709_v5 = vpop.f32.mrb[40].mxu1 }
0x1785   :  { %v3711_v36 = vpop.f32.mrb[41].mxu1  ;;  %v3710_v27 = vadd.f32 %v3709_v5, %v3630_v4 }
0x1786   :  { %v3712_v37 = vadd.f32 %v3711_v36, %v3634_v41 }
0x1788   :  { %v3722_v39 = vmul.f32 0.70710677, %v3712_v37  ;;  %v3715_v40 = vpop.f32.mrb[42].mxu1  ;;  %v3720_v25 = vmul.f32 0.5, %v3712_v37 }
0x1789   :  { %v3717_v42 = vpop.f32.mrb[43].mxu1 }
0x178a   :  { %v3724_v8 = vand.u32 2147483647, %v3722_v39  ;;  %v3718_v12 = vadd.f32 %v3717_v42, %v3634_v41  ;;  %vm3764_vm10 = vcmp.lt.f32.partialorder %v3722_v39, 0.0  ;;  %v3716_v41 = vadd.f32 %v3715_v40, %v3630_v4 }
0x178c   :  { %v3726_v46 = vmul.f32 0.3275911, %v3724_v8  ;;  %v3723_v52 = vmul.f32 0.70710677, %v3718_v12  ;;  %v3752_v6 = vsub.f32 0.0, %v3724_v8  ;;  %v3721_v32 = vmul.f32 0.5, %v3718_v12 }
0x178e   :  { %v3728_v63 = vadd.f32 1.0, %v3726_v46  ;;  %v3725_v43 = vand.u32 2147483647, %v3723_v52  ;;  %v3754_v3 = vmul.f32 %v3752_v6, %v3724_v8  ;;  %vm3765_vm11 = vcmp.lt.f32.partialorder %v3723_v52, 0.0 }
0x1790   :  { %4577 = vrcp.f32 %v3728_v63  ;;  %v3727_v31 = vmul.f32 0.3275911, %v3725_v43  ;;  %v3753_v1 = vsub.f32 0.0, %v3725_v43  ;;  %v3756_v13 = vmul.f32 1.442695, %v3754_v3 }
0x1792   :  { %v3729_v58 = vadd.f32 1.0, %v3727_v31  ;;  %v3755_v49 = vmul.f32 %v3753_v1, %v3725_v43 }
0x1794   :  { %4579 = vrcp.f32 %v3729_v58  ;;  %v3758_v44 = vmul.f32 1.442695, %v3755_v49 }
0x1795   :  { %4581 = vpow2.f32 %v3756_v13 }
0x1796   :  { %4583 = vpow2.f32 %v3758_v44 }
0x179a   :  { %v4578_v48 = vpop.eup %4577 }
0x179b   :  { %v3734_v51 = vmul.f32 1.0614054, %v4578_v48 }
0x179d   :  { %v3736_v9 = vadd.f32 -1.4531521, %v3734_v51 }
0x179e   :  { %v4580_v56 = vpop.eup %4579 }
0x179f   :  { %v3738_v38 = vmul.f32 %v4578_v48, %v3736_v9  ;;  %v3735_v24 = vmul.f32 1.0614054, %v4580_v56  ;;  %v4582_v20 = vpop.eup %4581 }
0x17a0   :  { %v4584_v2 = vpop.eup %4583 }
0x17a1   :  { %v3740_v15 = vadd.f32 1.4214138, %v3738_v38  ;;  %v3737_v30 = vadd.f32 -1.4531521, %v3735_v24 }
0x17a3   :  { %v3742_v55 = vmul.f32 %v4578_v48, %v3740_v15  ;;  %v3739_v16 = vmul.f32 %v4580_v56, %v3737_v30 }
0x17a5   :  { %v3744_v62 = vadd.f32 -0.28449672, %v3742_v55  ;;  %v3741_v14 = vadd.f32 1.4214138, %v3739_v16 }
0x17a7   :  { %v3746_v34 = vmul.f32 %v4578_v48, %v3744_v62  ;;  %v3743_v60 = vmul.f32 %v4580_v56, %v3741_v14 }
0x17a9   :  { %v3748_v50 = vadd.f32 0.2548296, %v3746_v34  ;;  %v3745_v57 = vadd.f32 -0.28449672, %v3743_v60 }
0x17ab   :  { %v3750_v17 = vmul.f32 %v4578_v48, %v3748_v50  ;;  %v3747_v18 = vmul.f32 %v4580_v56, %v3745_v57 }
0x17ad   :  { %v3760_v19 = vmul.f32 %v4582_v20, %v3750_v17  ;;  %v3749_v0 = vadd.f32 0.2548296, %v3747_v18 }
0x17af   :  { %v3762_v21 = vsub.f32 1.0, %v3760_v19  ;;  %v3751_v22 = vmul.f32 %v4580_v56, %v3749_v0 }
0x17b1   :  { %v3766_v7 = vsub.f32 0.0, %v3762_v21  ;;  %v3761_v23 = vmul.f32 %v4584_v2, %v3751_v22 }
0x17b3   :  { %v3768_v29 = vsel %vm3764_vm10, %v3766_v7, %v3762_v21  ;;  %v3763_v11 = vsub.f32 1.0, %v3761_v23 }
0x17b4   :  { %v3770_v26 = vadd.f32 1.0, %v3768_v29 }
0x17b5   :  { %v3767_v54 = vsub.f32 0.0, %v3763_v11 }
0x17b6   :  { %v3772_v28 = vmul.f32 %v3770_v26, %v3720_v25 }
0x17b7   :  { %v3769_v45 = vsel %vm3765_vm11, %v3767_v54, %v3763_v11 }
0x17b8   :  { %v3771_v33 = vadd.f32 1.0, %v3769_v45  ;;  %v3774_v35 = vmul.f32 %v3772_v28, %v3710_v27 }
0x17ba   :  { %v3773_v36 = vmul.f32 %v3771_v33, %v3721_v32  ;;  %4341 = vmatprep.mubr.f32.mxu1 %v3774_v35 }
0x17bc   :  { %v3775_v42 = vmul.f32 %v3773_v36, %v3716_v41 }
0x17be   :  { %4342 = vmatmul.mubr.f32.vlgmr.msra.gmra.mrb[44].mxu1 %v3775_v42 }
0x1891   :  { %v4343_v53 = vpop.f32.mrb[44].mxu1 }
0x1892   :  { %v3852_v47 = vadd.f32 %v4343_v53, %v5209_v59  ;;  %v3842_v39 = vpop.f32.mrb[45].mxu1 }
0x1893   :  { %v3851_v5 = vadd.f32 %v3842_v39, %v5212_v10 }
0x1894   :  { %v3854_v37 = vadd.f32 %v3852_v47, %v1966_v61 }
0x1895   :  { %v3853_v8 = vadd.f32 %v3851_v5, %v1966_v61 }
0x1896   :  { %3856 = vst.msk [vmem:[#allocation8 + $0x8] sm:$0xff] %vm106_vm0, %v3854_v37 }
0x1897   :  { %3855 = vst.msk [vmem:[#allocation8] sm:$0xff] %vm106_vm0, %v3853_v8 }
0x1898   :  { %4662 = shalt.err (!%p4659_p0)
}
0x1899   :  { %s4663_s14 = scalar_lea.hbm %s5304_s3, 256 }
0x189a   :  { %p4664_p1 = scmp.ne.s32.totalorder %s5304_s3, %s4663_s14  ;;  %p4667_p2 = scmp.lt.u32.totalorder %s4663_s14, %s5304_s3 }
0x189c   :  { %p4669_p3 = pnand %p4667_p2, %p4664_p1 }
0x189e   :  { %4672 = shalt.err (!%p4669_p3)
}
0x189f   :  { %3885 = dma.vmem_to_hbm [thread:$0]  %s3880_s9, 256, %s5304_s3, [#allocation4], %s4683_s1, %s4683_s1, %s4684_s13  }
0x18a0   :  { %4677 = dma.done.wait [#allocation4], 256  }
0x18a1   :  { %4678 = vsyncadd [#allocation4], 4294967040 }
0x18a2   :  { %3893 = vsyncpa [#allocation3], 1 }
0x18a3   :  { %3894 = vsyncpa [#allocation6], 1 }
0x18a4   :  { %3895 = vsyncpa [#allocation4], 1 }

</bundles_post_ra>
